<compile_context>
chip_gen: v7x
topology: tpu7x:2x2x1
jax: 0.10.0
libtpu: 0.0.40
codegen_flags: <defaults>
</compile_context>

<pallas_src>
import functools
import math

import numpy as np
import jax
import jax.numpy as jnp
from jax.experimental import pallas as pl
from jax.experimental.pallas import tpu as pltpu


_KT = 512                        # code-tile size (lane-aligned, 4x fewer grid steps)


def _vmem_capacity_bytes():
    try:
        return int(pltpu.get_tpu_info().vmem_capacity_bytes)
    except Exception:
        return 128 << 20


_VMEM_CAP = _vmem_capacity_bytes()
# v7x has 64 MiB VMEM per TensorCore -> keep the scoped limit conservative there;
# v5e/v6e have 128 MiB so give the pipeliner more room.
_VMEM_LIMIT = (64 << 20) if _VMEM_CAP >= (100 << 20) else (40 << 20)


# ------------------------- K1: segment sum + assemble ------------------------

def _segment_assemble_kernel(kts_ref,            # scalar prefetch: per-person first code tile
                             spans_ref,          # scalar prefetch: per-person #code tiles
                             slot_ref,           # [1, Kt] int32 global slot id per code (-1 = drop)
                             emb_ref,            # [Kt, D] f32 gathered concept embeddings
                             times_ref,          # [1, S, 1] f32 clamped visit times
                             valid_ref,          # [1, S, 1] f32 1.0 where a real visit exists
                             pad_ref,            # [1, D]  f32 pad embedding
                             ts_ref,             # [1, D]  f32 timescales duplicated (sin|cos halves)
                             out_ref,            # [1, S, D] f32
                             acc_ref):           # scratch [S, D] f32
    b = pl.program_id(0)
    k = pl.program_id(1)
    S, D = acc_ref.shape
    Kt = slot_ref.shape[1]

    @pl.when(k == 0)
    def _():
        acc_ref[...] = jnp.zeros_like(acc_ref)

    # index_add_ expressed as an on-the-fly one-hot matmul (MXU).  Persons with
    # fewer code tiles than kmax skip the padded steps entirely.
    @pl.when(k < spans_ref[b])
    def _():
        slot_iota = jax.lax.broadcasted_iota(jnp.int32, (S, Kt), 0) + b * S
        onehot = (slot_ref[...] == slot_iota).astype(jnp.bfloat16)      # exact in bf16
        emb = emb_ref[...]
        emb_hi = emb.astype(jnp.bfloat16)                                # hi/lo split: 2 bf16
        emb_lo = (emb - emb_hi.astype(jnp.float32)).astype(jnp.bfloat16)  # matmuls ≈ f32 accuracy
        acc_ref[...] += (
            jnp.dot(onehot, emb_hi, preferred_element_type=jnp.float32)
            + jnp.dot(onehot, emb_lo, preferred_element_type=jnp.float32))

    @pl.when(k == pl.num_programs(1) - 1)
    def _():
        Dh = D // 2
        # TODO(synk): times/valid are lane-width-1 blocks (minor layout tax); a
        #             lane-dense (B, S) layout would need an in-kernel transpose.
        t = times_ref[0]                                               # [S, 1]
        ang = t * ts_ref[...]                                          # [S, D]
        lane = jax.lax.broadcasted_iota(jnp.int32, (S, D), 1)
        temb = jnp.where(lane < Dh, jnp.sin(ang), jnp.cos(ang))        # concat-free sin|cos
        v = valid_ref[0]                                               # [S, 1]
        res = v * (acc_ref[...] + temb) + (1.0 - v) * pad_ref[...]
        out_ref[...] = res[None]


def _segment_assemble(code_slot, ktile_start, spans, emb, times, valid, pad,
                      ts_full, *, kmax, kt):
    B, S, _ = times.shape
    D = emb.shape[1]

    # Clamp padded steps to the person's own last tile: the block index then does
    # not change, so the pipeline skips the redundant DMA; compute is skipped by
    # the span guard inside the kernel.
    def tile(b, k, kts, sp):
        return jnp.minimum(kts[b] + k, kts[b] + sp[b] - 1)

    grid_spec = pltpu.PrefetchScalarGridSpec(
        num_scalar_prefetch=2,
        grid=(B, kmax),
        in_specs=[
            pl.BlockSpec((1, kt), lambda b, k, kts, sp: (0, tile(b, k, kts, sp))),
            pl.BlockSpec((kt, D), lambda b, k, kts, sp: (tile(b, k, kts, sp), 0)),
            pl.BlockSpec((1, S, 1), lambda b, k, kts, sp: (b, 0, 0)),
            pl.BlockSpec((1, S, 1), lambda b, k, kts, sp: (b, 0, 0)),
            pl.BlockSpec((1, D), lambda b, k, kts, sp: (0, 0)),
            pl.BlockSpec((1, D), lambda b, k, kts, sp: (0, 0)),
        ],
        out_specs=pl.BlockSpec((1, S, D), lambda b, k, kts, sp: (b, 0, 0)),
        scratch_shapes=[pltpu.VMEM((S, D), jnp.float32)],
    )
    return pl.pallas_call(
        _segment_assemble_kernel,
        out_shape=jax.ShapeDtypeStruct((B, S, D), jnp.float32),
        grid_spec=grid_spec,
        compiler_params=pltpu.CompilerParams(
            dimension_semantics=("parallel", "arbitrary"),
            vmem_limit_bytes=_VMEM_LIMIT),
    )(ktile_start, spans, code_slot, emb, times, valid, pad, ts_full)


# --------------------------- K2: transformer stack ---------------------------

def _layernorm(x, g, b, eps=1e-6):
    # BERT-pytorch TransformerBlock LayerNorm uses eps=1e-6.
    mu = jnp.mean(x, axis=-1, keepdims=True)
    var = jnp.mean(jnp.square(x - mu), axis=-1, keepdims=True)
    return (x - mu) * jax.lax.rsqrt(var + eps) * g + b


def _transformer_stack_kernel(x_ref,
                              ln1g_ref, ln1b_ref,
                              wqkv_ref, bqkv_ref,
                              wo_ref, bo_ref,
                              ln2g_ref, ln2b_ref,
                              w1_ref, b1_ref, w2_ref, b2_ref,
                              out_ref, *, n_heads):
    l = pl.program_id(1)

    @pl.when(l == 0)
    def _():
        out_ref[...] = x_ref[...]        # output block = VMEM-resident activation

    x = out_ref[...]                      # [Bt, S, D] f32
    Bt, S, D = x.shape
    nh = n_heads
    dh = D // nh
    scale = 1.0 / math.sqrt(dh)

    # ---- multi-head self-attention (pre-LN), fused QKV projection ----
    h = _layernorm(x, ln1g_ref[l], ln1b_ref[l]).reshape(Bt * S, D).astype(jnp.bfloat16)
    qkv = (jnp.dot(h, wqkv_ref[l], preferred_element_type=jnp.float32)
           + bqkv_ref[l]).reshape(Bt, S, 3 * D)                        # one D x 3D matmul

    def split_heads(base):               # static lane slices -> [nh*Bt, S, dh]
        return jnp.concatenate(
            [qkv[:, :, base + hh * dh: base + (hh + 1) * dh] for hh in range(nh)],
            axis=0)

    q = split_heads(0)
    k = split_heads(D)
    v = split_heads(2 * D)

    s = jnp.einsum('bqd,bkd->bqk', q.astype(jnp.bfloat16), k.astype(jnp.bfloat16),
                   preferred_element_type=jnp.float32) * scale
    s = s - jnp.max(s, axis=-1, keepdims=True)
    p = jnp.exp(s)
    denom = jnp.sum(p, axis=-1, keepdims=True)                         # [nh*Bt, S, 1]
    ctx = jnp.einsum('bqk,bkd->bqd', p.astype(jnp.bfloat16), v.astype(jnp.bfloat16),
                     preferred_element_type=jnp.float32)               # [nh*Bt, S, dh]
    # deferred (flash-style) softmax normalization: scale ctx, not p
    ctx = ctx * pl.reciprocal(denom, approx=False)

    # concat heads into lanes, then a single [Bt*S, D] x [D, D] output projection
    ctx_cat = jnp.concatenate([ctx[hh * Bt:(hh + 1) * Bt] for hh in range(nh)],
                              axis=-1)                                 # [Bt, S, D]
    attn = (jnp.dot(ctx_cat.reshape(Bt * S, D).astype(jnp.bfloat16), wo_ref[l],
                    preferred_element_type=jnp.float32)
            + bo_ref[l]).reshape(Bt, S, D)
    x1 = x + attn

    # ---- position-wise feed-forward (big (Bt*S, D) matmuls, bf16 operands) ----
    h2 = _layernorm(x1, ln2g_ref[l], ln2b_ref[l]).reshape(Bt * S, D).astype(jnp.bfloat16)
    f = jnp.dot(h2, w1_ref[l], preferred_element_type=jnp.float32) + b1_ref[l]
    # TODO(synk): BERT-pytorch TransformerBlock uses the tanh GELU approximation;
    #             torch.nn.GELU default is exact erf -- kept tanh here.
    f = jax.nn.gelu(f, approximate=True)
    f = jnp.dot(f.astype(jnp.bfloat16), w2_ref[l],
                preferred_element_type=jnp.float32) + b2_ref[l]
    out_ref[...] = x1 + f.reshape(Bt, S, D)


_W_ORDER = ('ln1_g', 'ln1_b', 'wqkv', 'bqkv', 'wo', 'bo',
            'ln2_g', 'ln2_b', 'w1', 'b1', 'w2', 'b2')


def _transformer_stack(x, w, *, n_heads, bt):
    B, S, D = x.shape
    L = w['wqkv'].shape[0]

    def const_spec(arr):                  # full stack, constant block index -> VMEM resident
        nd = arr.ndim
        return pl.BlockSpec(arr.shape, lambda b, l, nd=nd: (0,) * nd)

    kernel = functools.partial(_transformer_stack_kernel, n_heads=n_heads)
    grid_spec = pltpu.PrefetchScalarGridSpec(
        num_scalar_prefetch=0,
        grid=(B // bt, L),
        in_specs=[pl.BlockSpec((bt, S, D), lambda b, l: (b, 0, 0))]
                 + [const_spec(w[kk]) for kk in _W_ORDER],
        out_specs=pl.BlockSpec((bt, S, D), lambda b, l: (b, 0, 0)),
    )
    return pl.pallas_call(
        kernel,
        out_shape=jax.ShapeDtypeStruct((B, S, D), jnp.float32),
        grid_spec=grid_spec,
        compiler_params=pltpu.CompilerParams(
            dimension_semantics=("parallel", "arbitrary"),
            vmem_limit_bytes=_VMEM_LIMIT),
    )(x, *[w[kk] for kk in _W_ORDER])


# ----------------------- jitted end-to-end device pipeline -------------------

@functools.partial(jax.jit, static_argnames=("n_heads", "bt", "kmax", "kt"))
def _device_forward(codes, code_slot, ktile_start, spans, times, valid,
                    concept_table, pad, ts_full, stacked,
                    *, n_heads, bt, kmax, kt):
    emb = jnp.take(concept_table, codes, axis=0)          # gather glue, O(codes*D)
    x = _segment_assemble(code_slot, ktile_start, spans, emb, times, valid,
                          pad, ts_full, kmax=kmax, kt=kt)
    return _transformer_stack(x, stacked, n_heads=n_heads, bt=bt)


def _pick_bt(B, S, n_heads):
    """Batch-tile size.  On 64 MiB-VMEM parts (v7x) cap at 4 and keep >=2 batch
    tiles so the 'parallel' axis feeds both TensorCores; cap the per-layer
    attention score tensors against a VMEM budget."""
    small_vmem = _VMEM_CAP < (100 << 20)
    max_bt = 4 if small_vmem else 8
    bt = 1
    for c in (8, 4, 2, 1):
        if c <= max_bt and B % c == 0:
            bt = c
            break
    budget = (10 << 20) if small_vmem else (28 << 20)
    while bt > 1 and n_heads * bt * S * S * 6 > budget:   # f32 scores + bf16 copy
        bt //= 2
    while small_vmem and bt > 1 and (B // bt) < 2:        # feed both v7x TCs
        bt //= 2
    return bt


# --------------------------------- the module --------------------------------

class VisitTransformerPallas:
    """Deterministic, synthetic-weight re-implementation of VisitTransformer
    (time_emb_type='sin', use_mask=False, use_RNN=False)."""

    def __init__(self, n_concepts, embedding_dim=32, n_heads=2, attn_depth=2,
                 max_days=365, max_visits=510, key=None):
        self.n_heads = n_heads
        self.embedding_dim = embedding_dim * n_heads      # as in the torch module
        self.attn_depth = attn_depth
        self.max_days = max_days
        self.max_visits = max_visits
        D = self.embedding_dim
        H = 4 * D
        key = jax.random.PRNGKey(0) if key is None else key
        ks = jax.random.split(key, 4 + attn_depth)

        # torch.nn.Embedding default ~ N(0, 1)
        self.concept_table = jax.random.normal(ks[0], (n_concepts, D), jnp.float32)
        # matches torch: ((1/10000)**(1/D))**arange(D//2)  ->  (1/10000)^(i/D)
        timescales = ((1.0 / 10000.0) ** (1.0 / D)) ** jnp.arange(D // 2, dtype=jnp.float32)
        self.ts_full = jnp.concatenate([timescales, timescales])       # sin | cos halves
        self.pad_embedding = jnp.zeros((D,), jnp.float32)
        self.start_embedding = jax.random.normal(ks[1], (D,), jnp.float32)  # unused in fwd
        self.mask_embedding = jax.random.normal(ks[2], (D,), jnp.float32)   # unused in fwd

        per_layer = {kk: [] for kk in _W_ORDER}
        for d in range(attn_depth):
            kk = jax.random.split(ks[3 + d], 6)
            s = 1.0 / math.sqrt(D)
            s2 = 1.0 / math.sqrt(H)
            wq = jax.random.uniform(kk[0], (D, D), jnp.float32, -s, s)
            wk = jax.random.uniform(kk[1], (D, D), jnp.float32, -s, s)
            wv = jax.random.uniform(kk[2], (D, D), jnp.float32, -s, s)
            wo = jax.random.uniform(kk[3], (D, D), jnp.float32, -s, s)
            per_layer['ln1_g'].append(jnp.ones((1, D), jnp.float32))
            per_layer['ln1_b'].append(jnp.zeros((1, D), jnp.float32))
            per_layer['wqkv'].append(
                jnp.concatenate([wq, wk, wv], axis=1).astype(jnp.bfloat16))   # [D, 3D]
            per_layer['bqkv'].append(jnp.zeros((1, 3 * D), jnp.float32))
            per_layer['wo'].append(wo.astype(jnp.bfloat16))                   # [D, D]
            per_layer['bo'].append(jnp.zeros((1, D), jnp.float32))
            per_layer['ln2_g'].append(jnp.ones((1, D), jnp.float32))
            per_layer['ln2_b'].append(jnp.zeros((1, D), jnp.float32))
            per_layer['w1'].append(
                jax.random.uniform(kk[4], (D, H), jnp.float32, -s, s).astype(jnp.bfloat16))
            per_layer['b1'].append(jnp.zeros((1, H), jnp.float32))
            per_layer['w2'].append(
                jax.random.uniform(kk[5], (H, D), jnp.float32, -s2, s2).astype(jnp.bfloat16))
            per_layer['b2'].append(jnp.zeros((1, D), jnp.float32))
        self.stacked = {kk: jnp.stack(v) for kk, v in per_layer.items()}

    def forward(self, person_range, all_codes_tensor, person_indices, visit_chunks,
                visit_time_rel, n_visits):
        # TODO(synk): this ragged host-side bookkeeping could be precomputed once per
        #             dataset rather than per forward call.
        D = self.embedding_dim
        S = self.max_visits
        B = len(person_range)
        Kt = _KT

        code_rows, code_slot = [], []
        ktile_start = np.zeros((B,), np.int32)
        spans = np.ones((B,), np.int32)
        times_dense = np.zeros((B, S), np.float32)
        valid = np.zeros((B, S), np.float32)

        pos = 0
        for i, p in enumerate(person_range):
            base = person_indices[p]
            chunks = visit_chunks[p]
            nv = len(chunks) - 1
            seq_len = min(S, nv)
            start_pos = pos
            for vtx in range(nv):
                a, b = chunks[vtx], chunks[vtx + 1]
                nslot = vtx - (nv - seq_len)
                slot = i * S + (S - seq_len + nslot) if nslot >= 0 else -1
                for j in range(base + a, base + b):
                    code_rows.append(j)
                    code_slot.append(slot)
                    pos += 1
            end_pos = pos
            ktile_start[i] = start_pos // Kt
            last_tile = (end_pos - 1) // Kt if end_pos > start_pos else ktile_start[i]
            spans[i] = last_tile - ktile_start[i] + 1
            if seq_len > 0:
                t = np.clip(np.asarray(visit_time_rel[p], np.float32), 0, self.max_days - 1)
                times_dense[i, S - seq_len:] = t[nv - seq_len:nv]
                valid[i, S - seq_len:] = 1.0

        n_sel = pos
        npad0 = max(Kt, int(math.ceil(n_sel / Kt)) * Kt)
        npad = npad0 + Kt                       # + one guaranteed-empty padding tile
        codes_arr = np.zeros((npad,), np.int32)
        if n_sel:
            codes_arr[:n_sel] = np.asarray(all_codes_tensor)[np.asarray(code_rows, np.int64)]
        slot_arr = np.full((1, npad), -1, np.int32)
        if n_sel:
            slot_arr[0, :n_sel] = np.asarray(code_slot, np.int32)
        kmax = int(spans.max())

        out = _device_forward(
            jnp.asarray(codes_arr), jnp.asarray(slot_arr),
            jnp.asarray(ktile_start), jnp.asarray(spans),
            jnp.asarray(times_dense)[..., None], jnp.asarray(valid)[..., None],
            self.concept_table, self.pad_embedding.reshape(1, D),
            self.ts_full.reshape(1, D), self.stacked,
            n_heads=self.n_heads, bt=_pick_bt(B, S, self.n_heads), kmax=kmax, kt=Kt)
        return out


# ----------------------------------- demo ------------------------------------

if __name__ == "__main__":
    key = jax.random.PRNGKey(0)
    kdata, kmodel = jax.random.split(key)

    n_concepts = 50
    base_embedding_dim = 32      # -> embedding_dim = 32 * n_heads = 64
    n_heads = 2
    attn_depth = 2
    max_visits = 16              # module default is 510; small for the demo
    max_days = 365

    person_range = [0, 1]
    n_visits = [5, 7]
    codes_per_visit = 3

    visit_chunks, person_indices, visit_time_rel = [], [], []
    off = 0
    for i, p in enumerate(person_range):
        nv = n_visits[p]
        visit_chunks.append([codes_per_visit * v for v in range(nv + 1)])
        person_indices.append(off)
        off += codes_per_visit * nv
        # deterministic times; includes values outside [0, max_days-1] to exercise clamp
        visit_time_rel.append([400 - 37 * (v + 5 * i) for v in range(nv)])
    total_codes = off
    all_codes_tensor = np.asarray(
        jax.random.randint(kdata, (total_codes,), 0, n_concepts, dtype=jnp.int32))

    model = VisitTransformerPallas(n_concepts=n_concepts,
                                   embedding_dim=base_embedding_dim,
                                   n_heads=n_heads, attn_depth=attn_depth,
                                   max_days=max_days, max_visits=max_visits,
                                   key=kmodel)

    out = model.forward(person_range, all_codes_tensor, person_indices,
                        visit_chunks, visit_time_rel, n_visits)
    out = jax.block_until_ready(out)

    assert out.shape == (len(person_range), max_visits, model.embedding_dim), out.shape
    assert bool(jnp.all(jnp.isfinite(out)))
    print("KERNEL_OK")
</pallas_src>

<mosaic_0001>
module attributes {stable_mosaic.version = 11 : i64} {
  func.func @_transformer_stack_kernel(%arg0: i32, %arg1: i32, %arg2: memref<2x16x64xf32, #tpu.memory_space<vmem>>, %arg3: memref<2x1x64xf32, #tpu.memory_space<vmem>>, %arg4: memref<2x1x64xf32, #tpu.memory_space<vmem>>, %arg5: memref<2x64x192xbf16, #tpu.memory_space<vmem>>, %arg6: memref<2x1x192xf32, #tpu.memory_space<vmem>>, %arg7: memref<2x64x64xbf16, #tpu.memory_space<vmem>>, %arg8: memref<2x1x64xf32, #tpu.memory_space<vmem>>, %arg9: memref<2x1x64xf32, #tpu.memory_space<vmem>>, %arg10: memref<2x1x64xf32, #tpu.memory_space<vmem>>, %arg11: memref<2x64x256xbf16, #tpu.memory_space<vmem>>, %arg12: memref<2x1x256xf32, #tpu.memory_space<vmem>>, %arg13: memref<2x256x64xbf16, #tpu.memory_space<vmem>>, %arg14: memref<2x1x64xf32, #tpu.memory_space<vmem>>, %arg15: memref<2x16x64xf32, #tpu.memory_space<vmem>>) attributes {dimension_semantics = [#tpu.dimension_semantics<parallel>, #tpu.dimension_semantics<arbitrary>], iteration_bounds = array<i64: 1, 2>, scalar_prefetch = 0 : i64, scratch_operands = 0 : i64, tpu.core_type = #tpu.core_type<tc>, window_params = [{transform_indices = @transform_0, window_bounds = array<i64: 2, 16, 64>}, {pipeline_mode = #tpu.pipeline_mode<synchronous>, transform_indices = @transform_1, window_bounds = array<i64: 2, 1, 64>}, {pipeline_mode = #tpu.pipeline_mode<synchronous>, transform_indices = @transform_2, window_bounds = array<i64: 2, 1, 64>}, {pipeline_mode = #tpu.pipeline_mode<synchronous>, transform_indices = @transform_3, window_bounds = array<i64: 2, 64, 192>}, {pipeline_mode = #tpu.pipeline_mode<synchronous>, transform_indices = @transform_4, window_bounds = array<i64: 2, 1, 192>}, {pipeline_mode = #tpu.pipeline_mode<synchronous>, transform_indices = @transform_5, window_bounds = array<i64: 2, 64, 64>}, {pipeline_mode = #tpu.pipeline_mode<synchronous>, transform_indices = @transform_6, window_bounds = array<i64: 2, 1, 64>}, {pipeline_mode = #tpu.pipeline_mode<synchronous>, transform_indices = @transform_7, window_bounds = array<i64: 2, 1, 64>}, {pipeline_mode = #tpu.pipeline_mode<synchronous>, transform_indices = @transform_8, window_bounds = array<i64: 2, 1, 64>}, {pipeline_mode = #tpu.pipeline_mode<synchronous>, transform_indices = @transform_9, window_bounds = array<i64: 2, 64, 256>}, {pipeline_mode = #tpu.pipeline_mode<synchronous>, transform_indices = @transform_10, window_bounds = array<i64: 2, 1, 256>}, {pipeline_mode = #tpu.pipeline_mode<synchronous>, transform_indices = @transform_11, window_bounds = array<i64: 2, 256, 64>}, {pipeline_mode = #tpu.pipeline_mode<synchronous>, transform_indices = @transform_12, window_bounds = array<i64: 2, 1, 64>}, {transform_indices = @transform_13, window_bounds = array<i64: 2, 16, 64>}]} {
    %c0_i32 = arith.constant 0 : i32
    %0 = arith.cmpi eq, %arg1, %c0_i32 : i32
    %1 = arith.extui %0 : i1 to i32
    %c0_i32_0 = arith.constant 0 : i32
    %2 = arith.cmpi ne, %1, %c0_i32_0 : i32
    scf.if %2 {
      %c0_52 = arith.constant 0 : index
      %c0_53 = arith.constant 0 : index
      %c0_54 = arith.constant 0 : index
      %156 = vector.load %arg2[%c0_52, %c0_53, %c0_54] : memref<2x16x64xf32, #tpu.memory_space<vmem>>, vector<2x16x64xf32>
      %c0_55 = arith.constant 0 : index
      %c0_56 = arith.constant 0 : index
      %c0_57 = arith.constant 0 : index
      %157 = vector.load %arg15[%c0_55, %c0_56, %c0_57] : memref<2x16x64xf32, #tpu.memory_space<vmem>>, vector<2x16x64xf32>
      tpu.vector_store %arg15[%c0_55, %c0_56, %c0_57], %156 {strides = array<i32>} : memref<2x16x64xf32, #tpu.memory_space<vmem>>, vector<2x16x64xf32>,
    } else {
    }
    %c0 = arith.constant 0 : index
    %c0_1 = arith.constant 0 : index
    %c0_2 = arith.constant 0 : index
    %3 = vector.load %arg15[%c0, %c0_1, %c0_2] : memref<2x16x64xf32, #tpu.memory_space<vmem>>, vector<2x16x64xf32>
    %4 = arith.index_cast %arg1 : i32 to index
    %c0_3 = arith.constant 0 : index
    %c0_4 = arith.constant 0 : index
    %5 = vector.load %arg3[%4, %c0_3, %c0_4] : memref<2x1x64xf32, #tpu.memory_space<vmem>>, vector<1x1x64xf32>
    %6 = vector.shape_cast %5 : vector<1x1x64xf32> to vector<1x64xf32>
    %7 = arith.index_cast %arg1 : i32 to index
    %c0_5 = arith.constant 0 : index
    %c0_6 = arith.constant 0 : index
    %8 = vector.load %arg4[%7, %c0_5, %c0_6] : memref<2x1x64xf32, #tpu.memory_space<vmem>>, vector<1x1x64xf32>
    %9 = vector.shape_cast %8 : vector<1x1x64xf32> to vector<1x64xf32>
    %cst = arith.constant dense<0.000000e+00> : vector<2x16xf32>
    %10 = vector.multi_reduction <add>, %3, %cst [2] : vector<2x16x64xf32> to vector<2x16xf32>
    %11 = vector.shape_cast %10 : vector<2x16xf32> to vector<2x16x1xf32>
    %cst_7 = arith.constant 6.400000e+01 : f32
    %12 = vector.broadcast %cst_7 : f32 to vector<2x16x1xf32>
    %13 = arith.divf %11, %12 : vector<2x16x1xf32>
    %14 = vector.broadcast %13 : vector<2x16x1xf32> to vector<2x16x64xf32>
    %15 = arith.subf %3, %14 : vector<2x16x64xf32>
    %16 = arith.mulf %15, %15 : vector<2x16x64xf32>
    %cst_8 = arith.constant dense<0.000000e+00> : vector<2x16xf32>
    %17 = vector.multi_reduction <add>, %16, %cst_8 [2] : vector<2x16x64xf32> to vector<2x16xf32>
    %18 = vector.shape_cast %17 : vector<2x16xf32> to vector<2x16x1xf32>
    %cst_9 = arith.constant 6.400000e+01 : f32
    %19 = vector.broadcast %cst_9 : f32 to vector<2x16x1xf32>
    %20 = arith.divf %18, %19 : vector<2x16x1xf32>
    %21 = vector.broadcast %13 : vector<2x16x1xf32> to vector<2x16x64xf32>
    %22 = arith.subf %3, %21 : vector<2x16x64xf32>
    %cst_10 = arith.constant 9.99999997E-7 : f32
    %23 = vector.broadcast %cst_10 : f32 to vector<2x16x1xf32>
    %24 = arith.addf %20, %23 : vector<2x16x1xf32>
    %25 = math.rsqrt %24 : vector<2x16x1xf32>
    %26 = vector.broadcast %25 : vector<2x16x1xf32> to vector<2x16x64xf32>
    %27 = arith.mulf %22, %26 : vector<2x16x64xf32>
    %28 = vector.shape_cast %6 : vector<1x64xf32> to vector<1x1x64xf32>
    %29 = vector.broadcast %28 : vector<1x1x64xf32> to vector<2x16x64xf32>
    %30 = arith.mulf %27, %29 : vector<2x16x64xf32>
    %31 = vector.shape_cast %9 : vector<1x64xf32> to vector<1x1x64xf32>
    %32 = vector.broadcast %31 : vector<1x1x64xf32> to vector<2x16x64xf32>
    %33 = arith.addf %30, %32 : vector<2x16x64xf32>
    %34 = vector.shape_cast %33 : vector<2x16x64xf32> to vector<32x64xf32>
    %35 = arith.truncf %34 : vector<32x64xf32> to vector<32x64xbf16>
    %36 = arith.index_cast %arg1 : i32 to index
    %c0_11 = arith.constant 0 : index
    %c0_12 = arith.constant 0 : index
    %37 = vector.load %arg5[%36, %c0_11, %c0_12] : memref<2x64x192xbf16, #tpu.memory_space<vmem>>, vector<1x64x192xbf16>
    %38 = vector.shape_cast %37 : vector<1x64x192xbf16> to vector<64x192xbf16>
    %cst_13 = arith.constant dense<0.000000e+00> : vector<32x192xf32>
    %39 = tpu.matmul %35, %38, %cst_13 {dimension_numbers = #tpu.dot_dimension_numbers<[1], [0], [0], [1], [0, 0, 1, 1], [], []>} : vector<32x64xbf16>, vector<64x192xbf16>, vector<32x192xf32> -> vector<32x192xf32>
    %40 = arith.index_cast %arg1 : i32 to index
    %c0_14 = arith.constant 0 : index
    %c0_15 = arith.constant 0 : index
    %41 = vector.load %arg6[%40, %c0_14, %c0_15] : memref<2x1x192xf32, #tpu.memory_space<vmem>>, vector<1x1x192xf32>
    %42 = vector.shape_cast %41 : vector<1x1x192xf32> to vector<1x192xf32>
    %43 = vector.broadcast %42 : vector<1x192xf32> to vector<32x192xf32>
    %44 = arith.addf %39, %43 : vector<32x192xf32>
    %45 = vector.shape_cast %44 : vector<32x192xf32> to vector<2x16x192xf32>
    %46 = vector.extract_strided_slice %45 {offsets = [0, 0, 0], sizes = [2, 16, 32], strides = [1, 1, 1]} : vector<2x16x192xf32> to vector<2x16x32xf32>
    %47 = vector.extract_strided_slice %45 {offsets = [0, 0, 32], sizes = [2, 16, 32], strides = [1, 1, 1]} : vector<2x16x192xf32> to vector<2x16x32xf32>
    %48 = tpu.concatenate %46, %47 in 0 : vector<2x16x32xf32>, vector<2x16x32xf32> -> vector<4x16x32xf32>
    %49 = vector.extract_strided_slice %45 {offsets = [0, 0, 64], sizes = [2, 16, 32], strides = [1, 1, 1]} : vector<2x16x192xf32> to vector<2x16x32xf32>
    %50 = vector.extract_strided_slice %45 {offsets = [0, 0, 96], sizes = [2, 16, 32], strides = [1, 1, 1]} : vector<2x16x192xf32> to vector<2x16x32xf32>
    %51 = tpu.concatenate %49, %50 in 0 : vector<2x16x32xf32>, vector<2x16x32xf32> -> vector<4x16x32xf32>
    %52 = vector.extract_strided_slice %45 {offsets = [0, 0, 128], sizes = [2, 16, 32], strides = [1, 1, 1]} : vector<2x16x192xf32> to vector<2x16x32xf32>
    %53 = vector.extract_strided_slice %45 {offsets = [0, 0, 160], sizes = [2, 16, 32], strides = [1, 1, 1]} : vector<2x16x192xf32> to vector<2x16x32xf32>
    %54 = tpu.concatenate %52, %53 in 0 : vector<2x16x32xf32>, vector<2x16x32xf32> -> vector<4x16x32xf32>
    %55 = arith.truncf %48 : vector<4x16x32xf32> to vector<4x16x32xbf16>
    %56 = arith.truncf %51 : vector<4x16x32xf32> to vector<4x16x32xbf16>
    "tpu.trace_start"() <{level = 10 : i32, message = "bqd,bkd->bqk"}> : () -> ()
    %cst_16 = arith.constant dense<0.000000e+00> : vector<4x16x16xf32>
    %57 = tpu.matmul %55, %56, %cst_16 {dimension_numbers = #tpu.dot_dimension_numbers<[2], [2], [1], [1], [0, 0, 0, 1, 1, 1], [0], [0]>} : vector<4x16x32xbf16>, vector<4x16x32xbf16>, vector<4x16x16xf32> -> vector<4x16x16xf32>
    "tpu.trace_stop"() : () -> ()
    %cst_17 = arith.constant 0.176776692 : f32
    %58 = vector.broadcast %cst_17 : f32 to vector<4x16x16xf32>
    %59 = arith.mulf %57, %58 : vector<4x16x16xf32>
    %cst_18 = arith.constant dense<0xFF800000> : vector<4x16xf32>
    %60 = vector.multi_reduction <maximumf>, %59, %cst_18 [2] : vector<4x16x16xf32> to vector<4x16xf32>
    %61 = vector.shape_cast %60 : vector<4x16xf32> to vector<4x16x1xf32>
    %62 = vector.broadcast %61 : vector<4x16x1xf32> to vector<4x16x16xf32>
    %63 = arith.subf %59, %62 : vector<4x16x16xf32>
    %64 = math.exp %63 : vector<4x16x16xf32>
    %cst_19 = arith.constant dense<0.000000e+00> : vector<4x16xf32>
    %65 = vector.multi_reduction <add>, %64, %cst_19 [2] : vector<4x16x16xf32> to vector<4x16xf32>
    %66 = vector.shape_cast %65 : vector<4x16xf32> to vector<4x16x1xf32>
    %67 = arith.truncf %64 : vector<4x16x16xf32> to vector<4x16x16xbf16>
    %68 = arith.truncf %54 : vector<4x16x32xf32> to vector<4x16x32xbf16>
    "tpu.trace_start"() <{level = 10 : i32, message = "bqk,bkd->bqd"}> : () -> ()
    %cst_20 = arith.constant dense<0.000000e+00> : vector<4x16x32xf32>
    %69 = tpu.matmul %67, %68, %cst_20 {dimension_numbers = #tpu.dot_dimension_numbers<[2], [1], [1], [2], [0, 0, 0, 1, 1, 2], [0], [0]>} : vector<4x16x16xbf16>, vector<4x16x32xbf16>, vector<4x16x32xf32> -> vector<4x16x32xf32>
    "tpu.trace_stop"() : () -> ()
    %70 = tpu.reciprocal %66 : vector<4x16x1xf32> -> vector<4x16x1xf32>
    %71 = vector.broadcast %70 : vector<4x16x1xf32> to vector<4x16x32xf32>
    %72 = arith.mulf %69, %71 : vector<4x16x32xf32>
    %73 = vector.extract_strided_slice %72 {offsets = [0, 0, 0], sizes = [2, 16, 32], strides = [1, 1, 1]} : vector<4x16x32xf32> to vector<2x16x32xf32>
    %74 = vector.extract_strided_slice %72 {offsets = [2, 0, 0], sizes = [2, 16, 32], strides = [1, 1, 1]} : vector<4x16x32xf32> to vector<2x16x32xf32>
    %75 = tpu.concatenate %73, %74 in 2 : vector<2x16x32xf32>, vector<2x16x32xf32> -> vector<2x16x64xf32>
    %76 = vector.shape_cast %75 : vector<2x16x64xf32> to vector<32x64xf32>
    %77 = arith.truncf %76 : vector<32x64xf32> to vector<32x64xbf16>
    %78 = arith.index_cast %arg1 : i32 to index
    %c0_21 = arith.constant 0 : index
    %c0_22 = arith.constant 0 : index
    %79 = vector.load %arg7[%78, %c0_21, %c0_22] : memref<2x64x64xbf16, #tpu.memory_space<vmem>>, vector<1x64x64xbf16>
    %80 = vector.shape_cast %79 : vector<1x64x64xbf16> to vector<64x64xbf16>
    %cst_23 = arith.constant dense<0.000000e+00> : vector<32x64xf32>
    %81 = tpu.matmul %77, %80, %cst_23 {dimension_numbers = #tpu.dot_dimension_numbers<[1], [0], [0], [1], [0, 0, 1, 1], [], []>} : vector<32x64xbf16>, vector<64x64xbf16>, vector<32x64xf32> -> vector<32x64xf32>
    %82 = arith.index_cast %arg1 : i32 to index
    %c0_24 = arith.constant 0 : index
    %c0_25 = arith.constant 0 : index
    %83 = vector.load %arg8[%82, %c0_24, %c0_25] : memref<2x1x64xf32, #tpu.memory_space<vmem>>, vector<1x1x64xf32>
    %84 = vector.shape_cast %83 : vector<1x1x64xf32> to vector<1x64xf32>
    %85 = vector.broadcast %84 : vector<1x64xf32> to vector<32x64xf32>
    %86 = arith.addf %81, %85 : vector<32x64xf32>
    %87 = vector.shape_cast %86 : vector<32x64xf32> to vector<2x16x64xf32>
    %88 = arith.addf %3, %87 : vector<2x16x64xf32>
    %89 = arith.index_cast %arg1 : i32 to index
    %c0_26 = arith.constant 0 : index
    %c0_27 = arith.constant 0 : index
    %90 = vector.load %arg9[%89, %c0_26, %c0_27] : memref<2x1x64xf32, #tpu.memory_space<vmem>>, vector<1x1x64xf32>
    %91 = vector.shape_cast %90 : vector<1x1x64xf32> to vector<1x64xf32>
    %92 = arith.index_cast %arg1 : i32 to index
    %c0_28 = arith.constant 0 : index
    %c0_29 = arith.constant 0 : index
    %93 = vector.load %arg10[%92, %c0_28, %c0_29] : memref<2x1x64xf32, #tpu.memory_space<vmem>>, vector<1x1x64xf32>
    %94 = vector.shape_cast %93 : vector<1x1x64xf32> to vector<1x64xf32>
    %cst_30 = arith.constant dense<0.000000e+00> : vector<2x16xf32>
    %95 = vector.multi_reduction <add>, %88, %cst_30 [2] : vector<2x16x64xf32> to vector<2x16xf32>
    %96 = vector.shape_cast %95 : vector<2x16xf32> to vector<2x16x1xf32>
    %cst_31 = arith.constant 6.400000e+01 : f32
    %97 = vector.broadcast %cst_31 : f32 to vector<2x16x1xf32>
    %98 = arith.divf %96, %97 : vector<2x16x1xf32>
    %99 = vector.broadcast %98 : vector<2x16x1xf32> to vector<2x16x64xf32>
    %100 = arith.subf %88, %99 : vector<2x16x64xf32>
    %101 = arith.mulf %100, %100 : vector<2x16x64xf32>
    %cst_32 = arith.constant dense<0.000000e+00> : vector<2x16xf32>
    %102 = vector.multi_reduction <add>, %101, %cst_32 [2] : vector<2x16x64xf32> to vector<2x16xf32>
    %103 = vector.shape_cast %102 : vector<2x16xf32> to vector<2x16x1xf32>
    %cst_33 = arith.constant 6.400000e+01 : f32
    %104 = vector.broadcast %cst_33 : f32 to vector<2x16x1xf32>
    %105 = arith.divf %103, %104 : vector<2x16x1xf32>
    %106 = vector.broadcast %98 : vector<2x16x1xf32> to vector<2x16x64xf32>
    %107 = arith.subf %88, %106 : vector<2x16x64xf32>
    %cst_34 = arith.constant 9.99999997E-7 : f32
    %108 = vector.broadcast %cst_34 : f32 to vector<2x16x1xf32>
    %109 = arith.addf %105, %108 : vector<2x16x1xf32>
    %110 = math.rsqrt %109 : vector<2x16x1xf32>
    %111 = vector.broadcast %110 : vector<2x16x1xf32> to vector<2x16x64xf32>
    %112 = arith.mulf %107, %111 : vector<2x16x64xf32>
    %113 = vector.shape_cast %91 : vector<1x64xf32> to vector<1x1x64xf32>
    %114 = vector.broadcast %113 : vector<1x1x64xf32> to vector<2x16x64xf32>
    %115 = arith.mulf %112, %114 : vector<2x16x64xf32>
    %116 = vector.shape_cast %94 : vector<1x64xf32> to vector<1x1x64xf32>
    %117 = vector.broadcast %116 : vector<1x1x64xf32> to vector<2x16x64xf32>
    %118 = arith.addf %115, %117 : vector<2x16x64xf32>
    %119 = vector.shape_cast %118 : vector<2x16x64xf32> to vector<32x64xf32>
    %120 = arith.truncf %119 : vector<32x64xf32> to vector<32x64xbf16>
    %121 = arith.index_cast %arg1 : i32 to index
    %c0_35 = arith.constant 0 : index
    %c0_36 = arith.constant 0 : index
    %122 = vector.load %arg11[%121, %c0_35, %c0_36] : memref<2x64x256xbf16, #tpu.memory_space<vmem>>, vector<1x64x256xbf16>
    %123 = vector.shape_cast %122 : vector<1x64x256xbf16> to vector<64x256xbf16>
    %cst_37 = arith.constant dense<0.000000e+00> : vector<32x256xf32>
    %124 = tpu.matmul %120, %123, %cst_37 {dimension_numbers = #tpu.dot_dimension_numbers<[1], [0], [0], [1], [0, 0, 1, 1], [], []>} : vector<32x64xbf16>, vector<64x256xbf16>, vector<32x256xf32> -> vector<32x256xf32>
    %125 = arith.index_cast %arg1 : i32 to index
    %c0_38 = arith.constant 0 : index
    %c0_39 = arith.constant 0 : index
    %126 = vector.load %arg12[%125, %c0_38, %c0_39] : memref<2x1x256xf32, #tpu.memory_space<vmem>>, vector<1x1x256xf32>
    %127 = vector.shape_cast %126 : vector<1x1x256xf32> to vector<1x256xf32>
    %128 = vector.broadcast %127 : vector<1x256xf32> to vector<32x256xf32>
    %129 = arith.addf %124, %128 : vector<32x256xf32>
    %130 = arith.mulf %129, %129 : vector<32x256xf32>
    %131 = arith.mulf %129, %130 : vector<32x256xf32>
    %cst_40 = arith.constant 4.471500e-02 : f32
    %132 = vector.broadcast %cst_40 : f32 to vector<32x256xf32>
    %133 = arith.mulf %132, %131 : vector<32x256xf32>
    %134 = arith.addf %129, %133 : vector<32x256xf32>
    %cst_41 = arith.constant 0.797884583 : f32
    %135 = vector.broadcast %cst_41 : f32 to vector<32x256xf32>
    %136 = arith.mulf %135, %134 : vector<32x256xf32>
    %137 = math.tanh %136 : vector<32x256xf32>
    %cst_42 = arith.constant 1.000000e+00 : f32
    %138 = vector.broadcast %cst_42 : f32 to vector<32x256xf32>
    %139 = arith.addf %138, %137 : vector<32x256xf32>
    %cst_43 = arith.constant 5.000000e-01 : f32
    %140 = vector.broadcast %cst_43 : f32 to vector<32x256xf32>
    %141 = arith.mulf %140, %139 : vector<32x256xf32>
    %142 = arith.mulf %129, %141 : vector<32x256xf32>
    %143 = arith.truncf %142 : vector<32x256xf32> to vector<32x256xbf16>
    %144 = arith.index_cast %arg1 : i32 to index
    %c0_44 = arith.constant 0 : index
    %c0_45 = arith.constant 0 : index
    %145 = vector.load %arg13[%144, %c0_44, %c0_45] : memref<2x256x64xbf16, #tpu.memory_space<vmem>>, vector<1x256x64xbf16>
    %146 = vector.shape_cast %145 : vector<1x256x64xbf16> to vector<256x64xbf16>
    %cst_46 = arith.constant dense<0.000000e+00> : vector<32x64xf32>
    %147 = tpu.matmul %143, %146, %cst_46 {dimension_numbers = #tpu.dot_dimension_numbers<[1], [0], [0], [1], [0, 0, 1, 1], [], []>} : vector<32x256xbf16>, vector<256x64xbf16>, vector<32x64xf32> -> vector<32x64xf32>
    %148 = arith.index_cast %arg1 : i32 to index
    %c0_47 = arith.constant 0 : index
    %c0_48 = arith.constant 0 : index
    %149 = vector.load %arg14[%148, %c0_47, %c0_48] : memref<2x1x64xf32, #tpu.memory_space<vmem>>, vector<1x1x64xf32>
    %150 = vector.shape_cast %149 : vector<1x1x64xf32> to vector<1x64xf32>
    %151 = vector.broadcast %150 : vector<1x64xf32> to vector<32x64xf32>
    %152 = arith.addf %147, %151 : vector<32x64xf32>
    %153 = vector.shape_cast %152 : vector<32x64xf32> to vector<2x16x64xf32>
    %154 = arith.addf %88, %153 : vector<2x16x64xf32>
    %c0_49 = arith.constant 0 : index
    %c0_50 = arith.constant 0 : index
    %c0_51 = arith.constant 0 : index
    %155 = vector.load %arg15[%c0_49, %c0_50, %c0_51] : memref<2x16x64xf32, #tpu.memory_space<vmem>>, vector<2x16x64xf32>
    tpu.vector_store %arg15[%c0_49, %c0_50, %c0_51], %154 {strides = array<i32>} : memref<2x16x64xf32, #tpu.memory_space<vmem>>, vector<2x16x64xf32>,
    return
  }
  func.func @transform_0(%arg0: i32, %arg1: i32) -> (i32, i32, i32) {
    %c0_i32 = arith.constant 0 : i32
    %c0_i32_0 = arith.constant 0 : i32
    %c0_i32_1 = arith.constant 0 : i32
    return %arg0, %c0_i32, %c0_i32_0 : i32, i32, i32
  }
  func.func @transform_1(%arg0: i32, %arg1: i32) -> (i32, i32, i32) {
    %c0_i32 = arith.constant 0 : i32
    %c0_i32_0 = arith.constant 0 : i32
    %c0_i32_1 = arith.constant 0 : i32
    %c0_i32_2 = arith.constant 0 : i32
    return %c0_i32, %c0_i32_0, %c0_i32_1 : i32, i32, i32
  }
  func.func @transform_2(%arg0: i32, %arg1: i32) -> (i32, i32, i32) {
    %c0_i32 = arith.constant 0 : i32
    %c0_i32_0 = arith.constant 0 : i32
    %c0_i32_1 = arith.constant 0 : i32
    %c0_i32_2 = arith.constant 0 : i32
    return %c0_i32, %c0_i32_0, %c0_i32_1 : i32, i32, i32
  }
  func.func @transform_3(%arg0: i32, %arg1: i32) -> (i32, i32, i32) {
    %c0_i32 = arith.constant 0 : i32
    %c0_i32_0 = arith.constant 0 : i32
    %c0_i32_1 = arith.constant 0 : i32
    %c0_i32_2 = arith.constant 0 : i32
    return %c0_i32, %c0_i32_0, %c0_i32_1 : i32, i32, i32
  }
  func.func @transform_4(%arg0: i32, %arg1: i32) -> (i32, i32, i32) {
    %c0_i32 = arith.constant 0 : i32
    %c0_i32_0 = arith.constant 0 : i32
    %c0_i32_1 = arith.constant 0 : i32
    %c0_i32_2 = arith.constant 0 : i32
    return %c0_i32, %c0_i32_0, %c0_i32_1 : i32, i32, i32
  }
  func.func @transform_5(%arg0: i32, %arg1: i32) -> (i32, i32, i32) {
    %c0_i32 = arith.constant 0 : i32
    %c0_i32_0 = arith.constant 0 : i32
    %c0_i32_1 = arith.constant 0 : i32
    %c0_i32_2 = arith.constant 0 : i32
    return %c0_i32, %c0_i32_0, %c0_i32_1 : i32, i32, i32
  }
  func.func @transform_6(%arg0: i32, %arg1: i32) -> (i32, i32, i32) {
    %c0_i32 = arith.constant 0 : i32
    %c0_i32_0 = arith.constant 0 : i32
    %c0_i32_1 = arith.constant 0 : i32
    %c0_i32_2 = arith.constant 0 : i32
    return %c0_i32, %c0_i32_0, %c0_i32_1 : i32, i32, i32
  }
  func.func @transform_7(%arg0: i32, %arg1: i32) -> (i32, i32, i32) {
    %c0_i32 = arith.constant 0 : i32
    %c0_i32_0 = arith.constant 0 : i32
    %c0_i32_1 = arith.constant 0 : i32
    %c0_i32_2 = arith.constant 0 : i32
    return %c0_i32, %c0_i32_0, %c0_i32_1 : i32, i32, i32
  }
  func.func @transform_8(%arg0: i32, %arg1: i32) -> (i32, i32, i32) {
    %c0_i32 = arith.constant 0 : i32
    %c0_i32_0 = arith.constant 0 : i32
    %c0_i32_1 = arith.constant 0 : i32
    %c0_i32_2 = arith.constant 0 : i32
    return %c0_i32, %c0_i32_0, %c0_i32_1 : i32, i32, i32
  }
  func.func @transform_9(%arg0: i32, %arg1: i32) -> (i32, i32, i32) {
    %c0_i32 = arith.constant 0 : i32
    %c0_i32_0 = arith.constant 0 : i32
    %c0_i32_1 = arith.constant 0 : i32
    %c0_i32_2 = arith.constant 0 : i32
    return %c0_i32, %c0_i32_0, %c0_i32_1 : i32, i32, i32
  }
  func.func @transform_10(%arg0: i32, %arg1: i32) -> (i32, i32, i32) {
    %c0_i32 = arith.constant 0 : i32
    %c0_i32_0 = arith.constant 0 : i32
    %c0_i32_1 = arith.constant 0 : i32
    %c0_i32_2 = arith.constant 0 : i32
    return %c0_i32, %c0_i32_0, %c0_i32_1 : i32, i32, i32
  }
  func.func @transform_11(%arg0: i32, %arg1: i32) -> (i32, i32, i32) {
    %c0_i32 = arith.constant 0 : i32
    %c0_i32_0 = arith.constant 0 : i32
    %c0_i32_1 = arith.constant 0 : i32
    %c0_i32_2 = arith.constant 0 : i32
    return %c0_i32, %c0_i32_0, %c0_i32_1 : i32, i32, i32
  }
  func.func @transform_12(%arg0: i32, %arg1: i32) -> (i32, i32, i32) {
    %c0_i32 = arith.constant 0 : i32
    %c0_i32_0 = arith.constant 0 : i32
    %c0_i32_1 = arith.constant 0 : i32
    %c0_i32_2 = arith.constant 0 : i32
    return %c0_i32, %c0_i32_0, %c0_i32_1 : i32, i32, i32
  }
  func.func @transform_13(%arg0: i32, %arg1: i32) -> (i32, i32, i32) {
    %c0_i32 = arith.constant 0 : i32
    %c0_i32_0 = arith.constant 0 : i32
    %c0_i32_1 = arith.constant 0 : i32
    return %arg0, %c0_i32, %c0_i32_0 : i32, i32, i32
  }
}

module attributes {stable_mosaic.version = 11 : i64} {
  func.func @_segment_assemble_kernel(%arg0: i32, %arg1: i32, %arg2: memref<2xi32, #tpu.memory_space<smem>>, %arg3: memref<2xi32, #tpu.memory_space<smem>>, %arg4: memref<1x512xi32, #tpu.memory_space<vmem>>, %arg5: memref<512x64xf32, #tpu.memory_space<vmem>>, %arg6: memref<1x16x1xf32, #tpu.memory_space<vmem>>, %arg7: memref<1x16x1xf32, #tpu.memory_space<vmem>>, %arg8: memref<1x64xf32, #tpu.memory_space<vmem>>, %arg9: memref<1x64xf32, #tpu.memory_space<vmem>>, %arg10: memref<1x16x64xf32, #tpu.memory_space<vmem>>, %arg11: memref<16x64xf32, #tpu.memory_space<vmem>>) attributes {dimension_semantics = [#tpu.dimension_semantics<parallel>, #tpu.dimension_semantics<arbitrary>], iteration_bounds = array<i64: 2, 1>, scalar_prefetch = 2 : i64, scratch_operands = 1 : i64, tpu.core_type = #tpu.core_type<tc>, window_params = [{transform_indices = @transform_0, window_bounds = array<i64: 1, 512>}, {transform_indices = @transform_1, window_bounds = array<i64: 512, 64>}, {transform_indices = @transform_2, window_bounds = array<i64: 1, 16, 1>}, {transform_indices = @transform_3, window_bounds = array<i64: 1, 16, 1>}, {pipeline_mode = #tpu.pipeline_mode<synchronous>, transform_indices = @transform_4, window_bounds = array<i64: 1, 64>}, {pipeline_mode = #tpu.pipeline_mode<synchronous>, transform_indices = @transform_5, window_bounds = array<i64: 1, 64>}, {transform_indices = @transform_6, window_bounds = array<i64: 1, 16, 64>}]} {
    %c0_i32 = arith.constant 0 : i32
    %0 = arith.cmpi eq, %arg1, %c0_i32 : i32
    %1 = arith.extui %0 : i1 to i32
    %c0_i32_0 = arith.constant 0 : i32
    %2 = arith.cmpi ne, %1, %c0_i32_0 : i32
    scf.if %2 {
      %cst = arith.constant 0.000000e+00 : f32
      %11 = vector.broadcast %cst : f32 to vector<16x64xf32>
      %c0 = arith.constant 0 : index
      %c0_4 = arith.constant 0 : index
      %12 = vector.load %arg11[%c0, %c0_4] : memref<16x64xf32, #tpu.memory_space<vmem>>, vector<16x64xf32>
      tpu.vector_store %arg11[%c0, %c0_4], %11 {strides = array<i32>} : memref<16x64xf32, #tpu.memory_space<vmem>>, vector<16x64xf32>,
    } else {
    }
    %3 = arith.index_cast %arg0 : i32 to index
    %4 = memref.load %arg3[%3] : memref<2xi32, #tpu.memory_space<smem>>
    %5 = arith.cmpi slt, %arg1, %4 : i32
    %6 = arith.extui %5 : i1 to i32
    %c0_i32_1 = arith.constant 0 : i32
    %7 = arith.cmpi ne, %6, %c0_i32_1 : i32
    scf.if %7 {
      %11 = tpu.iota {dimensions = array<i32: 0>} : vector<16x512xi32>
      %c16_i32 = arith.constant 16 : i32
      %12 = arith.muli %arg0, %c16_i32 : i32
      %13 = vector.broadcast %12 : i32 to vector<16x512xi32>
      %14 = arith.addi %11, %13 : vector<16x512xi32>
      %c0 = arith.constant 0 : index
      %c0_4 = arith.constant 0 : index
      %15 = vector.load %arg4[%c0, %c0_4] : memref<1x512xi32, #tpu.memory_space<vmem>>, vector<1x512xi32>
      %16 = vector.broadcast %15 : vector<1x512xi32> to vector<16x512xi32>
      %17 = arith.cmpi eq, %16, %14 : vector<16x512xi32>
      %18 = arith.extui %17 : vector<16x512xi1> to vector<16x512xi32>
      %19 = arith.sitofp %18 : vector<16x512xi32> to vector<16x512xf32>
      %20 = arith.truncf %19 : vector<16x512xf32> to vector<16x512xbf16>
      %c0_5 = arith.constant 0 : index
      %c0_6 = arith.constant 0 : index
      %21 = vector.load %arg5[%c0_5, %c0_6] : memref<512x64xf32, #tpu.memory_space<vmem>>, vector<512x64xf32>
      %22 = arith.truncf %21 : vector<512x64xf32> to vector<512x64xbf16>
      %23 = arith.extf %22 : vector<512x64xbf16> to vector<512x64xf32>
      %24 = arith.subf %21, %23 : vector<512x64xf32>
      %25 = arith.truncf %24 : vector<512x64xf32> to vector<512x64xbf16>
      %c0_7 = arith.constant 0 : index
      %c0_8 = arith.constant 0 : index
      %26 = vector.load %arg11[%c0_7, %c0_8] : memref<16x64xf32, #tpu.memory_space<vmem>>, vector<16x64xf32>
      %cst = arith.constant dense<0.000000e+00> : vector<16x64xf32>
      %27 = tpu.matmul %20, %22, %cst {dimension_numbers = #tpu.dot_dimension_numbers<[1], [0], [0], [1], [0, 0, 1, 1], [], []>} : vector<16x512xbf16>, vector<512x64xbf16>, vector<16x64xf32> -> vector<16x64xf32>
      %cst_9 = arith.constant dense<0.000000e+00> : vector<16x64xf32>
      %28 = tpu.matmul %20, %25, %cst_9 {dimension_numbers = #tpu.dot_dimension_numbers<[1], [0], [0], [1], [0, 0, 1, 1], [], []>} : vector<16x512xbf16>, vector<512x64xbf16>, vector<16x64xf32> -> vector<16x64xf32>
      %29 = arith.addf %27, %28 : vector<16x64xf32>
      %30 = arith.addf %26, %29 : vector<16x64xf32>
      %c0_10 = arith.constant 0 : index
      %c0_11 = arith.constant 0 : index
      %31 = vector.load %arg11[%c0_10, %c0_11] : memref<16x64xf32, #tpu.memory_space<vmem>>, vector<16x64xf32>
      tpu.vector_store %arg11[%c0_10, %c0_11], %30 {strides = array<i32>} : memref<16x64xf32, #tpu.memory_space<vmem>>, vector<16x64xf32>,
    } else {
    }
    %c0_i32_2 = arith.constant 0 : i32
    %8 = arith.cmpi eq, %arg1, %c0_i32_2 : i32
    %9 = arith.extui %8 : i1 to i32
    %c0_i32_3 = arith.constant 0 : i32
    %10 = arith.cmpi ne, %9, %c0_i32_3 : i32
    scf.if %10 {
      %c0 = arith.constant 0 : index
      %c0_4 = arith.constant 0 : index
      %c0_5 = arith.constant 0 : index
      %11 = vector.load %arg6[%c0, %c0_4, %c0_5] : memref<1x16x1xf32, #tpu.memory_space<vmem>>, vector<1x16x1xf32>
      %12 = vector.shape_cast %11 : vector<1x16x1xf32> to vector<16x1xf32>
      %c0_6 = arith.constant 0 : index
      %c0_7 = arith.constant 0 : index
      %13 = vector.load %arg9[%c0_6, %c0_7] : memref<1x64xf32, #tpu.memory_space<vmem>>, vector<1x64xf32>
      %14 = vector.broadcast %12 : vector<16x1xf32> to vector<16x64xf32>
      %15 = vector.broadcast %13 : vector<1x64xf32> to vector<16x64xf32>
      %16 = arith.mulf %14, %15 : vector<16x64xf32>
      %17 = tpu.iota {dimensions = array<i32: 1>} : vector<16x64xi32>
      %c32_i32 = arith.constant 32 : i32
      %18 = vector.broadcast %c32_i32 : i32 to vector<16x64xi32>
      %19 = arith.cmpi slt, %17, %18 : vector<16x64xi32>
      %20 = math.sin %16 : vector<16x64xf32>
      %21 = math.cos %16 : vector<16x64xf32>
      %22 = arith.select %19, %20, %21 : vector<16x64xi1>, vector<16x64xf32>
      %c0_8 = arith.constant 0 : index
      %c0_9 = arith.constant 0 : index
      %c0_10 = arith.constant 0 : index
      %23 = vector.load %arg7[%c0_8, %c0_9, %c0_10] : memref<1x16x1xf32, #tpu.memory_space<vmem>>, vector<1x16x1xf32>
      %24 = vector.shape_cast %23 : vector<1x16x1xf32> to vector<16x1xf32>
      %c0_11 = arith.constant 0 : index
      %c0_12 = arith.constant 0 : index
      %25 = vector.load %arg11[%c0_11, %c0_12] : memref<16x64xf32, #tpu.memory_space<vmem>>, vector<16x64xf32>
      %26 = arith.addf %25, %22 : vector<16x64xf32>
      %27 = vector.broadcast %24 : vector<16x1xf32> to vector<16x64xf32>
      %28 = arith.mulf %27, %26 : vector<16x64xf32>
      %cst = arith.constant 1.000000e+00 : f32
      %29 = vector.broadcast %cst : f32 to vector<16x1xf32>
      %30 = arith.subf %29, %24 : vector<16x1xf32>
      %c0_13 = arith.constant 0 : index
      %c0_14 = arith.constant 0 : index
      %31 = vector.load %arg8[%c0_13, %c0_14] : memref<1x64xf32, #tpu.memory_space<vmem>>, vector<1x64xf32>
      %32 = vector.broadcast %30 : vector<16x1xf32> to vector<16x64xf32>
      %33 = vector.broadcast %31 : vector<1x64xf32> to vector<16x64xf32>
      %34 = arith.mulf %32, %33 : vector<16x64xf32>
      %35 = arith.addf %28, %34 : vector<16x64xf32>
      %36 = vector.shape_cast %35 : vector<16x64xf32> to vector<1x16x64xf32>
      %c0_15 = arith.constant 0 : index
      %c0_16 = arith.constant 0 : index
      %c0_17 = arith.constant 0 : index
      %37 = vector.load %arg10[%c0_15, %c0_16, %c0_17] : memref<1x16x64xf32, #tpu.memory_space<vmem>>, vector<1x16x64xf32>
      tpu.vector_store %arg10[%c0_15, %c0_16, %c0_17], %36 {strides = array<i32>} : memref<1x16x64xf32, #tpu.memory_space<vmem>>, vector<1x16x64xf32>,
    } else {
    }
    return
  }
  func.func @transform_0(%arg0: i32, %arg1: i32, %arg2: memref<2xi32, #tpu.memory_space<smem>>, %arg3: memref<2xi32, #tpu.memory_space<smem>>) -> (i32, i32) {
    %0 = arith.index_cast %arg0 : i32 to index
    %1 = memref.load %arg2[%0] : memref<2xi32, #tpu.memory_space<smem>>
    %2 = arith.addi %1, %arg1 : i32
    %3 = arith.index_cast %arg0 : i32 to index
    %4 = memref.load %arg2[%3] : memref<2xi32, #tpu.memory_space<smem>>
    %5 = arith.index_cast %arg0 : i32 to index
    %6 = memref.load %arg3[%5] : memref<2xi32, #tpu.memory_space<smem>>
    %7 = arith.addi %4, %6 : i32
    %c1_i32 = arith.constant 1 : i32
    %8 = arith.subi %7, %c1_i32 : i32
    %9 = arith.minsi %2, %8 : i32
    %c0_i32 = arith.constant 0 : i32
    %c0_i32_0 = arith.constant 0 : i32
    return %c0_i32, %9 : i32, i32
  }
  func.func @transform_1(%arg0: i32, %arg1: i32, %arg2: memref<2xi32, #tpu.memory_space<smem>>, %arg3: memref<2xi32, #tpu.memory_space<smem>>) -> (i32, i32) {
    %0 = arith.index_cast %arg0 : i32 to index
    %1 = memref.load %arg2[%0] : memref<2xi32, #tpu.memory_space<smem>>
    %2 = arith.addi %1, %arg1 : i32
    %3 = arith.index_cast %arg0 : i32 to index
    %4 = memref.load %arg2[%3] : memref<2xi32, #tpu.memory_space<smem>>
    %5 = arith.index_cast %arg0 : i32 to index
    %6 = memref.load %arg3[%5] : memref<2xi32, #tpu.memory_space<smem>>
    %7 = arith.addi %4, %6 : i32
    %c1_i32 = arith.constant 1 : i32
    %8 = arith.subi %7, %c1_i32 : i32
    %9 = arith.minsi %2, %8 : i32
    %c0_i32 = arith.constant 0 : i32
    %c0_i32_0 = arith.constant 0 : i32
    return %9, %c0_i32 : i32, i32
  }
  func.func @transform_2(%arg0: i32, %arg1: i32, %arg2: memref<2xi32, #tpu.memory_space<smem>>, %arg3: memref<2xi32, #tpu.memory_space<smem>>) -> (i32, i32, i32) {
    %c0_i32 = arith.constant 0 : i32
    %c0_i32_0 = arith.constant 0 : i32
    %c0_i32_1 = arith.constant 0 : i32
    return %arg0, %c0_i32, %c0_i32_0 : i32, i32, i32
  }
  func.func @transform_3(%arg0: i32, %arg1: i32, %arg2: memref<2xi32, #tpu.memory_space<smem>>, %arg3: memref<2xi32, #tpu.memory_space<smem>>) -> (i32, i32, i32) {
    %c0_i32 = arith.constant 0 : i32
    %c0_i32_0 = arith.constant 0 : i32
    %c0_i32_1 = arith.constant 0 : i32
    return %arg0, %c0_i32, %c0_i32_0 : i32, i32, i32
  }
  func.func @transform_4(%arg0: i32, %arg1: i32, %arg2: memref<2xi32, #tpu.memory_space<smem>>, %arg3: memref<2xi32, #tpu.memory_space<smem>>) -> (i32, i32) {
    %c0_i32 = arith.constant 0 : i32
    %c0_i32_0 = arith.constant 0 : i32
    %c0_i32_1 = arith.constant 0 : i32
    return %c0_i32, %c0_i32_0 : i32, i32
  }
  func.func @transform_5(%arg0: i32, %arg1: i32, %arg2: memref<2xi32, #tpu.memory_space<smem>>, %arg3: memref<2xi32, #tpu.memory_space<smem>>) -> (i32, i32) {
    %c0_i32 = arith.constant 0 : i32
    %c0_i32_0 = arith.constant 0 : i32
    %c0_i32_1 = arith.constant 0 : i32
    return %c0_i32, %c0_i32_0 : i32, i32
  }
  func.func @transform_6(%arg0: i32, %arg1: i32, %arg2: memref<2xi32, #tpu.memory_space<smem>>, %arg3: memref<2xi32, #tpu.memory_space<smem>>) -> (i32, i32, i32) {
    %c0_i32 = arith.constant 0 : i32
    %c0_i32_0 = arith.constant 0 : i32
    %c0_i32_1 = arith.constant 0 : i32
    return %arg0, %c0_i32, %c0_i32_0 : i32, i32, i32
  }
}

</mosaic_0001>

<bundles_post_ra>
// kernel: _device_forward.2
= control target key start
LH: loop header
LB: loop body
LE: loop exit
PB: predicated region body
PF: predicated region fallthrough
CT: control target
= control target key end

     0   :  { %s3362_s0 = inlined_call_operand.hbm [shape: s32[2], index: 0, kind: input, shape index: {}]   ;;  %s3363_s2 = inlined_call_operand.hbm [shape: s32[1,1024], index: 2, kind: input, shape index: {}]   ;;  %s3364_s3 = inlined_call_operand.hbm [shape: f32[1024,64], index: 3, kind: input, shape index: {}]   ;;  %s3365_s4 = inlined_call_operand.hbm [shape: f32[2,16,1], index: 4, kind: input, shape index: {}]   ;;  %s3366_s5 = inlined_call_operand.hbm [shape: f32[2,16,1], index: 5, kind: input, shape index: {}]   ;;  %s3367_s6 = inlined_call_operand.hbm [shape: f32[1,64], index: 6, kind: input, shape index: {}]   ;;  %s3368_s7 = inlined_call_operand.hbm [shape: f32[1,64], index: 7, kind: input, shape index: {}]   ;;  %s3369_s8 = inlined_call_operand.hbm [shape: f32[2,16,64], index: 8, kind: output, shape index: {}]   ;;  %s3370_s1 = inlined_call_operand.hbm [shape: s32[2], index: 1, kind: input, shape index: {}]  }
   0x1   :  { %3400 = sst [smem:[#allocation49_spill]] %s3363_s2  ;;  %s2017_s29 = scalar_lea.hbm %s3362_s0, 16 }
   0x2   :  { %3401 = sst [smem:[#allocation50_spill]] %s3364_s3  ;;  %p2018_p0 = scmp.ne.s32.totalorder %s3362_s0, %s2017_s29 }
   0x3   :  { %3402 = sst [smem:[#allocation51_spill]] %s3366_s5  ;;  %p2021_p1 = scmp.lt.u32.totalorder %s2017_s29, %s3362_s0 }
   0x4   :  { %3403 = sst [smem:[#allocation52_spill]] %s3367_s6 }
   0x5   :  { %3404 = sst [smem:[#allocation53_spill]] %s3368_s7  ;;  %p2023_p2 = pnand %p2021_p1, %p2018_p0 }
   0x6   :  { %3405 = sst [smem:[#allocation54_spill]] %s3369_s8 }
   0x7   :  { %2026 = shalt.err (!%p2023_p2)  }
   0x8   :  { %s2367_s12 = smov [#allocation4]   ;;  %s2027_s17 = scalar_lea.hbm %s3370_s1, 16 }
   0x9   :  { %14 = dma.hbm_to_smem %s3362_s0, 16, %s2367_s12, [#allocation3] }
   0xa   :  { %p2028_p3 = scmp.ne.s32.totalorder %s3370_s1, %s2027_s17  ;;  %p2031_p4 = scmp.lt.u32.totalorder %s2027_s17, %s3370_s1 }
   0xc   :  { %p2033_p5 = pnand %p2031_p4, %p2028_p3 }
   0xe   :  { %2036 = shalt.err (!%p2033_p5)  }
   0xf   :  { %s2368_s22 = smov [#allocation5]  }
  0x10   :  { %16 = dma.hbm_to_smem %s3370_s1, 16, %s2368_s22, [#allocation3] }
  0x11   :  { %2289 = dma.done.wait [#allocation3], 32 }
  0x12   :  { %2290 = vsyncadd [#allocation3], 4294967264 }
  0x13   :  { %18 = sfence }
  0x14   :  { %19 = vsyncpa [#allocation7], 0 }
  0x15   :  { %21 = vsyncpa [#allocation7 + $0x1], 0 }
  0x16   :  { %22 = vsyncpa [#allocation10], 0 }
  0x17   :  { %24 = vsyncpa [#allocation10 + $0x1], 0 }
  0x18   :  { %25 = vsyncpa [#allocation13], 0 }
  0x19   :  { %27 = vsyncpa [#allocation13 + $0x1], 0 }
  0x1a   :  { %28 = vsyncpa [#allocation16], 0 }
  0x1b   :  { %29 = vsyncpa [#allocation8], 0 }
  0x1c   :  { %31 = vsyncpa [#allocation8 + $0x1], 0  ;;  %s2458_s0 = smov 0   ;;  %s2460_s25 = smov 0  }
  0x1d   :  { %s2462_s26 = smov 0   ;;  %s2464_s27 = smov 0  }
  0x1e   :  { %s2466_s1 = smov 0   ;;  %s2468_s28 = smov 0  }
  0x1f   :  { %s2470_s29 = smov 0   ;;  %s2472_s30 = smov 0  }
  0x20   :  { %s2474_s9 = smov 0   ;;  %s2476_s10 = smov 0  }
  0x21   :  { %s2478_s11 = smov 0   ;;  %s2480_s12 = smov 0  }
  0x22 LB: > { %3406 = sst [smem:[#allocation34_spill]] %s2321_s0  ;;  %s2519_s13 = sadd.s32 4294967295, %s2365_s12   ;;  %s2365_s12 = sphi %s2480_s12, %s37_s12   ;;  %s2361_s11 = sphi %s2478_s11, %s3496_s11   ;;  %s2357_s10 = sphi %s2476_s10, %s3495_s10   ;;  %s2353_s9 = sphi %s2474_s9, %s3501_s9   ;;  %s2349_s30 = sphi %s2472_s30, %s3500_s30   ;;  %s2345_s29 = sphi %s2470_s29, %s3499_s29   ;;  %s2341_s28 = sphi %s2468_s28, %s3493_s28   ;;  %s2337_s1 = sphi %s2466_s1, %s3492_s1   ;;  %s2333_s27 = sphi %s2464_s27, %s3491_s27   ;;  %s2329_s26 = sphi %s2462_s26, %s3490_s26   ;;  %s2325_s25 = sphi %s2460_s25, %s3498_s25   ;;  %s2321_s0 = sphi %s2458_s0, %s3497_s0  }
  0x23   : > { %3407 = sst [smem:[#allocation35_spill]] %s2329_s26  ;;  %s1648_s14 = sadd.s32 4294967294, %s2365_s12  }
  0x24   : > { %3408 = sst [smem:[#allocation36_spill]] %s2337_s1  ;;  %p3372_p6 = scmp.eq.s32.totalorder %s2519_s13, 0 }
  0x25   : > { %3409 = sst [smem:[#allocation37_spill]] %s2341_s28  ;;  %p149_p7 = scmp.ne.s32.totalorder %s2325_s25, %s2321_s0 }
  0x26   : > { %3410 = sst [smem:[#allocation38_spill]] %s2357_s10  ;;  %p247_p9 = scmp.eq.s32.totalorder %s1648_s14, 1 }
  0x27   : > { %3411 = sst [smem:[#allocation39_spill]] %s2361_s11  ;;  %p2528_p10 = por %p149_p7, %p3372_p6 }
  0x28   : > { %p1653_p11 = scmp.ge.s32.totalorder %s2365_s12, 1  ;;  %p2533_p12 = por %p247_p9, %p149_p7 }
  0x29   : > { %s3412_s15 = scalar_select %p2528_p10, 1, 0 }
  0x2a   : > { %s3414_s16 = scalar_select %p2533_p12, 1, 0 }
  0x2b   : > { %3413 = sst [smem:[#allocation40_spill]] %s3412_s15  ;;  %p254_p13 = scmp.lt.s32.totalorder %s2365_s12, 3 }
  0x2c   : > { %3415 = sst [smem:[#allocation41_spill]] %s3414_s16  ;;  %s2369_s18 = smov [#allocation14]  }
  0x2d   : > { %p2538_p0 = pnand %p1653_p11, %p254_p13  ;;  %s267_s19 = sshll.u32 %s2369_s18, 4  ;;  %s268_s19 = int_to_ptr.vmem [resolvable:$true] %s267_s19 }
  0x2e   : > { %s3419_s6 = sld [smem:[#allocation52_spill]] }
  0x2f   : > { %s3416_s17 = scalar_select %p2538_p0, 1, 0 }
  0x30   : > { %p1856_p2 = pneg %p2538_p0 }
  0x31   : > { %3417 = sst [smem:[#allocation42_spill]] %s3416_s17 }
  0x32   : > { %p2548_p4 = pnand %p1856_p2, %p3372_p6 }
  0x34   : > { %s2037_s23 = scalar_lea.hbm %s3419_s6, 16  ;;  %p2039_p7 = pneg %p2548_p4 }
  0x35   : > { %p2038_p5 = scmp.ne.s32.totalorder %s3419_s6, %s2037_s23  ;;  %p2044_p13 = scmp.lt.u32.totalorder %s2037_s23, %s3419_s6 }
  0x37   : > { %p2040_p9 = pnand %p2039_p7, %p2038_p5 }
  0x39   : > { %p2041_p11 = pneg %p2040_p9 }
  0x3b   : > { %p2046_p2 = pnand %p2044_p13, %p2041_p11 }
  0x3d   : > { %2049 = shalt.err (!%p2046_p2)
}
  0x3e   : > { %s2050_s21 = scalar_lea.vmem %s268_s19, 16  ;;  %s2057_s22 = scalar_lea.vmem %s268_s19, 32 }
  0x3f   : > { %p2051_p1 = scmp.ne.s32.totalorder %s268_s19, %s2050_s21  ;;  %p2058_p6 = scmp.lt.s32.totalorder %s268_s19, %s268_s19 }
  0x40   : > { %p2059_p12 = scmp.lt.s32.totalorder %s2057_s22, %s2050_s21 }
  0x41   : > { %p2053_p8 = pnand %p2051_p1, %p2039_p7 }
  0x42   : > { %p2060_p10 = por %p2059_p12, %p2058_p6 }
  0x43   : > { %p2054_p3 = pneg %p2053_p8 }
  0x45   : > { %p2061_p0 = pnand %p2060_p10, %p2054_p3 }
  0x47   : > { %2064 = shalt.err (!%p2061_p0)
}
  0x48   : > { %1859 = dma.hbm_to_vmem [thread:$0]  (!%p2548_p4), %s3419_s6, 16, %s268_s19, [#allocation13]  }
  0x49   : > { %s49_s23 = sadd.s32 1, %s2361_s11  ;;  %p3385_p6 = scmp.eq.s32.totalorder %s2365_s12, 0 }
  0x4a   : > { %p51_p8 = scmp.ge.s32.totalorder %s49_s23, 2  ;;  %s93_s14 = sld [smem:[#allocation4 + %s2361_s11]] }
  0x4b   : > { %s95_s18 = sld [smem:[#allocation5 + %s2361_s11]]  ;;  %s110_s21 = sadd.s32 1, %s2341_s28 }
  0x4c   : > { %s3503_s23 = smov (%p51_p8, %s49_s23), 0  ;;  %p117_p10 = scmp.ne.s32.totalorder %s2341_s28, %s2337_s1 }
  0x4d   : > { %3420 = sst [smem:[#allocation43_spill]] %s3503_s23  ;;  %p123_p12 = scmp.ne.s32.totalorder %s2337_s1, %s2333_s27 }
  0x4e   : > { %s100_s22 = sld [smem:[#allocation4 + %s3503_s23]]  ;;  %p2589_p0 = por %p117_p10, %p3385_p6 }
  0x4f   : > { %s102_s24 = sld [smem:[#allocation5 + %s3503_s23]]  ;;  %p3422_p1 = scmp.eq.s32.totalorder %s2519_s13, 0 }
  0x50   : > { %s317_s0 = sand.u32 1, %s2341_s28   ;;  %p3425_p11 = scmp.lt.s32.totalorder %s2365_s12, 2 }
  0x51   : > { %p2595_p3 = por %p123_p12, %p3422_p1  ;;  %s96_s27 = sadd.s32 %s95_s18, %s93_s14 }
  0x52   : > { %s1651_s8 = sadd.s32 4294967295, %s96_s27  ;;  %s1661_s10 = sshll.u32 %s317_s0, 9 }
  0x53   : > { %s3423_s19 = scalar_select %p2595_p3, 1, 0 }
  0x54   : > { %p98_p5 = scmp.lt.s32.totalorder %s93_s14, %s1651_s8  ;;  %s319_s1 = scalar_lea.vmem [#allocation9], %s1661_s10 }
  0x55   : > { %3424 = sst [smem:[#allocation44_spill]] %s3423_s19  ;;  %s103_s15 = sadd.s32 %s102_s24, %s100_s22 }
  0x56   : > { %s333_s17 = sshll.u32 %s319_s1, 4  ;;  %s3505_s14 = smov (!%p98_p5, %s93_s14), %s1651_s8  ;;  %s2601_s17 = int_to_ptr.vmem [resolvable:$true] %s333_s17 }
  0x57   : > { %s1652_s2 = sadd.s32 4294967295, %s103_s15  ;;  %p2607_p13 = pnand %p3425_p11, %p2589_p0 }
  0x58   : > { %p105_p9 = scmp.lt.s32.totalorder %s100_s22, %s1652_s2  ;;  %p3427_p8 = pmov %p3425_p11 }
  0x59   : > { %s3426_s18 = scalar_select %p2607_p13, 1, 0 }
  0x5a   : > { %s1839_s0 = scalar_select %p2589_p0, [#allocation4], [#allocation20] }
  0x5b   : > { %s3507_s22 = smov (!%p105_p9, %s100_s22), %s1652_s2  ;;  %p3429_p10 = pmov %p3427_p8 }
  0x5c   : > { %s1840_s24 = scalar_select %p2589_p0, %s2361_s11, 0 }
  0x5d   : > { %s107_s10 = ssub.s32 %s3505_s14, %s3507_s22  ;;  %s3509_s0 = smov (!%p3427_p8, %s1839_s0), [#allocation24] }
  0x5e   : > { %p108_p2 = scmp.eq.s32.totalorder %s107_s10, 0  ;;  %s3511_s24 = smov (!%p3429_p10, %s1840_s24), 0 }
  0x5f   : > { %s1841_s1 = scalar_select %p2589_p0, [#allocation5], [#allocation21] }
  0x60   : > { %s2619_s8 = scalar_select %p108_p2, %s2341_s28, %s110_s21  }
  0x61   : > { %s2625_s15 = sld [smem:[%s3509_s0 + %s3511_s24]]  ;;  %p3430_p12 = pmov %p3427_p8 }
  0x62   : > { %3428 = sst [smem:[#allocation45_spill]] %s2619_s8  ;;  %s2370_s6 = smov [#allocation15]  }
  0x63   : > { %s3513_s1 = smov (!%p3430_p12, %s1841_s1), [#allocation25]  ;;  %s278_s2 = sshll.u32 %s2370_s6, 4  ;;  %s279_s2 = int_to_ptr.vmem [resolvable:$true] %s278_s2 }
  0x64   : > { %s322_s27 = sld [smem:[%s3513_s1 + %s3511_s24]] }
  0x65   : > { %s3431_s7 = sld [smem:[#allocation53_spill]] }
  0x6b   : > { %s2065_s14 = scalar_lea.hbm %s3431_s7, 16 }
  0x6c   : > { %p2066_p1 = scmp.ne.s32.totalorder %s3431_s7, %s2065_s14  ;;  %p2072_p9 = scmp.lt.u32.totalorder %s2065_s14, %s3431_s7 }
  0x6e   : > { %p2068_p5 = pnand %p2066_p1, %p2039_p7 }
  0x70   : > { %p2069_p0 = pneg %p2068_p5 }
  0x72   : > { %p2074_p11 = pnand %p2072_p9, %p2069_p0 }
  0x74   : > { %2077 = shalt.err (!%p2074_p11)
}
  0x75   : > { %s2078_s6 = scalar_lea.vmem %s279_s2, 16  ;;  %s2085_s5 = scalar_lea.vmem %s279_s2, 32 }
  0x76   : > { %p2079_p2 = scmp.ne.s32.totalorder %s279_s2, %s2078_s6  ;;  %p2086_p12 = scmp.lt.s32.totalorder %s279_s2, %s279_s2 }
  0x77   : > { %p2087_p6 = scmp.lt.s32.totalorder %s2085_s5, %s2078_s6 }
  0x78   : > { %p2081_p8 = pnand %p2079_p2, %p2039_p7 }
  0x79   : > { %p2088_p3 = por %p2087_p6, %p2086_p12 }
  0x7a   : > { %p2082_p10 = pneg %p2081_p8 }
  0x7c   : > { %p2089_p13 = pnand %p2088_p3, %p2082_p10 }
  0x7e   : > { %2092 = shalt.err (!%p2089_p13)
}
  0x7f   : > { %1862 = dma.hbm_to_vmem [thread:$0]  (!%p2548_p4), %s3431_s7, 16, %s279_s2, [#allocation16]  }
  0x80   : > { %s2650_s24 = sld [smem:[#allocation4 + %s2361_s11]]  ;;  %s323_s20 = sadd.s32 %s322_s27, %s2625_s15 }
  0x81   : > { %s55_s1 = sld [smem:[#allocation5 + %s2361_s11]]  ;;  %s1662_s14 = sadd.s32 4294967295, %s323_s20 }
  0x82   : > { %s2655_s22 = sld [smem:[#allocation4 + %s3503_s23]]  ;;  %p325_p7 = scmp.lt.s32.totalorder %s2625_s15, %s1662_s14 }
  0x83   : > { %s2659_s10 = sld [smem:[#allocation5 + %s3503_s23]]  ;;  %p77_p6 = scmp.ne.s32.totalorder %s2353_s9, %s2349_s30 }
  0x84   : > { %s3515_s15 = smov (!%p325_p7, %s2625_s15), %s1662_s14  ;;  %p3432_p3 = scmp.eq.s32.totalorder %s2365_s12, 0 }
  0x85   : > { %s1730_s16 = sshll.u32 %s3515_s15, 13  ;;  %s3434_s3 = sld [smem:[#allocation50_spill]] }
  0x86   : > { %p2667_p13 = por %p3432_p3, %p77_p6  ;;  %s3435_s20 = sand.u32 1, %s2365_s12  }
  0x87   : > { %s56_s27 = sadd.s32 %s55_s1, %s2650_s24  ;;  %s2683_s14 = scalar_lea.sflag [#allocation10], %s3435_s20 }
  0x88   : > { %s2679_s0 = sadd.s32 4294967295, %s56_s27  ;;  %p3436_p5 = scmp.ne.s32.totalorder %s3426_s18, 0 }
  0x8a   : > { %p2095_p0 = pneg %p3436_p5 }
  0x8b   : > { %s2677_s19 = scalar_lea.hbm %s3434_s3, %s1730_s16  ;;  %s2098_s16 = scalar_lea.hbm %s3434_s3, 16384 }
  0x8c   : > { %s2093_s21 = scalar_lea.hbm %s2677_s19, 8192  ;;  %p2099_p2 = scmp.lt.u32.totalorder %s2677_s19, %s3434_s3 }
  0x8d   : > { %p2094_p1 = scmp.ne.s32.totalorder %s2677_s19, %s2093_s21  ;;  %p2100_p8 = scmp.lt.u32.totalorder %s2098_s16, %s2093_s21 }
  0x8e   : > { %p2102_p12 = scmp.lt.u32.totalorder %s2093_s21, %s2677_s19 }
  0x8f   : > { %p2096_p9 = pnand %p2095_p0, %p2094_p1  ;;  %p2101_p10 = por %p2100_p8, %p2099_p2 }
  0x91   : > { %p2097_p11 = pneg %p2096_p9  ;;  %p2103_p7 = por %p2102_p12, %p2101_p10 }
  0x93   : > { %p2104_p6 = pnand %p2103_p7, %p2097_p11 }
  0x95   : > { %2107 = shalt.err (!%p2104_p6)
}
  0x96   : > { %s2108_s27 = scalar_lea.vmem %s2601_s17, 8192  ;;  %s2371_s20 = smov [#allocation9]  }
  0x97   : > { %p2109_p3 = scmp.ne.s32.totalorder %s2601_s17, %s2108_s27  ;;  %s2113_s15 = sshll.u32 %s2371_s20, 4  ;;  %s2114_s15 = int_to_ptr.vmem [resolvable:$false] %s2113_s15 }
  0x98   : > { %s2115_s1 = scalar_lea.vmem %s2114_s15, 16384  ;;  %p2116_p4 = scmp.lt.s32.totalorder %s2601_s17, %s2114_s15 }
  0x99   : > { %p2111_p1 = pnand %p2109_p3, %p2095_p0  ;;  %p2117_p2 = scmp.lt.s32.totalorder %s2115_s1, %s2108_s27 }
  0x9b   : > { %p2112_p9 = pneg %p2111_p1  ;;  %p2118_p8 = por %p2117_p2, %p2116_p4 }
  0x9d   : > { %p2119_p10 = pnand %p2118_p8, %p2112_p9 }
  0x9f   : > { %2122 = shalt.err (!%p2119_p10)
}
  0xa0   : > { %s3388_s21 = smov 128   ;;  %s3390_s16 = smov 8  }
  0xa1   : > { %1877 = dma.hbm_to_vmem [thread:$0]  (!%p3436_p5), %s2677_s19, 8192, %s2601_s17, %s2683_s14, %s3388_s21, %s3388_s21, %s3390_s16  }
  0xa2   : > { %p58_p4 = scmp.lt.s32.totalorder %s2650_s24, %s2679_s0  ;;  %s63_s6 = sadd.s32 %s2659_s10, %s2655_s22 }
  0xa3   : > { %s1650_s5 = sadd.s32 4294967295, %s63_s6  ;;  %p3437_p0 = scmp.ne.s32.totalorder %s2349_s30, %s2345_s29 }
  0xa4   : > { %p3438_p11 = scmp.eq.s32.totalorder %s2519_s13, 0  ;;  %s3517_s24 = smov (!%p58_p4, %s2650_s24), %s2679_s0 }
  0xa5   : > { %p65_p7 = scmp.lt.s32.totalorder %s2655_s22, %s1650_s5  ;;  %s3392_s17 = sand.u32 1, %s2353_s9  }
  0xa6   : > { %p2723_p12 = por %p3438_p11, %p3437_p0  ;;  %s1657_s18 = sshll.u32 %s3392_s17, 2 }
  0xa7   : > { %s3519_s22 = smov (!%p65_p7, %s2655_s22), %s1650_s5  ;;  %p3440_p5 = scmp.lt.s32.totalorder %s2365_s12, 2 }
  0xa8   : > { %s3439_s27 = scalar_select %p2723_p12, 1, 0 }
  0xa9   : > { %p2738_p6 = pnand %p3440_p5, %p2667_p13  ;;  %s67_s10 = ssub.s32 %s3517_s24, %s3519_s22 }
  0xaa   : > { %s293_s19 = scalar_lea.vmem [#allocation6], %s1657_s18  ;;  %p68_p3 = scmp.eq.s32.totalorder %s67_s10, 0 }
  0xab   : > { %s308_s0 = sshll.u32 %s293_s19, 4  ;;  %s3442_s15 = sadd.s32 1, %s2353_s9  ;;  %s2742_s0 = int_to_ptr.vmem [resolvable:$true] %s308_s0 }
  0xac   : > { %s1834_s20 = scalar_select %p2667_p13, [#allocation4], [#allocation18] }
  0xad   : > { %s2749_s1 = scalar_select %p68_p3, %s2353_s9, %s3442_s15  }
  0xae   : > { %s1835_s6 = scalar_select %p2667_p13, %s2361_s11, 0 }
  0xaf   : > { %3443 = sst [smem:[#allocation46_spill]] %s2749_s1  ;;  %p3444_p1 = pmov %p3440_p5 }
  0xb0   : > { %s1836_s24 = scalar_select %p2667_p13, [#allocation5], [#allocation19] }
  0xb1   : > { %s3521_s20 = smov (!%p3444_p1, %s1834_s20), [#allocation22]  ;;  %p3445_p9 = pmov %p3444_p1 }
  0xb2   : > { %p3446_p2 = pmov %p3444_p1  ;;  %s133_s5 = ssub.s32 %s2361_s11, %s3503_s23 }
  0xb3   : > { %s3523_s6 = smov (!%p3445_p9, %s1835_s6), 0  ;;  %p134_p8 = scmp.eq.s32.totalorder %s133_s5, 0 }
  0xb4   : > { %s294_s22 = sld [smem:[%s3521_s20 + %s3523_s6]]  ;;  %s3525_s24 = smov (!%p3446_p2, %s1836_s24), [#allocation23] }
  0xb5   : > { %s296_s18 = sld [smem:[%s3525_s24 + %s3523_s6]]  ;;  %s136_s10 = sadd.s32 1, %s2329_s26 }
  0xb6   : > { %p143_p10 = scmp.ne.s32.totalorder %s2329_s26, %s2325_s25  ;;  %s345_s19 = sand.u32 1, %s2329_s26  }
  0xb7   : > { %s2769_s15 = scalar_select %p134_p8, %s2329_s26, %s136_s10  }
  0xb8   : > { %p3448_p4 = scmp.eq.s32.totalorder %s2365_s12, 0  ;;  %p3449_p11 = scmp.eq.s32.totalorder %s2519_s13, 1 }
  0xb9   : > { %3447 = sst [smem:[#allocation47_spill]] %s2769_s15  ;;  %s1665_s2 = sshll.u32 %s345_s19, 4 }
  0xba   : > { %p145_p0 = por %p143_p10, %p3448_p4  ;;  %p2775_p7 = por %p3449_p11, %p143_p10 }
  0xbb   : > { %s1731_s20 = sshll.u32 %s2361_s11, 8  ;;  %s297_s16 = sadd.s32 %s296_s18, %s294_s22 }
  0xbc   : > { %s3450_s21 = scalar_select %p2775_p7, 1, 0 }
  0xbd   : > { %s1658_s17 = sadd.s32 4294967295, %s297_s16  ;;  %s2783_s5 = scalar_lea.hbm %s3365_s4, %s1731_s20 }
  0xbe   : > { %p299_p13 = scmp.lt.s32.totalorder %s294_s22, %s1658_s17  ;;  %s347_s10 = scalar_lea.vmem [#allocation11], %s1665_s2 }
  0xbf   : > { %s354_s3 = sshll.u32 %s347_s10, 4  ;;  %p3451_p5 = pmov %p3444_p1  ;;  %s2785_s3 = int_to_ptr.vmem [resolvable:$true] %s354_s3 }
  0xc0   : > { %s3527_s22 = smov (!%p299_p13, %s294_s22), %s1658_s17  ;;  %s3453_s23 = sld [smem:[#allocation51_spill]] }
  0xc1   : > { %p2789_p3 = pnand %p3451_p5, %p145_p0  ;;  %s1729_s18 = sshll.u32 %s3527_s22, 6 }
  0xc2   : > { %s3454_s1 = sld [smem:[#allocation49_spill]]  ;;  %s368_s10 = scalar_lea.vmem [#allocation12], %s1665_s2 }
  0xc3   : > { %s2803_s15 = sshll.u32 %s368_s10, 4  ;;  %s3456_s26 = sand.u32 1, %s2353_s9   ;;  %s2862_s15 = int_to_ptr.vmem [resolvable:$true] %s2803_s15 }
  0xc4   : > { %s290_s17 = scalar_lea.sflag [#allocation7], %s3456_s26  ;;  %p2125_p9 = pneg %p2738_p6 }
  0xc6   : > { %s2796_s6 = scalar_lea.hbm %s3453_s23, %s1731_s20 }
  0xc8   : > { %s3455_s8 = smov %s3454_s1  ;;  %s2801_s28 = scalar_lea.hbm %s3454_s1, %s1729_s18 }
  0xc9   : > { %s2123_s22 = scalar_lea.hbm %s2801_s28, 64  ;;  %s2128_s20 = scalar_lea.hbm %s3455_s8, 128 }
  0xca   : > { %p2124_p1 = scmp.ne.s32.totalorder %s2801_s28, %s2123_s22  ;;  %p2129_p10 = scmp.lt.u32.totalorder %s2801_s28, %s3455_s8 }
  0xcb   : > { %p2130_p4 = scmp.lt.u32.totalorder %s2128_s20, %s2123_s22  ;;  %p2132_p11 = scmp.lt.u32.totalorder %s2123_s22, %s2801_s28 }
  0xcc   : > { %p2126_p2 = pnand %p2125_p9, %p2124_p1 }
  0xcd   : > { %p2131_p0 = por %p2130_p4, %p2129_p10 }
  0xce   : > { %p2127_p8 = pneg %p2126_p2 }
  0xcf   : > { %p2133_p13 = por %p2132_p11, %p2131_p0 }
  0xd1   : > { %p2134_p5 = pnand %p2133_p13, %p2127_p8 }
  0xd3   : > { %2137 = shalt.err (!%p2134_p5)
}
  0xd4   : > { %s2138_s26 = scalar_lea.vmem %s2742_s0, 64  ;;  %s2374_s2 = smov [#allocation6]  }
  0xd5   : > { %p2139_p1 = scmp.ne.s32.totalorder %s2742_s0, %s2138_s26  ;;  %s2143_s19 = sshll.u32 %s2374_s2, 4  ;;  %s2144_s19 = int_to_ptr.vmem [resolvable:$false] %s2143_s19 }
  0xd6   : > { %s2145_s24 = scalar_lea.vmem %s2144_s19, 128  ;;  %p2146_p12 = scmp.lt.s32.totalorder %s2742_s0, %s2144_s19 }
  0xd7   : > { %p2141_p2 = pnand %p2139_p1, %p2125_p9  ;;  %p2147_p10 = scmp.lt.s32.totalorder %s2145_s24, %s2138_s26 }
  0xd9   : > { %p2142_p7 = pneg %p2141_p2  ;;  %p2148_p4 = por %p2147_p10, %p2146_p12 }
  0xdb   : > { %p2149_p0 = pnand %p2148_p4, %p2142_p7 }
  0xdd   : > { %2152 = shalt.err (!%p2149_p0)
}
  0xde   : > { %1870 = dma.hbm_to_vmem [thread:$0]  (!%p2738_p6), %s2801_s28, 64, %s2742_s0, %s290_s17  }
  0xdf   : > { %s2153_s10 = scalar_lea.hbm %s2783_s5, 256  ;;  %p2155_p8 = pneg %p2789_p3 }
  0xe0   : > { %p2154_p9 = scmp.ne.s32.totalorder %s2783_s5, %s2153_s10  ;;  %s2158_s29 = scalar_lea.hbm %s3365_s4, 512 }
  0xe1   : > { %p2159_p11 = scmp.lt.u32.totalorder %s2783_s5, %s3365_s4  ;;  %p2160_p13 = scmp.lt.u32.totalorder %s2158_s29, %s2153_s10 }
  0xe2   : > { %p2156_p12 = pnand %p2155_p8, %p2154_p9  ;;  %p2162_p1 = scmp.lt.u32.totalorder %s2153_s10, %s2783_s5 }
  0xe3   : > { %p2161_p5 = por %p2160_p13, %p2159_p11 }
  0xe4   : > { %p2157_p7 = pneg %p2156_p12 }
  0xe5   : > { %p2163_p6 = por %p2162_p1, %p2161_p5 }
  0xe7   : > { %p2164_p2 = pnand %p2163_p6, %p2157_p7 }
  0xe9   : > { %2167 = shalt.err (!%p2164_p2)
}
  0xea   : > { %s2168_s28 = scalar_lea.vmem %s2785_s3, 256  ;;  %s2375_s0 = smov [#allocation11]  }
  0xeb   : > { %p2169_p10 = scmp.ne.s32.totalorder %s2785_s3, %s2168_s28  ;;  %s2173_s17 = sshll.u32 %s2375_s0, 4  ;;  %s2174_s17 = int_to_ptr.vmem [resolvable:$false] %s2173_s17 }
  0xec   : > { %s2175_s18 = scalar_lea.vmem %s2174_s17, 512  ;;  %p2176_p9 = scmp.lt.s32.totalorder %s2785_s3, %s2174_s17 }
  0xed   : > { %p2171_p4 = pnand %p2169_p10, %p2155_p8  ;;  %p2177_p12 = scmp.lt.s32.totalorder %s2175_s18, %s2168_s28 }
  0xef   : > { %p2172_p0 = pneg %p2171_p4  ;;  %p2178_p11 = por %p2177_p12, %p2176_p9 }
  0xf1   : > { %p2179_p13 = pnand %p2178_p11, %p2172_p0 }
  0xf3   : > { %2182 = shalt.err (!%p2179_p13)
}
  0xf4   : > { %s3457_s16 = smov 8   ;;  %s3458_s26 = smov 128  }
  0xf5   : > { %1880 = dma.hbm_to_vmem [thread:$0]  (!%p2789_p3), %s2783_s5, 256, %s2785_s3, %s2683_s14, %s3458_s26, %s3458_s26, %s3457_s16  }
  0xf6   : > { %s3459_s2 = sand.u32 1, %s2365_s12   ;;  %s2183_s24 = scalar_lea.hbm %s2796_s6, 256 }
  0xf7   : > { %s2866_s19 = scalar_lea.sflag [#allocation13], %s3459_s2  ;;  %p2184_p7 = scmp.ne.s32.totalorder %s2796_s6, %s2183_s24 }
  0xf8   : > { %s2188_s11 = scalar_lea.hbm %s3453_s23, 512  ;;  %p2189_p6 = scmp.lt.u32.totalorder %s2796_s6, %s3453_s23 }
  0xf9   : > { %p2186_p5 = pnand %p2184_p7, %p2155_p8  ;;  %p2190_p2 = scmp.lt.u32.totalorder %s2188_s11, %s2183_s24 }
  0xfa   : > { %p2192_p4 = scmp.lt.u32.totalorder %s2183_s24, %s2796_s6 }
  0xfb   : > { %p2187_p1 = pneg %p2186_p5  ;;  %p2191_p10 = por %p2190_p2, %p2189_p6 }
  0xfd   : > { %p2193_p0 = por %p2192_p4, %p2191_p10 }
  0xff   : > { %p2194_p9 = pnand %p2193_p0, %p2187_p1 }
 0x101   : > { %2197 = shalt.err (!%p2194_p9)
}
 0x102   : > { %s2198_s3 = scalar_lea.vmem %s2862_s15, 256  ;;  %s2376_s14 = smov [#allocation12]  }
 0x103   : > { %p2199_p12 = scmp.ne.s32.totalorder %s2862_s15, %s2198_s3  ;;  %s2203_s5 = sshll.u32 %s2376_s14, 4  ;;  %s2204_s5 = int_to_ptr.vmem [resolvable:$false] %s2203_s5 }
 0x104   : > { %s2205_s20 = scalar_lea.vmem %s2204_s5, 512  ;;  %p2206_p7 = scmp.lt.s32.totalorder %s2862_s15, %s2204_s5 }
 0x105   : > { %p2201_p11 = pnand %p2199_p12, %p2155_p8  ;;  %p2207_p5 = scmp.lt.s32.totalorder %s2205_s20, %s2198_s3 }
 0x107   : > { %p2202_p13 = pneg %p2201_p11  ;;  %p2208_p6 = por %p2207_p5, %p2206_p7 }
 0x109   : > { %p2209_p2 = pnand %p2208_p6, %p2202_p13 }
 0x10b   : > { %2212 = shalt.err (!%p2209_p2)
}
 0x10c   : > { %1883 = dma.hbm_to_vmem [thread:$0]  (!%p2789_p3), %s2796_s6, 256, %s2862_s15, %s2866_s19, %s3458_s26, %s3458_s26, %s3457_s16  }
 0x10d   : > { %s3460_s28 = sld [smem:[#allocation42_spill]] }
 0x113   : > { %p3461_p8 = scmp.ne.s32.totalorder %s3460_s28, 0 }
 0x114   : > { %s389_s0 = sand.u32 (!%p3461_p8), 1, %s2349_s30   ;;  %p3462_p1 = scmp.ne.s32.totalorder (!%p3461_p8), %s3439_s27, 0 }
 0x115   : > { %387 = sbr.rel (%p3461_p8) target bundleno = 892 (0x37c), region = 44  ;;  %s2898_s17 = sshll.u32 (!%p3461_p8), %s389_s0, 2 }
 0x116   : > { %s390_s18 = scalar_lea.sflag (!%p3461_p8), [#allocation7], %s389_s0  ;;  %s393_s2 = scalar_lea.vmem (!%p3461_p8), [#allocation6], %s2898_s17 }
 0x11c   : > { %2292 = dma.done.wait (%p3462_p1), %s390_s18, 64  }
 0x11d   : > { %2294 = vsyncadd (%p3462_p1), %s390_s18, 4294967232  ;;  %s3463_s7 = sld [smem:[#allocation36_spill]]  ;;  %s3464_s24 = sld [smem:[#allocation44_spill]] }
 0x11e   : > { %s398_s15 = sand.u32 1, %s2519_s13  }
 0x11f   : > { %s399_s26 = scalar_lea.sflag [#allocation10], %s398_s15 }
 0x123   : > { %s400_s6 = sand.u32 1, %s3463_s7   ;;  %p3465_p3 = scmp.ne.s32.totalorder %s3464_s24, 0 }
 0x124   : > { %s1673_s16 = sshll.u32 %s400_s6, 9 }
 0x125   : > { %s2907_s19 = scalar_lea.vmem [#allocation9], %s1673_s16 }
 0x126   : > { %2296 = dma.done.wait (%p3465_p3), %s399_s26, 8192  }
 0x127   : > { %2298 = vsyncadd (%p3465_p3), %s399_s26, 4294959104  ;;  %s3466_s10 = sld [smem:[#allocation40_spill]]  ;;  %s409_s22 = sand.u32 1, %s2325_s25  }
 0x128   : > { %s2916_s27 = sshll.u32 %s409_s22, 4 }
 0x129   : > { %s411_s11 = scalar_lea.vmem [#allocation11], %s2916_s27 }
 0x12d   : > { %p3467_p10 = scmp.ne.s32.totalorder %s3466_s10, 0 }
 0x12f   : > { %2300 = dma.done.wait (%p3467_p10), %s399_s26, 256  }
 0x130   : > { %2302 = vsyncadd (%p3467_p10), %s399_s26, 4294967040  ;;  %s417_s29 = scalar_lea.sflag [#allocation13], %s398_s15  ;;  %s420_s1 = scalar_lea.vmem [#allocation12], %s2916_s27 }
 0x131   : > { %2304 = dma.done.wait (%p3467_p10), %s417_s29, 256  }
 0x132   : > { %2306 = vsyncadd (%p3467_p10), %s417_s29, 4294967040  ;;  %p3468_p4 = scmp.eq.s32.totalorder %s2519_s13, 0 }
 0x134   : > { %2308 = dma.done.wait (%p3468_p4), [#allocation13], 16   ;;  %p3469_p0 = pmov %p3468_p4 }
 0x136   : > { %2310 = vsyncadd (%p3469_p0), [#allocation13], 4294967280  ;;  %p3470_p9 = pmov %p3469_p0 }
 0x137   : > { %p3471_p12 = pmov %p3469_p0 }
 0x138   : > { %2312 = dma.done.wait (%p3470_p9), [#allocation16], 16  }
 0x139   : > { %2314 = vsyncadd (%p3471_p12), [#allocation16], 4294967280  ;;  %s3472_s3 = sld [smem:[#allocation38_spill]]  ;;  %vm493_vm0 = vcmask 523264   ;;  %v2377_v0 = vmov 0.0   ;;  %s2940_s5 = scalar_lea.vmem [#allocation17], %s2916_s27 }
 0x13a   : > { %494 = vst.msk [vmem:[#allocation2] sm:$0xff] %vm493_vm0, %v2377_v0  ;;  %495 = vst.msk [vmem:[#allocation2 + $0x8] sm:$0xff] %vm493_vm0, %v2377_v0 }
 0x13f   : > { %s496_s14 = sld [smem:[#allocation5 + %s3472_s3]] }
 0x145   : > { %p1680_p11 = scmp.le.s32.totalorder %s496_s14, 0 }
 0x147   : > { %500 = sbr.rel (%p1680_p11) target bundleno = 648 (0x288), region = 76 }
 0x14e   : > { %s3473_s20 = sld [smem:[#allocation38_spill]]  ;;  %v569_v1 = vld [vmem:[%s2907_s19 + $0x80] sm:$0xff]  ;;  %v570_v2 = vld [vmem:[%s2907_s19 + $0x88] sm:$0xff]  ;;  %v501_v4 = vlaneseq  ;;  %v571_v22 = vld [vmem:[%s2907_s19 + $0x90] sm:$0xff] }
 0x14f   : > { %v601_v3 = vld [vmem:[%s2907_s19 + $0x180] sm:$0xff]  ;;  %v2946_v5 = vpack.c.bf16 %v570_v2, %v569_v1  ;;  %v602_v6 = vld [vmem:[%s2907_s19 + $0x188] sm:$0xff]  ;;  %v572_v23 = vld [vmem:[%s2907_s19 + $0x98] sm:$0xff] }
 0x150   : > { %v553_v7 = vld [vmem:[%s2907_s19] sm:$0xff]  ;;  %v554_v8 = vld [vmem:[%s2907_s19 + $0x8] sm:$0xff]  ;;  %v2951_v9 = vpack.c.bf16 %v602_v6, %v601_v3  ;;  %v2963_v17 = vshrl.u32 %v501_v4, 7  ;;  %v603_v24 = vld [vmem:[%s2907_s19 + $0x190] sm:$0xff]  ;;  %v2979_v41 = vpack.c.bf16 %v572_v23, %v571_v22 }
 0x151   : > { %v2953_v10 = vpack.c.bf16 %v554_v8, %v553_v7  ;;  %v585_v11 = vld [vmem:[%s2907_s19 + $0x100] sm:$0xff]  ;;  %v586_v12 = vld [vmem:[%s2907_s19 + $0x108] sm:$0xff]  ;;  %v665_v14 = vunpack.c.l.bf16 %v2946_v5  ;;  %v666_v15 = vunpack.c.h.bf16 %v2946_v5  ;;  %v604_v29 = vld [vmem:[%s2907_s19 + $0x198] sm:$0xff] }
 0x152   : > { %v2961_v16 = vpack.c.bf16 %v586_v12, %v585_v11  ;;  %v697_v18 = vunpack.c.l.bf16 %v2951_v9  ;;  %v698_v19 = vunpack.c.h.bf16 %v2951_v9  ;;  %v555_v30 = vld [vmem:[%s2907_s19 + $0x10] sm:$0xff]  ;;  %v556_v31 = vld [vmem:[%s2907_s19 + $0x18] sm:$0xff]  ;;  %v2981_v44 = vpack.c.bf16 %v604_v29, %v603_v24  ;;  %v573_v54 = vld [vmem:[%s2907_s19 + $0xa0] sm:$0xff] }
 0x153   : > { %v649_v20 = vunpack.c.l.bf16 %v2953_v10  ;;  %v650_v21 = vunpack.c.h.bf16 %v2953_v10  ;;  %v729_v25 = vsub.f32 %v569_v1, %v665_v14  ;;  %v730_v26 = vsub.f32 %v570_v2, %v666_v15  ;;  %v587_v36 = vld [vmem:[%s2907_s19 + $0x110] sm:$0xff]  ;;  %v588_v37 = vld [vmem:[%s2907_s19 + $0x118] sm:$0xff]  ;;  %v574_v55 = vld [vmem:[%s2907_s19 + $0xa8] sm:$0xff] }
 0x154   : > { %s1681_s13 = sshll.u32 %s3473_s20, 4  ;;  %v681_v27 = vunpack.c.l.bf16 %v2961_v16  ;;  %v682_v28 = vunpack.c.h.bf16 %v2961_v16  ;;  %v761_v32 = vsub.f32 %v601_v3, %v697_v18  ;;  %v762_v33 = vsub.f32 %v602_v6, %v698_v19  ;;  %v605_v56 = vld [vmem:[%s2907_s19 + $0x1a0] sm:$0xff]  ;;  %v606_v61 = vld [vmem:[%s2907_s19 + $0x1a8] sm:$0xff] }
 0x155   : > { %v2957_v13 = vstv %s1681_s13  ;;  %v713_v34 = vsub.f32 %v553_v7, %v649_v20  ;;  %v714_v35 = vsub.f32 %v554_v8, %v650_v21  ;;  %v785_v38 = vpack.c.bf16 %v730_v26, %v729_v25  ;;  %v557_v62 = vld [vmem:[%s2907_s19 + $0x20] sm:$0xff]  ;;  %v558_v63 = vld [vmem:[%s2907_s19 + $0x28] sm:$0xff] }
 0x156   : > { %v745_v39 = vsub.f32 %v585_v11, %v681_v27  ;;  %v746_v40 = vsub.f32 %v586_v12, %v682_v28  ;;  %v801_v42 = vpack.c.bf16 %v762_v33, %v761_v32  ;;  %v2983_v45 = vpack.c.bf16 %v556_v31, %v555_v30  ;;  %v589_v4 = vld [vmem:[%s2907_s19 + $0x120] sm:$0xff]  ;;  %v590_v6 = vld [vmem:[%s2907_s19 + $0x128] sm:$0xff]  ;;  %v575_v28 = vld [vmem:[%s2907_s19 + $0xb0] sm:$0xff] }
 0x157   : > { %v777_v43 = vpack.c.bf16 %v714_v35, %v713_v34  ;;  %1734 = vmatprep.subr.bf16.mxu0 %v785_v38  ;;  %v667_v47 = vunpack.c.l.bf16 %v2979_v41  ;;  %v668_v48 = vunpack.c.h.bf16 %v2979_v41  ;;  %v2987_v49 = vpack.c.bf16 %v588_v37, %v587_v36  ;;  %v608_v35 = vld [vmem:[%s2907_s19 + $0x1b8] sm:$0xff] }
 0x158   : > { %v793_v46 = vpack.c.bf16 %v746_v40, %v745_v39  ;;  %1756 = vmatprep.subr.bf16.mxu1 %v801_v42  ;;  %v699_v50 = vunpack.c.l.bf16 %v2981_v44  ;;  %v700_v51 = vunpack.c.h.bf16 %v2981_v44  ;;  %v651_v52 = vunpack.c.l.bf16 %v2983_v45 }
 0x159   : > { %1735 = vmatpush3.bf16.msra.mxu0 %v777_v43  ;;  %v652_v53 = vunpack.c.h.bf16 %v2983_v45  ;;  %v731_v57 = vsub.f32 %v571_v22, %v667_v47  ;;  %v732_v58 = vsub.f32 %v572_v23, %v668_v48  ;;  %v683_v59 = vunpack.c.l.bf16 %v2987_v49  ;;  %v591_v43 = vld [vmem:[%s2907_s19 + $0x130] sm:$0xff] }
 0x15a   : > { %1757 = vmatpush3.bf16.msra.mxu1 %v793_v46  ;;  %v684_v60 = vunpack.c.h.bf16 %v2987_v49  ;;  %v763_v0 = vsub.f32 %v603_v24, %v699_v50  ;;  %v764_v1 = vsub.f32 %v604_v29, %v700_v51  ;;  %v715_v2 = vsub.f32 %v555_v30, %v651_v52  ;;  %v576_v29 = vld [vmem:[%s2907_s19 + $0xb8] sm:$0xff]  ;;  %v607_v30 = vld [vmem:[%s2907_s19 + $0x1b0] sm:$0xff] }
 0x15b   : > { %v716_v3 = vsub.f32 %v556_v31, %v652_v53  ;;  %v786_v7 = vpack.c.bf16 %v732_v58, %v731_v57  ;;  %v747_v8 = vsub.f32 %v587_v36, %v683_v59  ;;  %v3003_v12 = vpack.c.bf16 %v574_v55, %v573_v54  ;;  %v559_v36 = vld [vmem:[%s2907_s19 + $0x30] sm:$0xff]  ;;  %v592_v46 = vld [vmem:[%s2907_s19 + $0x138] sm:$0xff] }
 0x15c   : > { %v748_v11 = vsub.f32 %v588_v37, %v684_v60  ;;  %v802_v14 = vpack.c.bf16 %v764_v1, %v763_v0  ;;  %v3005_v18 = vpack.c.bf16 %v606_v61, %v605_v56  ;;  %v3007_v19 = vpack.c.bf16 %v558_v63, %v557_v62  ;;  %v560_v37 = vld [vmem:[%s2907_s19 + $0x38] sm:$0xff]  ;;  %v577_v0 = vld [vmem:[%s2907_s19 + $0xc0] sm:$0xff]  ;;  %v578_v1 = vld [vmem:[%s2907_s19 + $0xc8] sm:$0xff] }
 0x15d   : > { %v778_v15 = vpack.c.bf16 %v716_v3, %v715_v2  ;;  %1736 = vmatprep.subr.bf16.mxu0 %v786_v7  ;;  %v669_v21 = vunpack.c.l.bf16 %v3003_v12  ;;  %v670_v22 = vunpack.c.h.bf16 %v3003_v12  ;;  %v3011_v23 = vpack.c.bf16 %v590_v6, %v589_v4  ;;  %v609_v2 = vld [vmem:[%s2907_s19 + $0x1c0] sm:$0xff] }
 0x15e   : > { %v794_v20 = vpack.c.bf16 %v748_v11, %v747_v8  ;;  %1758 = vmatprep.subr.bf16.mxu1 %v802_v14  ;;  %v701_v24 = vunpack.c.l.bf16 %v3005_v18  ;;  %v702_v25 = vunpack.c.h.bf16 %v3005_v18  ;;  %v653_v26 = vunpack.c.l.bf16 %v3007_v19  ;;  %v610_v8 = vld [vmem:[%s2907_s19 + $0x1c8] sm:$0xff]  ;;  %v561_v11 = vld [vmem:[%s2907_s19 + $0x40] sm:$0xff] }
 0x15f   : > { %1737 = vmatpush3.bf16.msra.mxu0 %v778_v15  ;;  %v654_v27 = vunpack.c.h.bf16 %v3007_v19  ;;  %v733_v31 = vsub.f32 %v573_v54, %v669_v21  ;;  %v734_v32 = vsub.f32 %v574_v55, %v670_v22  ;;  %v685_v33 = vunpack.c.l.bf16 %v3011_v23  ;;  %v562_v14 = vld [vmem:[%s2907_s19 + $0x48] sm:$0xff] }
 0x160   : > { %1759 = vmatpush3.bf16.msra.mxu1 %v794_v20  ;;  %v686_v34 = vunpack.c.h.bf16 %v3011_v23  ;;  %v765_v38 = vsub.f32 %v605_v56, %v701_v24  ;;  %v766_v39 = vsub.f32 %v606_v61, %v702_v25  ;;  %v717_v40 = vsub.f32 %v557_v62, %v653_v26  ;;  %v593_v24 = vld [vmem:[%s2907_s19 + $0x140] sm:$0xff]  ;;  %v594_v25 = vld [vmem:[%s2907_s19 + $0x148] sm:$0xff] }
 0x161   : > { %v718_v42 = vsub.f32 %v558_v63, %v654_v27  ;;  %v787_v47 = vpack.c.bf16 %v734_v32, %v733_v31  ;;  %v749_v48 = vsub.f32 %v589_v4, %v685_v33  ;;  %v3027_v51 = vpack.c.bf16 %v576_v29, %v575_v28 }
 0x162   : > { %v750_v50 = vsub.f32 %v590_v6, %v686_v34  ;;  %v803_v52 = vpack.c.bf16 %v766_v39, %v765_v38  ;;  %v3029_v54 = vpack.c.bf16 %v608_v35, %v607_v30  ;;  %v3031_v55 = vpack.c.bf16 %v560_v37, %v559_v36 }
 0x163   : > { %v779_v53 = vpack.c.bf16 %v718_v42, %v717_v40  ;;  %1738 = vmatprep.subr.bf16.mxu0 %v787_v47  ;;  %v671_v57 = vunpack.c.l.bf16 %v3027_v51  ;;  %v672_v58 = vunpack.c.h.bf16 %v3027_v51  ;;  %v3035_v59 = vpack.c.bf16 %v592_v46, %v591_v43  ;;  %v611_v47 = vld [vmem:[%s2907_s19 + $0x1d0] sm:$0xff] }
 0x164   : > { %v795_v56 = vpack.c.bf16 %v750_v50, %v749_v48  ;;  %1760 = vmatprep.subr.bf16.mxu1 %v803_v52  ;;  %v703_v60 = vunpack.c.l.bf16 %v3029_v54  ;;  %v704_v61 = vunpack.c.h.bf16 %v3029_v54  ;;  %v655_v62 = vunpack.c.l.bf16 %v3031_v55 }
 0x165   : > { %1739 = vmatpush3.bf16.msra.mxu0 %v779_v53  ;;  %v656_v63 = vunpack.c.h.bf16 %v3031_v55  ;;  %v735_v3 = vsub.f32 %v575_v28, %v671_v57  ;;  %v736_v4 = vsub.f32 %v576_v29, %v672_v58  ;;  %v687_v6 = vunpack.c.l.bf16 %v3035_v59  ;;  %v563_v57 = vld [vmem:[%s2907_s19 + $0x50] sm:$0xff]  ;;  %v564_v58 = vld [vmem:[%s2907_s19 + $0x58] sm:$0xff] }
 0x166   : > { %1761 = vmatpush3.bf16.msra.mxu1 %v795_v56  ;;  %v688_v7 = vunpack.c.h.bf16 %v3035_v59  ;;  %v767_v15 = vsub.f32 %v607_v30, %v703_v60  ;;  %v768_v20 = vsub.f32 %v608_v35, %v704_v61  ;;  %v719_v21 = vsub.f32 %v559_v36, %v655_v62  ;;  %v612_v56 = vld [vmem:[%s2907_s19 + $0x1d8] sm:$0xff] }
 0x167   : > { %v720_v22 = vsub.f32 %v560_v37, %v656_v63  ;;  %v788_v26 = vpack.c.bf16 %v736_v4, %v735_v3  ;;  %v751_v27 = vsub.f32 %v591_v43, %v687_v6  ;;  %v3051_v32 = vpack.c.bf16 %v578_v1, %v577_v0  ;;  %v579_v43 = vld [vmem:[%s2907_s19 + $0xd0] sm:$0xff]  ;;  %v596_v4 = vld [vmem:[%s2907_s19 + $0x158] sm:$0xff] }
 0x168   : > { %v752_v31 = vsub.f32 %v592_v46, %v688_v7  ;;  %v804_v28 = vpack.c.bf16 %v768_v20, %v767_v15  ;;  %v3053_v33 = vpack.c.bf16 %v610_v8, %v609_v2  ;;  %v3055_v34 = vpack.c.bf16 %v562_v14, %v561_v11  ;;  %v580_v46 = vld [vmem:[%s2907_s19 + $0xd8] sm:$0xff]  ;;  %v595_v3 = vld [vmem:[%s2907_s19 + $0x150] sm:$0xff] }
 0x169   : > { %v780_v29 = vpack.c.bf16 %v720_v22, %v719_v21  ;;  %1740 = vmatprep.subr.bf16.mxu0 %v788_v26  ;;  %v673_v35 = vunpack.c.l.bf16 %v3051_v32  ;;  %v674_v36 = vunpack.c.h.bf16 %v3051_v32  ;;  %v3059_v37 = vpack.c.bf16 %v594_v25, %v593_v24 }
 0x16a   : > { %v796_v30 = vpack.c.bf16 %v752_v31, %v751_v27  ;;  %1762 = vmatprep.subr.bf16.mxu1 %v804_v28  ;;  %v705_v38 = vunpack.c.l.bf16 %v3053_v33  ;;  %v706_v39 = vunpack.c.h.bf16 %v3053_v33  ;;  %v657_v40 = vunpack.c.l.bf16 %v3055_v34  ;;  %v581_v31 = vld [vmem:[%s2907_s19 + $0xe0] sm:$0xff]  ;;  %v582_v28 = vld [vmem:[%s2907_s19 + $0xe8] sm:$0xff] }
 0x16b   : > { %1741 = vmatpush3.bf16.msra.mxu0 %v780_v29  ;;  %v658_v42 = vunpack.c.h.bf16 %v3055_v34  ;;  %v737_v48 = vsub.f32 %v577_v0, %v673_v35  ;;  %v738_v50 = vsub.f32 %v578_v1, %v674_v36  ;;  %v689_v52 = vunpack.c.l.bf16 %v3059_v37  ;;  %v613_v29 = vld [vmem:[%s2907_s19 + $0x1e0] sm:$0xff] }
 0x16c   : > { %1763 = vmatpush3.bf16.msra.mxu1 %v796_v30  ;;  %v690_v53 = vunpack.c.h.bf16 %v3059_v37  ;;  %v769_v60 = vsub.f32 %v609_v2, %v705_v38  ;;  %v770_v61 = vsub.f32 %v610_v8, %v706_v39  ;;  %v721_v62 = vsub.f32 %v561_v11, %v657_v40  ;;  %v614_v39 = vld [vmem:[%s2907_s19 + $0x1e8] sm:$0xff]  ;;  %v565_v40 = vld [vmem:[%s2907_s19 + $0x60] sm:$0xff] }
 0x16d   : > { %v722_v63 = vsub.f32 %v562_v14, %v658_v42  ;;  %v789_v6 = vpack.c.bf16 %v738_v50, %v737_v48  ;;  %v753_v7 = vsub.f32 %v593_v24, %v689_v52  ;;  %v3075_v20 = vpack.c.bf16 %v580_v46, %v579_v43  ;;  %v566_v42 = vld [vmem:[%s2907_s19 + $0x68] sm:$0xff] }
 0x16e   : > { %v754_v15 = vsub.f32 %v594_v25, %v690_v53  ;;  %v805_v0 = vpack.c.bf16 %v770_v61, %v769_v60  ;;  %v3077_v21 = vpack.c.bf16 %v612_v56, %v611_v47  ;;  %v3079_v22 = vpack.c.bf16 %v564_v58, %v563_v57  ;;  %v597_v60 = vld [vmem:[%s2907_s19 + $0x160] sm:$0xff]  ;;  %v598_v61 = vld [vmem:[%s2907_s19 + $0x168] sm:$0xff] }
 0x16f   : > { %v781_v1 = vpack.c.bf16 %v722_v63, %v721_v62  ;;  %1742 = vmatprep.subr.bf16.mxu0 %v789_v6  ;;  %v675_v8 = vunpack.c.l.bf16 %v3075_v20  ;;  %v676_v11 = vunpack.c.h.bf16 %v3075_v20  ;;  %v3083_v14 = vpack.c.bf16 %v596_v4, %v595_v3 }
 0x170   : > { %v797_v2 = vpack.c.bf16 %v754_v15, %v753_v7  ;;  %1764 = vmatprep.subr.bf16.mxu1 %v805_v0  ;;  %v707_v24 = vunpack.c.l.bf16 %v3077_v21  ;;  %v708_v25 = vunpack.c.h.bf16 %v3077_v21  ;;  %v659_v26 = vunpack.c.l.bf16 %v3079_v22 }
 0x171   : > { %1743 = vmatpush3.bf16.msra.mxu0 %v781_v1  ;;  %v660_v27 = vunpack.c.h.bf16 %v3079_v22  ;;  %v739_v30 = vsub.f32 %v579_v43, %v675_v8  ;;  %v740_v35 = vsub.f32 %v580_v46, %v676_v11  ;;  %v691_v36 = vunpack.c.l.bf16 %v3083_v14  ;;  %v583_v8 = vld [vmem:[%s2907_s19 + $0xf0] sm:$0xff]  ;;  %v584_v11 = vld [vmem:[%s2907_s19 + $0xf8] sm:$0xff] }
 0x172   : > { %1765 = vmatpush3.bf16.msra.mxu1 %v797_v2  ;;  %v692_v38 = vunpack.c.h.bf16 %v3083_v14  ;;  %v771_v48 = vsub.f32 %v611_v47, %v707_v24  ;;  %v772_v50 = vsub.f32 %v612_v56, %v708_v25  ;;  %v723_v52 = vsub.f32 %v563_v57, %v659_v26  ;;  %v615_v24 = vld [vmem:[%s2907_s19 + $0x1f0] sm:$0xff] }
 0x173   : > { %v724_v53 = vsub.f32 %v564_v58, %v660_v27  ;;  %v790_v62 = vpack.c.bf16 %v740_v35, %v739_v30  ;;  %v755_v63 = vsub.f32 %v595_v3, %v691_v36  ;;  %v3099_v7 = vpack.c.bf16 %v582_v28, %v581_v31  ;;  %v616_v35 = vld [vmem:[%s2907_s19 + $0x1f8] sm:$0xff]  ;;  %v567_v36 = vld [vmem:[%s2907_s19 + $0x70] sm:$0xff] }
 0x174   : > { %v756_v6 = vsub.f32 %v596_v4, %v692_v38  ;;  %v806_v43 = vpack.c.bf16 %v772_v50, %v771_v48  ;;  %v3101_v15 = vpack.c.bf16 %v614_v39, %v613_v29  ;;  %v3103_v0 = vpack.c.bf16 %v566_v42, %v565_v40  ;;  %v568_v38 = vld [vmem:[%s2907_s19 + $0x78] sm:$0xff] }
 0x175   : > { %v782_v46 = vpack.c.bf16 %v724_v53, %v723_v52  ;;  %1744 = vmatprep.subr.bf16.mxu0 %v790_v62  ;;  %v677_v56 = vunpack.c.l.bf16 %v3099_v7  ;;  %v678_v57 = vunpack.c.h.bf16 %v3099_v7  ;;  %v3107_v58 = vpack.c.bf16 %v598_v61, %v597_v60  ;;  %v599_v62 = vld [vmem:[%s2907_s19 + $0x170] sm:$0xff] }
 0x176   : > { %3474 = vst [vmem:[#allocation48_spill] sm:$0xff] %v3103_v0  ;;  %v798_v47 = vpack.c.bf16 %v756_v6, %v755_v63  ;;  %1766 = vmatprep.subr.bf16.mxu1 %v806_v43  ;;  %v709_v3 = vunpack.c.l.bf16 %v3101_v15  ;;  %v710_v4 = vunpack.c.h.bf16 %v3101_v15  ;;  %v661_v1 = vunpack.c.l.bf16 %v3103_v0  ;;  %v600_v63 = vld [vmem:[%s2907_s19 + $0x178] sm:$0xff] }
 0x177   : > { %1745 = vmatpush3.bf16.msra.mxu0 %v782_v46  ;;  %v662_v2 = vunpack.c.h.bf16 %v3103_v0  ;;  %v741_v25 = vsub.f32 %v581_v31, %v677_v56  ;;  %v742_v26 = vsub.f32 %v582_v28, %v678_v57  ;;  %v693_v27 = vunpack.c.l.bf16 %v3107_v58 }
 0x178   : > { %1767 = vmatpush3.bf16.msra.mxu1 %v798_v47  ;;  %v694_v30 = vunpack.c.h.bf16 %v3107_v58  ;;  %v773_v48 = vsub.f32 %v613_v29, %v709_v3  ;;  %v774_v50 = vsub.f32 %v614_v39, %v710_v4  ;;  %v725_v52 = vsub.f32 %v565_v40, %v661_v1 }
 0x179   : > { %v726_v53 = vsub.f32 %v566_v42, %v662_v2  ;;  %v791_v6 = vpack.c.bf16 %v742_v26, %v741_v25  ;;  %v757_v43 = vsub.f32 %v597_v60, %v693_v27  ;;  %v3123_v0 = vpack.c.bf16 %v584_v11, %v583_v8 }
 0x17a   : > { %v758_v46 = vsub.f32 %v598_v61, %v694_v30  ;;  %v807_v31 = vpack.c.bf16 %v774_v50, %v773_v48  ;;  %v3125_v47 = vpack.c.bf16 %v616_v35, %v615_v24  ;;  %v3127_v56 = vpack.c.bf16 %v568_v38, %v567_v36 }
 0x17b   : > { %v783_v28 = vpack.c.bf16 %v726_v53, %v725_v52  ;;  %1746 = vmatprep.subr.bf16.mxu0 %v791_v6  ;;  %v679_v29 = vunpack.c.l.bf16 %v3123_v0  ;;  %v680_v39 = vunpack.c.h.bf16 %v3123_v0  ;;  %v3131_v40 = vpack.c.bf16 %v600_v63, %v599_v62 }
 0x17c   : > { %v799_v57 = vpack.c.bf16 %v758_v46, %v757_v43  ;;  %1768 = vmatprep.subr.bf16.mxu1 %v807_v31  ;;  %v711_v42 = vunpack.c.l.bf16 %v3125_v47  ;;  %v712_v60 = vunpack.c.h.bf16 %v3125_v47  ;;  %v663_v61 = vunpack.c.l.bf16 %v3127_v56  ;;  %v508_v43 = vld [vmem:[%s393_s2] sm:$0xf] }
 0x17d   : > { %1747 = vmatpush3.bf16.msra.mxu0 %v783_v28  ;;  %v664_v3 = vunpack.c.h.bf16 %v3127_v56  ;;  %v743_v4 = vsub.f32 %v583_v8, %v679_v29  ;;  %v744_v1 = vsub.f32 %v584_v11, %v680_v39  ;;  %v695_v2 = vunpack.c.l.bf16 %v3131_v40 }
 0x17e   : > { %1769 = vmatpush3.bf16.msra.mxu1 %v799_v57  ;;  %v696_v25 = vunpack.c.h.bf16 %v3131_v40  ;;  %v775_v26 = vsub.f32 %v615_v24, %v711_v42  ;;  %v776_v27 = vsub.f32 %v616_v35, %v712_v60  ;;  %v727_v30 = vsub.f32 %v567_v36, %v663_v61  ;;  %v810_v60 = vld [vmem:[#allocation2 + $0x8] sm:$0xff] }
 0x17f   : > { %v728_v48 = vsub.f32 %v568_v38, %v664_v3  ;;  %v792_v50 = vpack.c.bf16 %v744_v1, %v743_v4  ;;  %v759_v52 = vsub.f32 %v599_v62, %v695_v2  ;;  %v503_v6 = vadd.s32 8, %v2963_v17 }
 0x180   : > { %v760_v53 = vsub.f32 %v600_v63, %v696_v25  ;;  %v808_v46 = vpack.c.bf16 %v776_v27, %v775_v26  ;;  %v506_v8 = vadd.s32 %v2957_v13, %v2963_v17  ;;  %v515_v11 = vsub.s32 1, %v2963_v17 }
 0x181   : > { %v784_v31 = vpack.c.bf16 %v728_v48, %v727_v30  ;;  %1748 = vmatprep.subr.bf16.mxu0 %v792_v50  ;;  %v507_v24 = vadd.s32 %v2957_v13, %v503_v6  ;;  %v523_v35 = vsub.s32 3, %v2963_v17  ;;  %v511_v36 = vsub.s32 0, %v2963_v17 }
 0x182   : > { %v800_v28 = vpack.c.bf16 %v760_v53, %v759_v52  ;;  %1770 = vmatprep.subr.bf16.mxu1 %v808_v46  ;;  %v516_v38 = vrot.slane %v508_v43, %v515_v11  ;;  %v519_v62 = vsub.s32 2, %v2963_v17  ;;  %v2378_v39 = vmov 1.0|1.0  }
 0x183   : > { %1749 = vmatpush3.bf16.msra.mxu0 %v784_v31  ;;  %v524_v63 = vrot.slane %v508_v43, %v523_v35  ;;  %v512_v57 = vrot.slane %v508_v43, %v511_v36 }
 0x184   : > { %1771 = vmatpush3.bf16.msra.mxu1 %v800_v28  ;;  %1778 = vmatprep.subr.bf16.mxu0 %v2946_v5  ;;  %vm526_vm1 = vcmp.eq.s32.totalorder %v516_v38, %v506_v8  ;;  %vm530_vm2 = vcmp.eq.s32.totalorder %v516_v38, %v507_v24  ;;  %v520_v29 = vrot.slane %v508_v43, %v519_v62 }
 0x185   : > { %1800 = vmatprep.subr.bf16.mxu1 %v2951_v9  ;;  %vm3151_vm3 = vmpackc.low %vm530_vm2, %vm526_vm1  ;;  %vm528_vm4 = vcmp.eq.s32.totalorder %v524_v63, %v506_v8  ;;  %vm532_vm5 = vcmp.eq.s32.totalorder %v524_v63, %v507_v24  ;;  %vm525_vm6 = vcmp.eq.s32.totalorder %v512_v57, %v506_v8  ;;  %vm529_vm7 = vcmp.eq.s32.totalorder %v512_v57, %v507_v24 }
 0x186   : > { %1691 = vmatprep.mubr.msk.bf16.mxu0 %vm3151_vm3, %v2378_v39  ;;  %vm1694_vm8 = vmpackc.low %vm532_vm5, %vm528_vm4  ;;  %vm527_vm9 = vcmp.eq.s32.totalorder %v520_v29, %v506_v8  ;;  %vm531_vm10 = vcmp.eq.s32.totalorder %v520_v29, %v507_v24 }
 0x187   : > { %1695 = vmatprep.mubr.msk.bf16.mxu1 %vm1694_vm8, %v2378_v39  ;;  %vm3157_vm11 = vmpackc.low %vm529_vm7, %vm525_vm6 }
 0x188   : > { %1693 = vmatmul.mubr.msk.bf16.vlgmr.msra.gmra.mrb[0].mxu0 %vm3157_vm11, %v2378_v39  ;;  %vm3163_vm12 = vmpackc.low %vm531_vm10, %vm527_vm9 }
 0x189   : > { %1697 = vmatmul.mubr.msk.bf16.vlgmr.msra.gmra.mrb[0].mxu1 %vm3163_vm12, %v2378_v39  ;;  %1779 = vmatpush3.bf16.msra.mxu0 %v2953_v10  ;;  %v3481_v10 = vld [vmem:[#allocation48_spill] sm:$0xff] }
 0x18a   : > { %1801 = vmatpush3.bf16.msra.mxu1 %v2961_v16  ;;  %1780 = vmatprep.subr.bf16.mxu0 %v2979_v41 }
 0x18b   : > { %1802 = vmatprep.subr.bf16.mxu1 %v2981_v44  ;;  %1699 = vmatprep.mubr.msk.bf16.mxu0 %vm3151_vm3, %v2378_v39 }
 0x18c   : > { %1703 = vmatprep.mubr.msk.bf16.mxu1 %vm1694_vm8, %v2378_v39 }
 0x18d   : > { %1781 = vmatpush3.bf16.msra.mxu0 %v2983_v45 }
 0x18e   : > { %1803 = vmatpush3.bf16.msra.mxu1 %v2987_v49  ;;  %1782 = vmatprep.subr.bf16.mxu0 %v3003_v12 }
 0x18f   : > { %1804 = vmatprep.subr.bf16.mxu1 %v3005_v18 }
 0x191   : > { %1783 = vmatpush3.bf16.msra.mxu0 %v3007_v19 }
 0x192   : > { %1805 = vmatpush3.bf16.msra.mxu1 %v3011_v23  ;;  %1784 = vmatprep.subr.bf16.mxu0 %v3027_v51 }
 0x193   : > { %1806 = vmatprep.subr.bf16.mxu1 %v3029_v54 }
 0x195   : > { %1785 = vmatpush3.bf16.msra.mxu0 %v3031_v55 }
 0x196   : > { %1807 = vmatpush3.bf16.msra.mxu1 %v3035_v59  ;;  %1786 = vmatprep.subr.bf16.mxu0 %v3051_v32 }
 0x197   : > { %1808 = vmatprep.subr.bf16.mxu1 %v3053_v33 }
 0x199   : > { %1787 = vmatpush3.bf16.msra.mxu0 %v3055_v34 }
 0x19a   : > { %1809 = vmatpush3.bf16.msra.mxu1 %v3059_v37  ;;  %1788 = vmatprep.subr.bf16.mxu0 %v3075_v20 }
 0x19b   : > { %1810 = vmatprep.subr.bf16.mxu1 %v3077_v21 }
 0x19d   : > { %1789 = vmatpush3.bf16.msra.mxu0 %v3079_v22 }
 0x19e   : > { %1811 = vmatpush3.bf16.msra.mxu1 %v3083_v14  ;;  %1790 = vmatprep.subr.bf16.mxu0 %v3099_v7 }
 0x19f   : > { %1812 = vmatprep.subr.bf16.mxu1 %v3101_v15 }
 0x1a1   : > { %1791 = vmatpush3.bf16.msra.mxu0 %v3481_v10 }
 0x1a2   : > { %1813 = vmatpush3.bf16.msra.mxu1 %v3107_v58  ;;  %1792 = vmatprep.subr.bf16.mxu0 %v3123_v0 }
 0x1a3   : > { %1814 = vmatprep.subr.bf16.mxu1 %v3125_v47  ;;  %v809_v47 = vld [vmem:[#allocation2] sm:$0xff] }
 0x1a5   : > { %1793 = vmatpush3.bf16.msra.mxu0 %v3127_v56 }
 0x1a6   : > { %1815 = vmatpush3.bf16.msra.mxu1 %v3131_v40 }
 0x1a8   : > { %1701 = vmatmul.mubr.msk.bf16.vlgmr.msra.gmra.mrb[4].mxu0 %vm3157_vm11, %v2378_v39 }
 0x1a9   : > { %1705 = vmatmul.mubr.msk.bf16.vlgmr.msra.gmra.mrb[4].mxu1 %vm3163_vm12, %v2378_v39 }
 0x25b   : > { %v1750_v16 = vpop.f32.mrb[0].mxu0 }
 0x25c   : > { %v1772_v17 = vpop.f32.mrb[0].mxu1  ;;  %v1751_v41 = vpop.f32.mrb[1].mxu0 }
 0x25d   : > { %v1752_v44 = vadd.f32 %v1751_v41, %v1750_v16  ;;  %v1773_v45 = vpop.f32.mrb[1].mxu1  ;;  %v1753_v49 = vpop.f32.mrb[2].mxu0 }
 0x25e   : > { %v1774_v12 = vadd.f32 %v1773_v45, %v1772_v17  ;;  %v1775_v18 = vpop.f32.mrb[2].mxu1  ;;  %v1754_v19 = vpop.f32.mrb[3].mxu0 }
 0x25f   : > { %v1755_v23 = vadd.f32 %v1754_v19, %v1753_v49  ;;  %v1776_v51 = vpop.f32.mrb[3].mxu1 }
 0x260   : > { %v887_v54 = vadd.f32 %v1774_v12, %v1752_v44  ;;  %v1777_v55 = vadd.f32 %v1776_v51, %v1775_v18 }
 0x262   : > { %v890_v59 = vadd.f32 %v1777_v55, %v1755_v23 }
 0x27b   : > { %v1794_v32 = vpop.f32.mrb[4].mxu0 }
 0x27c   : > { %v1816_v33 = vpop.f32.mrb[4].mxu1  ;;  %v1795_v34 = vpop.f32.mrb[5].mxu0 }
 0x27d   : > { %v1796_v37 = vadd.f32 %v1795_v34, %v1794_v32  ;;  %v1817_v20 = vpop.f32.mrb[5].mxu1  ;;  %v1797_v21 = vpop.f32.mrb[6].mxu0 }
 0x27e   : > { %v1818_v22 = vadd.f32 %v1817_v20, %v1816_v33  ;;  %v1819_v14 = vpop.f32.mrb[6].mxu1  ;;  %v1798_v7 = vpop.f32.mrb[7].mxu0 }
 0x27f   : > { %v928_v15 = vadd.f32 %v1796_v37, %v887_v54  ;;  %v1799_v0 = vadd.f32 %v1798_v7, %v1797_v21  ;;  %v1820_v58 = vpop.f32.mrb[7].mxu1 }
 0x280   : > { %v1821_v56 = vadd.f32 %v1820_v58, %v1819_v14 }
 0x281   : > { %v969_v40 = vadd.f32 %v1818_v22, %v928_v15  ;;  %v931_v42 = vadd.f32 %v1799_v0, %v890_v59 }
 0x283   : > { %v975_v61 = vadd.f32 %v969_v40, %v809_v47  ;;  %v972_v3 = vadd.f32 %v1821_v56, %v931_v42 }
 0x285   : > { %978 = vst.msk [vmem:[#allocation2] sm:$0xff] %vm493_vm0, %v975_v61  ;;  %v976_v4 = vadd.f32 %v972_v3, %v810_v60 }
 0x287   : > { %979 = vst.msk [vmem:[#allocation2 + $0x8] sm:$0xff] %vm493_vm0, %v976_v4 }
 0x288 PF: > { %v983_v1 = vld [vmem:[%s411_s11] sm:$0xff]  ;;  %v2379_v2 = vmov 0   ;;  %v984_v26 = vld [vmem:[%s411_s11 + $0x8] sm:$0xff]  ;;  %v2380_v9 = vmov 683565275   ;;  %s3482_s28 = sld [smem:[#allocation38_spill]] }
 0x289   : > { %2007 = vset.pattern.permute.xlu0 %v2379_v2  ;;  %v1423_v25 = vld [vmem:[%s420_s1] sm:$0xff]  ;;  %2008 = vset.pattern.permute.xlu1 %v2379_v2  ;;  %v1424_v27 = vld [vmem:[%s420_s1 + $0x8] sm:$0xff]  ;;  %v2381_v41 = vmov 2475754826   ;;  %v2382_v45 = vmov 2131351028  }
 0x28a   : > { %988 = vperm.xlu0 %2007, %v983_v1   ;;  %1431 = vperm.xlu1 %2008, %v1423_v25   ;;  %v1441_v30 = vsub.f32 1.0, %v1423_v25  ;;  %v1442_v48 = vsub.f32 1.0, %v1424_v27  ;;  %v1706_v50 = vld [vmem:[#allocation15] ss:$0 sm:$0xff]  ;;  %v2383_v12 = vmov 2102212464  }
 0x28b   : > { %v2384_v19 = vmov 920167782   ;;  %v2385_v33 = vmov 1326507024   ;;  %s1481_s17 = sshll.u32 %s2940_s5, 4  ;;  %s3483_s7 = sld [smem:[#allocation54_spill]]  ;;  %s3291_s17 = int_to_ptr.vmem [resolvable:$true] %s1481_s17 }
 0x28c   : > { %s3297_s15 = scalar_lea.sflag [#allocation8], %s409_s22  ;;  %s2213_s6 = scalar_lea.vmem %s3291_s17, 256 }
 0x28d   : > { %p2214_p13 = scmp.ne.s32.totalorder %s3291_s17, %s2213_s6  ;;  %p3484_p7 = scmp.ne.s32.totalorder %s3450_s21, 0 }
 0x28e   : > { %993 = vperm.xlu0 %2007, %v984_v26   ;;  %1436 = vperm.xlu1 %2008, %v1424_v27   ;;  %s1733_s0 = sshll.u32 %s3482_s28, 8  ;;  %s2386_s16 = smov [#allocation17]  }
 0x28f   : > { %p2215_p5 = pnand %p2214_p13, %p3484_p7  ;;  %s2217_s26 = sshll.u32 %s2386_s16, 4  ;;  %s2218_s26 = int_to_ptr.vmem [resolvable:$false] %s2217_s26 }
 0x290   : > { %s2219_s19 = scalar_lea.vmem %s2218_s26, 512  ;;  %p2220_p2 = scmp.lt.s32.totalorder %s3291_s17, %s2218_s26 }
 0x291   : > { %s3289_s24 = scalar_lea.hbm %s3483_s7, %s1733_s0  ;;  %p2216_p6 = pneg %p2215_p5 }
 0x292   : > { %1446 = vperm.xlu0 %2007, %v1441_v30   ;;  %1451 = vperm.xlu1 %2008, %v1442_v48   ;;  %p2221_p8 = scmp.lt.s32.totalorder %s2219_s19, %s2213_s6 }
 0x294   : > { %p2222_p1 = por %p2221_p8, %p2220_p2 }
 0x296   : > { %p2223_p3 = pnand %p2222_p1, %p2216_p6 }
 0x309   : > { %v989_v52 = vpop.permute.xlu0 %988 }
 0x30a   : > { %v3215_v53 = vmul.f32 %v1706_v50, %v989_v52 }
 0x30c   : > { %v1007_v6 = vand.u32 2147483647, %v3215_v53  ;;  %v1010_v43 = vand.u32 2139095040, %v3215_v53  ;;  %vm1009_vm12 = vcmp.lt.s32.totalorder %v3215_v53, 0 }
 0x30d   : > { %v994_v46 = vpop.permute.xlu0 %993 }
 0x30e   : > { %v1011_v31 = vshrl.u32 %v1010_v43, 23  ;;  %v3219_v8 = vmul.f32 %v1706_v50, %v994_v46  ;;  %v1014_v11 = vand.u32 8388607, %v1007_v6 }
 0x310   : > { %v1707_v28 = vadd.s32 4294967169, %v1011_v31  ;;  %v1114_v24 = vand.u32 2139095040, %v3219_v8  ;;  %v1015_v36 = vor.u32 8388608, %v1014_v11  ;;  %v1111_v62 = vand.u32 2147483647, %v3219_v8 }
 0x312   : > { %v1017_v35 = vadd.s32 1, %v1707_v28  ;;  %v1115_v38 = vshrl.u32 %v1114_v24, 23  ;;  %v3225_v39 = vshll.u32 %v1015_v36, 8  ;;  %v1118_v16 = vand.u32 8388607, %v1111_v62 }
 0x314   : > { %vm1018_vm13 = vcmp.gt.s32.totalorder %v1017_v35, 0  ;;  %v1711_v57 = vadd.s32 4294967169, %v1115_v38  ;;  %v1119_v60 = vor.u32 8388608, %v1118_v16 }
 0x315   : > { %v1019_v63 = vsel %vm1018_vm13, %v1017_v35, 0  ;;  %vm1008_vm13 = vcmp.le.f32.partialorder %v1007_v6, 0.7853982 }
 0x316   : > { %v1020_v29 = vshrl.u32 %v1019_v63, 5  ;;  %v1021_v13 = vand.u32 31, %v1019_v63  ;;  %v1121_v17 = vadd.s32 1, %v1711_v57  ;;  %v1159_v43 = vshll.u32 %v1119_v60, 8 }
 0x318   : > { %v1022_v5 = vsub.s32 32, %v1021_v13  ;;  %v1024_v10 = vshll.u32 %v2380_v9, %v1021_v13  ;;  %v1027_v44 = vshll.u32 %v2381_v41, %v1021_v13  ;;  %v1030_v49 = vshll.u32 %v2382_v45, %v1021_v13 }
 0x319   : > { %v1033_v18 = vshll.u32 %v2383_v12, %v1021_v13  ;;  %v1036_v23 = vshll.u32 %v2384_v19, %v1021_v13  ;;  %vm1039_vm14 = vcmp.lt.s32.totalorder %v1020_v29, 1  ;;  %vm1041_vm15 = vcmp.lt.s32.totalorder %v1020_v29, 3 }
 0x31a   : > { %v1025_v51 = vshrl.u32 %v2381_v41, %v1022_v5  ;;  %v1028_v54 = vshrl.u32 %v2382_v45, %v1022_v5  ;;  %v1031_v55 = vshrl.u32 %v2383_v12, %v1022_v5  ;;  %v1023_v59 = vshrl.u32 %v2380_v9, %v1022_v5 }
 0x31b   : > { %v1034_v32 = vshrl.u32 %v2384_v19, %v1022_v5  ;;  %v1037_v34 = vshrl.u32 %v2385_v33, %v1022_v5  ;;  %vm1122_vm1 = vcmp.gt.s32.totalorder %v1121_v17, 0  ;;  %vm1042_vm2 = vcmp.lt.s32.totalorder %v1020_v29, 4 }
 0x31c   : > { %v1026_v37 = vor.u32 %v1025_v51, %v1024_v10  ;;  %v1029_v20 = vor.u32 %v1028_v54, %v1027_v44  ;;  %v1032_v21 = vor.u32 %v1031_v55, %v1030_v49  ;;  %v1123_v7 = vsel %vm1122_vm1, %v1121_v17, 0 }
 0x31d   : > { %v1035_v22 = vor.u32 %v1034_v32, %v1033_v18  ;;  %v1038_v14 = vor.u32 %v1037_v34, %v1036_v23  ;;  %vm1040_vm3 = vcmp.lt.s32.totalorder %v1020_v29, 2  ;;  %v1125_v4 = vand.u32 31, %v1123_v7 }
 0x31e   : > { %v1043_v15 = vsel %vm1039_vm14, %v1023_v59, %v1026_v37  ;;  %v1044_v0 = vsel %vm1042_vm2, %v1032_v21, 2102212464  ;;  %v1047_v58 = vsel %vm1039_vm14, %v1026_v37, %v1029_v20  ;;  %v1051_v47 = vsel %vm1039_vm14, %v1029_v20, %v1032_v21 }
 0x31f   : > { %v1045_v56 = vsel %vm1041_vm15, %v1029_v20, %v1044_v0  ;;  %v1048_v40 = vsel %vm1042_vm2, %v1035_v22, 920167782  ;;  %v1052_v42 = vsel %vm1042_vm2, %v1038_v14, 1326507024  ;;  %v1124_v50 = vshrl.u32 %v1123_v7, 5 }
 0x320   : > { %v1049_v61 = vsel %vm1041_vm15, %v1032_v21, %v1048_v40  ;;  %v1053_v3 = vsel %vm1041_vm15, %v1035_v22, %v1052_v42  ;;  %v1046_v1 = vsel %vm1040_vm3, %v1043_v15, %v1045_v56  ;;  %v1126_v52 = vsub.s32 32, %v1125_v4 }
 0x321   : > { %v1050_v2 = vsel %vm1040_vm3, %v1047_v58, %v1049_v61  ;;  %v1054_v25 = vsel %vm1040_vm3, %v1051_v47, %v1053_v3  ;;  %v1062_v46 = vmul.u32 %v3225_v39, %v1046_v1  ;;  %v1128_v31 = vshll.u32 %v2380_v9, %v1125_v4 }
 0x322   : > { %v3238_v26 = vmul.u32.u64.low %v3225_v39, %v1054_v25  ;;  %v3239_v27 = vmul.u32.u64.high %v3225_v39, %v1054_v25, %v3238_v26  ;;  %v3242_v30 = vmul.u32.u64.low %v3225_v39, %v1050_v2  ;;  %v3243_v48 = vmul.u32.u64.high %v3225_v39, %v1050_v2, %v3242_v30 }
 0x323   : > { %v1131_v11 = vshll.u32 %v2381_v41, %v1125_v4  ;;  %v1134_v28 = vshll.u32 %v2382_v45, %v1125_v4  ;;  %v1129_v24 = vshrl.u32 %v2381_v41, %v1126_v52  ;;  %v1132_v35 = vshrl.u32 %v2382_v45, %v1126_v52 }
 0x324   : > { %v1135_v36 = vshrl.u32 %v2383_v12, %v1126_v52  ;;  %v1137_v38 = vshll.u32 %v2383_v12, %v1125_v4  ;;  %vm1064_vm4 = vc.u32 %v3239_v27, %v3242_v30  ;;  %v1065_v63 = vadd.s32 1, %v3243_v48 }
 0x325   : > { %v1138_v57 = vshrl.u32 %v2384_v19, %v1126_v52  ;;  %v1140_v29 = vshll.u32 %v2384_v19, %v1125_v4  ;;  %v1130_v13 = vor.u32 %v1129_v24, %v1128_v31  ;;  %v1133_v5 = vor.u32 %v1132_v35, %v1131_v11 }
 0x326   : > { %v1136_v10 = vor.u32 %v1135_v36, %v1134_v28  ;;  %v1141_v16 = vshrl.u32 %v2385_v33, %v1126_v52  ;;  %v1066_v39 = vsel %vm1064_vm4, %v1065_v63, %v3243_v48  ;;  %vm1143_vm5 = vcmp.lt.s32.totalorder %v1124_v50, 1 }
 0x327   : > { %v1139_v17 = vor.u32 %v1138_v57, %v1137_v38  ;;  %vm1146_vm6 = vcmp.lt.s32.totalorder %v1124_v50, 4  ;;  %v1067_v41 = vadd.s32 %v1066_v39, %v1062_v46  ;;  %vm1145_vm7 = vcmp.lt.s32.totalorder %v1124_v50, 3 }
 0x328   : > { %v1142_v44 = vor.u32 %v1141_v16, %v1140_v29  ;;  %v1148_v45 = vsel %vm1146_vm6, %v1136_v10, 2102212464  ;;  %v1127_v49 = vshrl.u32 %v2380_v9, %v1126_v52  ;;  %v1151_v12 = vsel %vm1143_vm5, %v1130_v13, %v1133_v5 }
 0x329   : > { %v1152_v18 = vsel %vm1146_vm6, %v1139_v17, 920167782  ;;  %v1155_v23 = vsel %vm1143_vm5, %v1133_v5, %v1136_v10  ;;  %v1068_v51 = vadd.s32 536870912, %v1067_v41  ;;  %vm1144_vm8 = vcmp.lt.s32.totalorder %v1124_v50, 2 }
 0x32a   : > { %v1153_v19 = vsel %vm1145_vm7, %v1136_v10, %v1152_v18  ;;  %v1156_v54 = vsel %vm1146_vm6, %v1142_v44, 1326507024  ;;  %v1147_v55 = vsel %vm1143_vm5, %v1127_v49, %v1130_v13  ;;  %v1149_v59 = vsel %vm1145_vm7, %v1133_v5, %v1148_v45 }
 0x32b   : > { %v1154_v32 = vsel %vm1144_vm8, %v1151_v12, %v1153_v19  ;;  %v1157_v33 = vsel %vm1145_vm7, %v1139_v17, %v1156_v54  ;;  %v1069_v34 = vshrl.u32 %v1068_v51, 30  ;;  %v1150_v7 = vsel %vm1144_vm8, %v1147_v55, %v1149_v59 }
 0x32c   : > { %v1158_v37 = vsel %vm1144_vm8, %v1155_v23, %v1157_v33  ;;  %v3253_v20 = vmul.u32.u64.low %v1159_v43, %v1154_v32  ;;  %v3254_v21 = vmul.u32.u64.high %v1159_v43, %v1154_v32, %v3253_v20  ;;  %v1166_v58 = vmul.u32 %v1159_v43, %v1150_v7 }
 0x32d   : > { %v3256_v22 = vmul.u32.u64.low %v1159_v43, %v1158_v37  ;;  %v3257_v14 = vmul.u32.u64.high %v1159_v43, %v1158_v37, %v3256_v22  ;;  %v1070_v9 = vshll.u32 %v1069_v34, 30  ;;  %v1063_v26 = vadd.s32 %v3242_v30, %v3239_v27 }
 0x32e   : > { %v1169_v0 = vadd.s32 1, %v3254_v21  ;;  %v1093_v13 = vsub.s32 4, %v1069_v34  ;;  %v1004_v55 = vlaneseq  ;;  %vm1113_vm14 = vcmp.lt.s32.totalorder %v3219_v8, 0 }
 0x32f   : > { %v1071_v15 = vsub.s32 %v1067_v41, %v1070_v9  ;;  %vm1168_vm9 = vc.u32 %v3257_v14, %v3253_v20  ;;  %v1167_v27 = vadd.s32 %v3253_v20, %v3257_v14  ;;  %vm1112_vm15 = vcmp.le.f32.partialorder %v1111_v62, 0.7853982 }
 0x330   : > { %v1170_v56 = vsel %vm1168_vm9, %v1169_v0, %v3254_v21  ;;  %v1094_v45 = vsel %vm1009_vm12, %v1093_v13, %v1069_v34  ;;  %v3269_v20 = vand.u32 127, %v1004_v55  ;;  %vm1099_vm8 = vweird.f32 %v3215_v53  ;;  %v1426_v13 = vld [vmem:[#allocation2 + $0x8] sm:$0xff] }
 0x331   : > { %v1073_v47 = vsub.s32 0, %v1071_v15  ;;  %v1171_v40 = vadd.s32 %v1170_v56, %v1166_v58  ;;  %v1096_v51 = vsel %vm1008_vm13, 0, %v1094_v45 }
 0x332   : > { %v1100_v59 = vadd.s32 3, %v1096_v51  ;;  %v1308_v6 = vand.u32 3, %v1096_v51  ;;  %vm1006_vm1 = vcmp.lt.s32.totalorder %v3269_v20, 32 }
 0x333   : > { %v1708_v42 = vmin.u32 %v1073_v47, %v1071_v15  ;;  %v1172_v60 = vadd.s32 536870912, %v1171_v40 }
 0x334   : > { %v1101_v34 = vand.u32 3, %v1100_v59  ;;  %vm1313_vm2 = vcmp.eq.s32.totalorder %v1308_v6, 2  ;;  %vm1310_vm5 = vcmp.eq.s32.totalorder %v1308_v6, 0  ;;  %vm1309_vm7 = vcmp.lt.s32.totalorder %v1308_v6, 2 }
 0x335   : > { %v1075_v61 = vclz %v1708_v42  ;;  %v1173_v3 = vshrl.u32 %v1172_v60, 30  ;;  %v1425_v42 = vld [vmem:[#allocation2] sm:$0xff] }
 0x336   : > { %vm1106_vm3 = vcmp.eq.s32.totalorder %v1101_v34, 2  ;;  %vm1103_vm4 = vcmp.eq.s32.totalorder %v1101_v34, 0  ;;  %vm1102_vm6 = vcmp.lt.s32.totalorder %v1101_v34, 2 }
 0x337   : > { %v1709_v4 = vadd.s32 4294967294, %v1075_v61  ;;  %v1174_v1 = vshll.u32 %v1173_v3, 30  ;;  %v1197_v33 = vsub.s32 4, %v1173_v3 }
 0x339   : > { %vm1710_vm10 = vcmp.lt.s32.totalorder %v1709_v4, 0  ;;  %v1175_v25 = vsub.s32 %v1171_v40, %v1174_v1  ;;  %v1198_v22 = vsel %vm1113_vm14, %v1197_v33, %v1173_v3 }
 0x33a   : > { %v1078_v2 = vsel %vm1710_vm10, 0, %v1709_v4  ;;  %v1200_v58 = vsel %vm1112_vm15, 0, %v1198_v22  ;;  %v1432_v4 = vpop.permute.xlu1 %1431 }
 0x33b   : > { %v1079_v48 = vsub.s32 32, %v1078_v2  ;;  %v1083_v50 = vsub.s32 4294967266, %v1078_v2  ;;  %v1177_v52 = vsub.s32 0, %v1175_v25  ;;  %v1080_v43 = vshll.u32 %v1071_v15, %v1078_v2 }
 0x33c   : > { %v1204_v3 = vadd.s32 3, %v1200_v58 }
 0x33d   : > { %v1081_v46 = vshrl.u32 %v1063_v26, %v1079_v48  ;;  %v1084_v31 = vadd.s32 127, %v1083_v50  ;;  %v1712_v11 = vmin.u32 %v1177_v52, %v1175_v25  ;;  %v1447_v26 = vpop.permute.xlu0 %1446 }
 0x33e   : > { %v1205_v52 = vand.u32 3, %v1204_v3 }
 0x33f   : > { %v1082_v28 = vor.u32 %v1081_v46, %v1080_v43  ;;  %v1085_v24 = vshll.u32 %v1084_v31, 23  ;;  %v1179_v35 = vclz %v1712_v11  ;;  %v1411_v43 = vand.u32 3, %v1200_v58 }
 0x340   : > { %vm1210_vm9 = vcmp.eq.s32.totalorder %v1205_v52, 2 }
 0x341   : > { %v1086_v36 = vor.u32 4788187, %v1085_v24  ;;  %v1713_v38 = vadd.s32 4294967294, %v1179_v35  ;;  %v1089_v57 = vcvt.s32.f32 %v1082_v28  ;;  %v1437_v24 = vpop.permute.xlu1 %1436  ;;  %vm1416_vm10 = vcmp.eq.s32.totalorder %v1411_v43, 2 }
 0x343   : > { %v1087_v63 = vand.u32 2147483647, %v1086_v36  ;;  %vm1714_vm11 = vcmp.lt.s32.totalorder %v1713_v38, 0 }
 0x344   : > { %v1182_v5 = vsel %vm1714_vm11, 0, %v1713_v38  ;;  %vm1207_vm11 = vcmp.eq.s32.totalorder %v1205_v52, 0 }
 0x345   : > { %v1090_v29 = vmul.f32 %v1089_v57, %v1087_v63  ;;  %v1183_v30 = vsub.s32 32, %v1182_v5  ;;  %v1187_v10 = vsub.s32 4294967266, %v1182_v5  ;;  %v1184_v39 = vshll.u32 %v1175_v25, %v1182_v5  ;;  %v1723_v25 = vld [vmem:[#allocation14] ss:$0 sm:$0xff] }
 0x346   : > { %v1460_v46 = vmul.f32 %v1723_v25, %v1447_v26 }
 0x347   : > { %v1091_v16 = vxor.u32 2147483648, %v1090_v29  ;;  %v1185_v17 = vshrl.u32 %v1167_v27, %v1183_v30  ;;  %v1188_v41 = vadd.s32 127, %v1187_v10 }
 0x349   : > { %v1092_v44 = vsel %vm1009_vm12, %v1091_v16, %v1090_v29  ;;  %v1186_v12 = vor.u32 %v1185_v17, %v1184_v39  ;;  %v1189_v18 = vshll.u32 %v1188_v41, 23  ;;  %vm1413_vm12 = vcmp.eq.s32.totalorder %v1411_v43, 0  ;;  %v1452_v39 = vpop.permute.xlu1 %1451 }
 0x34a   : > { %v1095_v49 = vsel %vm1008_vm13, %v3215_v53, %v1092_v44  ;;  %vm1206_vm13 = vcmp.lt.s32.totalorder %v1205_v52, 2  ;;  %v1461_v44 = vmul.f32 %v1723_v25, %v1452_v39 }
 0x34b   : > { %2009 = vcosq.f32 %v1095_v49  ;;  %v1190_v23 = vor.u32 4788187, %v1189_v18  ;;  %v1193_v54 = vcvt.s32.f32 %v1186_v12 }
 0x34c   : > { %2011 = vsinq.f32 %v1095_v49 }
 0x34d   : > { %v1191_v19 = vand.u32 2147483647, %v1190_v23 }
 0x34f   : > { %v1194_v32 = vmul.f32 %v1193_v54, %v1191_v19 }
 0x351   : > { %v1195_v37 = vxor.u32 2147483648, %v1194_v32 }
 0x353   : > { %v1196_v21 = vsel %vm1113_vm14, %v1195_v37, %v1194_v32  ;;  %vm1412_vm14 = vcmp.lt.s32.totalorder %v1411_v43, 2 }
 0x354   : > { %v1199_v9 = vsel %vm1112_vm15, %v3219_v8, %v1196_v21  ;;  %vm1203_vm15 = vweird.f32 %v3219_v8 }
 0x355   : > { %v2010_v14 = vpop.eup %2009  ;;  %2013 = vcosq.f32 %v1199_v9 }
 0x356   : > { %v2012_v7 = vpop.eup %2011  ;;  %v1107_v15 = vxor.u32 2147483648, %v2010_v14  ;;  %2015 = vsinq.f32 %v1199_v9 }
 0x357   : > { %v1104_v0 = vxor.u32 2147483648, %v2012_v7 }
 0x358   : > { %v1108_v47 = vsel %vm1106_vm3, %v1107_v15, %v2012_v7  ;;  %v1315_v56 = vsel %vm1313_vm2, %v1107_v15, %v2012_v7 }
 0x359   : > { %v1105_v62 = vsel %vm1103_vm4, %v2010_v14, %v1104_v0  ;;  %v1312_v40 = vsel %vm1310_vm5, %v2010_v14, %v1104_v0 }
 0x35a   : > { %v1109_v60 = vsel %vm1102_vm6, %v1105_v62, %v1108_v47  ;;  %v1316_v61 = vsel %vm1309_vm7, %v1312_v40, %v1315_v56 }
 0x35b   : > { %v1110_v1 = vsel %vm1099_vm8, nan, %v1109_v60  ;;  %v1317_v2 = vsel %vm1099_vm8, nan, %v1316_v61 }
 0x35c   : > { %v1421_v48 = vsel %vm1006_vm1, %v1110_v1, %v1317_v2 }
 0x35d   : > { %v1427_v50 = vadd.f32 %v1425_v42, %v1421_v48 }
 0x35f   : > { %v1439_v31 = vmul.f32 %v1432_v4, %v1427_v50  ;;  %v2014_v11 = vpop.eup %2013 }
 0x360   : > { %v2016_v28 = vpop.eup %2015  ;;  %v1211_v35 = vxor.u32 2147483648, %v2014_v11 }
 0x361   : > { %v1462_v53 = vadd.f32 %v1460_v46, %v1439_v31  ;;  %v1208_v36 = vxor.u32 2147483648, %v2016_v28 }
 0x362   : > { %v1212_v38 = vsel %vm1210_vm9, %v1211_v35, %v2016_v28  ;;  %v1418_v63 = vsel %vm1416_vm10, %v1211_v35, %v2016_v28 }
 0x363   : > { %1465 = vst.msk [vmem:[%s2940_s5] sm:$0xff] %vm493_vm0, %v1462_v53  ;;  %v1209_v57 = vsel %vm1207_vm11, %v2014_v11, %v1208_v36  ;;  %v1415_v29 = vsel %vm1413_vm12, %v2014_v11, %v1208_v36 }
 0x364   : > { %v1213_v5 = vsel %vm1206_vm13, %v1209_v57, %v1212_v38  ;;  %v1419_v27 = vsel %vm1412_vm14, %v1415_v29, %v1418_v63 }
 0x365   : > { %v1214_v30 = vsel %vm1203_vm15, nan, %v1213_v5  ;;  %v1420_v10 = vsel %vm1203_vm15, nan, %v1419_v27 }
 0x366   : > { %v1422_v16 = vsel %vm1006_vm1, %v1214_v30, %v1420_v10 }
 0x367   : > { %v1428_v17 = vadd.f32 %v1426_v13, %v1422_v16 }
 0x369   : > { %v1440_v41 = vmul.f32 %v1437_v24, %v1428_v17 }
 0x36b   : > { %v1463_v8 = vadd.f32 %v1461_v44, %v1440_v41 }
 0x36d   : > { %1466 = vst.msk [vmem:[%s2940_s5 + $0x8] sm:$0xff] %vm493_vm0, %v1463_v8 }
 0x36e   : > { %2226 = shalt.err (!%p2223_p3)
}
 0x36f   : > { %s2227_s10 = scalar_lea.hbm %s3289_s24, 256  ;;  %s2231_s11 = scalar_lea.hbm %s3483_s7, 512 }
 0x370   : > { %p2228_p10 = scmp.ne.s32.totalorder %s3289_s24, %s2227_s10  ;;  %p2232_p9 = scmp.lt.u32.totalorder %s3289_s24, %s3483_s7 }
 0x371   : > { %p2233_p12 = scmp.lt.u32.totalorder %s2231_s11, %s2227_s10  ;;  %p2235_p13 = scmp.lt.u32.totalorder %s2227_s10, %s3289_s24 }
 0x372   : > { %p2229_p4 = pnand %p2228_p10, %p3484_p7 }
 0x373   : > { %p2234_p11 = por %p2233_p12, %p2232_p9 }
 0x374   : > { %p2230_p0 = pneg %p2229_p4 }
 0x375   : > { %p2236_p5 = por %p2235_p13, %p2234_p11 }
 0x377   : > { %p2237_p6 = pnand %p2236_p5, %p2230_p0 }
 0x379   : > { %2240 = shalt.err (!%p2237_p6)
}
 0x37a   : > { %s2387_s3 = smov 128   ;;  %s2388_s14 = smov 8  }
 0x37b   : > { %1854 = dma.vmem_to_hbm [thread:$0]  (%p3484_p7), %s3291_s17, 256, %s3289_s24, %s3297_s15, %s2387_s3, %s2387_s3, %s2388_s14  }
 0x37c PF: > { %s3485_s5 = sld [smem:[#allocation34_spill]]  ;;  %s3486_s20 = sld [smem:[#allocation41_spill]] }
 0x37d   : > { %p3488_p8 = scmp.ge.s32.totalorder %s2365_s12, 2 }
 0x382   : > { %s1496_s13 = sand.u32 1, %s3485_s5   ;;  %p3487_p2 = scmp.ne.s32.totalorder %s3486_s20, 0 }
 0x383   : > { %s1497_s28 = scalar_lea.sflag [#allocation8], %s1496_s13 }
 0x384   : > { %p1885_p1 = pnand %p3488_p8, %p3487_p2 }
 0x386   : > { %2316 = dma.done.wait (!%p1885_p1), %s1497_s28, 256  }
 0x387   : > { %2318 = vsyncadd (!%p1885_p1), %s1497_s28, 4294967040  ;;  %s37_s12 = sadd.s32 1, %s2365_s12   ;;  %s3489_s18 = sld [smem:[#allocation35_spill]] }
 0x388   : > { %p34_p3 = scmp.ge.s32.totalorder %s37_s12, 4   ;;  %s3490_s26 = sld [smem:[#allocation47_spill]] }
 0x389   : > { %s3491_s27 = sld [smem:[#allocation36_spill]]  ;;  %s3492_s1 = sld [smem:[#allocation37_spill]] }
 0x38a   : > { %s3493_s28 = sld [smem:[#allocation45_spill]]  ;;  %s3494_s21 = sld [smem:[#allocation46_spill]] }
 0x38b   : > { %s3495_s10 = sld [smem:[#allocation39_spill]]  ;;  %s3496_s11 = sld [smem:[#allocation43_spill]] }
 0x38c   : > { %s3497_s0 = smov %s2325_s25  ;;  %s3499_s29 = smov %s2349_s30 }
 0x38d   : > { %s3498_s25 = smov %s3489_s18  ;;  %s3500_s30 = smov %s2353_s9 }
 0x38e   :  { %36 = sbr.rel (!%p34_p3) target bundleno = 34 (0x22), region = 146 }
 0x390   : > { %s3501_s9 = smov %s3494_s21 }
 0x395   :  { %1502 = vsyncpa [#allocation7], 1 }
 0x396   :  { %1504 = vsyncpa [#allocation7 + $0x1], 1 }
 0x397   :  { %1505 = vsyncpa [#allocation10], 1 }
 0x398   :  { %1507 = vsyncpa [#allocation10 + $0x1], 1 }
 0x399   :  { %1508 = vsyncpa [#allocation13], 1 }
 0x39a   :  { %1510 = vsyncpa [#allocation13 + $0x1], 1 }
 0x39b   :  { %1511 = vsyncpa [#allocation16], 1 }
 0x39c   :  { %1512 = vsyncpa [#allocation8], 1 }
 0x39d   :  { %1514 = vsyncpa [#allocation8 + $0x1], 1 }

// kernel: _device_forward.3
= control target key start
LH: loop header
LB: loop body
LE: loop exit
PB: predicated region body
PF: predicated region fallthrough
CT: control target
= control target key end

     0   :  { %s3917_s0 = inlined_call_operand.hbm [shape: f32[2,16,64], index: 0, kind: input, shape index: {}]   ;;  %s3918_s1 = inlined_call_operand.hbm [shape: f32[2,1,64], index: 1, kind: input, shape index: {}]   ;;  %s3919_s2 = inlined_call_operand.hbm [shape: f32[2,1,64], index: 2, kind: input, shape index: {}]   ;;  %s3920_s3 = inlined_call_operand.hbm [shape: bf16[2,64,192], index: 3, kind: input, shape index: {}]   ;;  %s3921_s4 = inlined_call_operand.hbm [shape: f32[2,1,192], index: 4, kind: input, shape index: {}]   ;;  %s3922_s5 = inlined_call_operand.hbm [shape: bf16[2,64,64], index: 5, kind: input, shape index: {}]   ;;  %s3923_s6 = inlined_call_operand.hbm [shape: f32[2,1,64], index: 6, kind: input, shape index: {}]   ;;  %s3924_s7 = inlined_call_operand.hbm [shape: f32[2,1,64], index: 7, kind: input, shape index: {}]   ;;  %s3925_s8 = inlined_call_operand.hbm [shape: f32[2,1,64], index: 8, kind: input, shape index: {}]   ;;  %s3926_s9 = inlined_call_operand.hbm [shape: bf16[2,64,256], index: 9, kind: input, shape index: {}]   ;;  %s3927_s10 = inlined_call_operand.hbm [shape: f32[2,1,256], index: 10, kind: input, shape index: {}]   ;;  %s3928_s11 = inlined_call_operand.hbm [shape: bf16[2,256,64], index: 11, kind: input, shape index: {}]   ;;  %s3929_s12 = inlined_call_operand.hbm [shape: f32[2,1,64], index: 12, kind: input, shape index: {}]   ;;  %s3930_s13 = inlined_call_operand.hbm [shape: f32[2,16,64], index: 13, kind: output, shape index: {}]  }
   0x1   :  { %3950 = sst [smem:[#allocation35_spill]] %s3918_s1 }
   0x2   :  { %3951 = sst [smem:[#allocation36_spill]] %s3920_s3 }
   0x3   :  { %3952 = sst [smem:[#allocation37_spill]] %s3922_s5 }
   0x4   :  { %3953 = sst [smem:[#allocation38_spill]] %s3924_s7 }
   0x5   :  { %3954 = sst [smem:[#allocation39_spill]] %s3926_s9 }
   0x6   :  { %3955 = sst [smem:[#allocation40_spill]] %s3930_s13 }
   0x7   :  { %18 = vsyncpa [#allocation3], 0 }
   0x8   :  { %19 = vsyncpa [#allocation6], 0 }
   0x9   :  { %20 = vsyncpa [#allocation9], 0 }
   0xa   :  { %21 = vsyncpa [#allocation12], 0 }
   0xb   :  { %22 = vsyncpa [#allocation15], 0 }
   0xc   :  { %23 = vsyncpa [#allocation18], 0 }
   0xd   :  { %24 = vsyncpa [#allocation21], 0 }
   0xe   :  { %25 = vsyncpa [#allocation4], 0  ;;  %s3231_s25 = smov 0   ;;  %s3233_s26 = smov 0  }
   0xf   :  { %s3235_s27 = smov 0  }
  0x10 LB: > { %3956 = sst [smem:[#allocation32_spill]] %s3121_s25  ;;  %s3131_s28 = smov [#allocation5]   ;;  %s3129_s27 = sphi %s3235_s27, %s31_s27   ;;  %s3125_s26 = sphi %s3233_s26, %s3985_s26   ;;  %s3121_s25 = sphi %s3231_s25, %s3984_s25  }
  0x11   : > { %3957 = sst [smem:[#allocation33_spill]] %s3129_s27  ;;  %s381_s29 = sshll.u32 %s3131_s28, 4  ;;  %s3255_s29 = int_to_ptr.vmem [resolvable:$true] %s381_s29 }
  0x12   : > { %s3931_s30 = sadd.s32 4294967295, %s3129_s27   ;;  %p2158_p0 = scmp.ge.s32.totalorder %s3129_s27, 1 }
  0x13   : > { %p352_p1 = scmp.lt.s32.totalorder %s3129_s27, 3  ;;  %p3251_p2 = scmp.eq.s32.totalorder %s3931_s30, 0 }
  0x14   : > { %s3132_s17 = smov [#allocation8]   ;;  %s3133_s19 = smov [#allocation11]  }
  0x15   : > { %s3958_s14 = scalar_select %p3251_p2, 1, 0 }
  0x16   : > { %p3257_p3 = pnand %p2158_p0, %p352_p1  ;;  %s407_s18 = sshll.u32 %s3132_s17, 4  ;;  %s3269_s18 = int_to_ptr.vmem [resolvable:$true] %s407_s18 }
  0x17   : > { %3959 = sst [smem:[#allocation34_spill]] %s3958_s14  ;;  %s433_s20 = sshll.u32 %s3133_s19, 4  ;;  %s3271_s20 = int_to_ptr.vmem [resolvable:$true] %s433_s20 }
  0x18   : > { %s3960_s15 = scalar_select %p3257_p3, 1, 0 }
  0x19   : > { %p2425_p4 = pneg %p3257_p3  ;;  %s3962_s1 = sld [smem:[#allocation35_spill]] }
  0x1b   : > { %p3265_p5 = pnand %p3251_p2, %p2425_p4 }
  0x1d   : > { %p3281_p7 = pneg %p3265_p5 }
  0x1f   : > { %s2685_s23 = scalar_lea.hbm %s3962_s1, 32 }
  0x20   : > { %p2686_p6 = scmp.ne.s32.totalorder %s3962_s1, %s2685_s23  ;;  %p2692_p10 = scmp.lt.u32.totalorder %s2685_s23, %s3962_s1 }
  0x22   : > { %p2688_p8 = pnand %p3281_p7, %p2686_p6 }
  0x24   : > { %p2689_p9 = pneg %p2688_p8 }
  0x26   : > { %p2694_p11 = pnand %p2692_p10, %p2689_p9 }
  0x28   : > { %2697 = shalt.err (!%p2694_p11)
}
  0x29   : > { %s2698_s21 = scalar_lea.vmem %s3255_s29, 32  ;;  %p2706_p1 = scmp.lt.s32.totalorder %s3255_s29, %s3255_s29 }
  0x2a   : > { %p2699_p12 = scmp.ne.s32.totalorder %s3255_s29, %s2698_s21  ;;  %p2707_p4 = scmp.lt.s32.totalorder %s2698_s21, %s2698_s21 }
  0x2c   : > { %p2701_p13 = pnand %p2699_p12, %p3281_p7  ;;  %p2708_p6 = por %p2707_p4, %p2706_p1 }
  0x2e   : > { %p2702_p0 = pneg %p2701_p13 }
  0x30   : > { %p2709_p8 = pnand %p2708_p6, %p2702_p0 }
  0x32   : > { %2712 = shalt.err (!%p2709_p8)
}
  0x33   : > { %s3937_s22 = smov 16   ;;  %s3943_s23 = smov 1  }
  0x34   : > { %2431 = dma.hbm_to_vmem [thread:$0]  (!%p3265_p5), %s3962_s1, 32, %s3255_s29, [#allocation6], %s3937_s22, %s3937_s22, %s3943_s23  }
  0x35   : > { %s3964_s3 = sld [smem:[#allocation36_spill]] }
  0x3b   : > { %s2713_s21 = scalar_lea.hbm %s3964_s3, 2048 }
  0x3c   : > { %p2714_p9 = scmp.ne.s32.totalorder %s3964_s3, %s2713_s21  ;;  %p2720_p12 = scmp.lt.u32.totalorder %s2713_s21, %s3964_s3 }
  0x3e   : > { %p2716_p10 = pnand %p2714_p9, %p3281_p7 }
  0x40   : > { %p2717_p11 = pneg %p2716_p10 }
  0x42   : > { %p2722_p13 = pnand %p2720_p12, %p2717_p11 }
  0x44   : > { %2725 = shalt.err (!%p2722_p13)
}
  0x45   : > { %s2726_s29 = scalar_lea.vmem %s3269_s18, 2048  ;;  %p2734_p6 = scmp.lt.s32.totalorder %s3269_s18, %s3269_s18 }
  0x46   : > { %p2727_p0 = scmp.ne.s32.totalorder %s3269_s18, %s2726_s29  ;;  %p2735_p8 = scmp.lt.s32.totalorder %s2726_s29, %s2726_s29 }
  0x48   : > { %p2729_p1 = pnand %p2727_p0, %p3281_p7  ;;  %p2736_p9 = por %p2735_p8, %p2734_p6 }
  0x4a   : > { %p2730_p4 = pneg %p2729_p1 }
  0x4c   : > { %p2737_p10 = pnand %p2736_p9, %p2730_p4 }
  0x4e   : > { %2740 = shalt.err (!%p2737_p10)
}
  0x4f   : > { %s3939_s13 = smov 128   ;;  %s3941_s25 = smov 8  }
  0x50   : > { %2437 = dma.hbm_to_vmem [thread:$0]  (!%p3265_p5), %s3964_s3, 2048, %s3269_s18, [#allocation9], %s3939_s13, %s3939_s13, %s3941_s25  }
  0x51   : > { %s3965_s5 = sld [smem:[#allocation37_spill]] }
  0x57   : > { %s2741_s17 = scalar_lea.hbm %s3965_s5, 1024 }
  0x58   : > { %p2742_p11 = scmp.ne.s32.totalorder %s3965_s5, %s2741_s17  ;;  %p2748_p0 = scmp.lt.u32.totalorder %s2741_s17, %s3965_s5 }
  0x5a   : > { %p2744_p12 = pnand %p2742_p11, %p3281_p7 }
  0x5c   : > { %p2745_p13 = pneg %p2744_p12 }
  0x5e   : > { %p2750_p1 = pnand %p2748_p0, %p2745_p13 }
  0x60   : > { %2753 = shalt.err (!%p2750_p1)
}
  0x61   : > { %s2754_s18 = scalar_lea.vmem %s3271_s20, 1024  ;;  %p2762_p9 = scmp.lt.s32.totalorder %s3271_s20, %s3271_s20 }
  0x62   : > { %p2755_p4 = scmp.ne.s32.totalorder %s3271_s20, %s2754_s18  ;;  %p2763_p10 = scmp.lt.s32.totalorder %s2754_s18, %s2754_s18 }
  0x64   : > { %p2757_p6 = pnand %p2755_p4, %p3281_p7  ;;  %p2764_p11 = por %p2763_p10, %p2762_p9 }
  0x66   : > { %p2758_p8 = pneg %p2757_p6 }
  0x68   : > { %p2765_p12 = pnand %p2764_p11, %p2758_p8 }
  0x6a   : > { %2768 = shalt.err (!%p2765_p12)
}
  0x6b   : > { %s3948_s27 = smov 64   ;;  %s3949_s22 = smov 4  }
  0x6c   : > { %2443 = dma.hbm_to_vmem [thread:$0]  (!%p3265_p5), %s3965_s5, 1024, %s3271_s20, [#allocation12], %s3948_s27, %s3948_s27, %s3949_s22  }
  0x6d   : > { %s3140_s28 = smov [#allocation14]   ;;  %s3141_s19 = smov [#allocation17]  }
  0x6e   : > { %s459_s17 = sshll.u32 %s3140_s28, 4  ;;  %s485_s21 = sshll.u32 %s3141_s19, 4  ;;  %s460_s17 = int_to_ptr.vmem [resolvable:$true] %s459_s17  ;;  %s3357_s21 = int_to_ptr.vmem [resolvable:$true] %s485_s21 }
  0x6f   : > { %s3966_s7 = sld [smem:[#allocation38_spill]] }
  0x75   : > { %s2769_s13 = scalar_lea.hbm %s3966_s7, 32 }
  0x76   : > { %p2770_p13 = scmp.ne.s32.totalorder %s3966_s7, %s2769_s13  ;;  %p2776_p4 = scmp.lt.u32.totalorder %s2769_s13, %s3966_s7 }
  0x78   : > { %p2772_p0 = pnand %p2770_p13, %p3281_p7 }
  0x7a   : > { %p2773_p1 = pneg %p2772_p0 }
  0x7c   : > { %p2778_p6 = pnand %p2776_p4, %p2773_p1 }
  0x7e   : > { %2781 = shalt.err (!%p2778_p6)
}
  0x7f   : > { %s2782_s24 = scalar_lea.vmem %s460_s17, 32  ;;  %p2790_p11 = scmp.lt.s32.totalorder %s460_s17, %s460_s17 }
  0x80   : > { %p2783_p8 = scmp.ne.s32.totalorder %s460_s17, %s2782_s24  ;;  %p2791_p12 = scmp.lt.s32.totalorder %s2782_s24, %s2782_s24 }
  0x82   : > { %p2785_p9 = pnand %p2783_p8, %p3281_p7  ;;  %p2792_p2 = por %p2791_p12, %p2790_p11 }
  0x84   : > { %p2786_p10 = pneg %p2785_p9 }
  0x86   : > { %p2793_p3 = pnand %p2792_p2, %p2786_p10 }
  0x88   : > { %2796 = shalt.err (!%p2793_p3)
}
  0x89   : > { %s3967_s23 = smov 1   ;;  %s3968_s25 = smov 16  }
  0x8a   : > { %2449 = dma.hbm_to_vmem [thread:$0]  (!%p3265_p5), %s3966_s7, 32, %s460_s17, [#allocation15], %s3968_s25, %s3968_s25, %s3967_s23  }
  0x8b   : > { %s3969_s9 = sld [smem:[#allocation39_spill]] }
  0x91   : > { %s2797_s18 = scalar_lea.hbm %s3969_s9, 2048 }
  0x92   : > { %p2798_p13 = scmp.ne.s32.totalorder %s3969_s9, %s2797_s18  ;;  %p2804_p0 = scmp.lt.u32.totalorder %s2797_s18, %s3969_s9 }
  0x94   : > { %p2800_p2 = pnand %p2798_p13, %p3281_p7 }
  0x96   : > { %p2801_p3 = pneg %p2800_p2 }
  0x98   : > { %p2806_p1 = pnand %p2804_p0, %p2801_p3 }
  0x9a   : > { %2809 = shalt.err (!%p2806_p1)
}
  0x9b   : > { %s2810_s17 = scalar_lea.vmem %s3357_s21, 2048  ;;  %p2818_p9 = scmp.lt.s32.totalorder %s3357_s21, %s3357_s21 }
  0x9c   : > { %p2811_p4 = scmp.ne.s32.totalorder %s3357_s21, %s2810_s17  ;;  %p2819_p10 = scmp.lt.s32.totalorder %s2810_s17, %s2810_s17 }
  0x9e   : > { %p2813_p6 = pnand %p2811_p4, %p3281_p7  ;;  %p2820_p11 = por %p2819_p10, %p2818_p9 }
  0xa0   : > { %p2814_p8 = pneg %p2813_p6 }
  0xa2   : > { %p2821_p12 = pnand %p2820_p11, %p2814_p8 }
  0xa4   : > { %2824 = shalt.err (!%p2821_p12)
}
  0xa5   : > { %s3970_s27 = smov 8   ;;  %s3971_s28 = smov 128  }
  0xa6   : > { %2455 = dma.hbm_to_vmem [thread:$0]  (!%p3265_p5), %s3969_s9, 2048, %s3357_s21, [#allocation18], %s3971_s28, %s3971_s28, %s3970_s27  }
  0xa7   : > { %s3142_s29 = smov [#allocation20]   ;;  %s2825_s24 = scalar_lea.hbm %s3928_s11, 4096 }
  0xa8   : > { %s511_s18 = sshll.u32 %s3142_s29, 4  ;;  %p2826_p13 = scmp.ne.s32.totalorder %s3928_s11, %s2825_s24  ;;  %s512_s18 = int_to_ptr.vmem [resolvable:$true] %s511_s18 }
  0xa9   : > { %p2832_p0 = scmp.lt.u32.totalorder %s2825_s24, %s3928_s11 }
  0xaa   : > { %p2828_p2 = pnand %p2826_p13, %p3281_p7 }
  0xac   : > { %p2829_p3 = pneg %p2828_p2 }
  0xae   : > { %p2834_p1 = pnand %p2832_p0, %p2829_p3 }
  0xb0   : > { %2837 = shalt.err (!%p2834_p1)
}
  0xb1   : > { %s2838_s21 = scalar_lea.vmem %s512_s18, 4096  ;;  %p2846_p9 = scmp.lt.s32.totalorder %s512_s18, %s512_s18 }
  0xb2   : > { %p2839_p4 = scmp.ne.s32.totalorder %s512_s18, %s2838_s21  ;;  %p2847_p10 = scmp.lt.s32.totalorder %s2838_s21, %s2838_s21 }
  0xb4   : > { %p2841_p6 = pnand %p2839_p4, %p3281_p7  ;;  %p2848_p11 = por %p2847_p10, %p2846_p9 }
  0xb6   : > { %p2842_p8 = pneg %p2841_p6 }
  0xb8   : > { %p2849_p12 = pnand %p2848_p11, %p2842_p8 }
  0xba   : > { %2852 = shalt.err (!%p2849_p12)
}
  0xbb   : > { %s3972_s22 = smov 4   ;;  %s3973_s13 = smov 64  }
  0xbc   : > { %2461 = dma.hbm_to_vmem [thread:$0]  (!%p3265_p5), %s3928_s11, 4096, %s512_s18, [#allocation21], %s3973_s13, %s3973_s13, %s3972_s22  }
  0xbd   : > { %s40_s19 = sadd.s32 1, %s3125_s26  ;;  %s3143_s29 = smov [#allocation2]  }
  0xbe   : > { %p41_p13 = scmp.ge.s32.totalorder %s40_s19, 2  ;;  %s368_s14 = sshll.u32 %s3143_s29, 4  ;;  %s369_s14 = int_to_ptr.vmem [resolvable:$true] %s368_s14 }
  0xbf   : > { %s3144_s20 = smov [#allocation7]   ;;  %s2853_s5 = scalar_lea.hbm %s3917_s0, 512 }
  0xc0   : > { %s3987_s19 = smov (%p41_p13, %s40_s19), 0  ;;  %s394_s24 = sshll.u32 %s3144_s20, 4  ;;  %s395_s24 = int_to_ptr.vmem [resolvable:$true] %s394_s24 }
  0xc1   : > { %p2854_p2 = scmp.ne.s32.totalorder %s3917_s0, %s2853_s5  ;;  %p2860_p1 = scmp.lt.u32.totalorder %s2853_s5, %s3917_s0 }
  0xc3   : > { %p2856_p3 = pnand %p2854_p2, %p3281_p7 }
  0xc5   : > { %p2857_p0 = pneg %p2856_p3 }
  0xc7   : > { %p2862_p4 = pnand %p2860_p1, %p2857_p0 }
  0xc9   : > { %2865 = shalt.err (!%p2862_p4)
}
  0xca   : > { %s2866_s13 = scalar_lea.vmem %s369_s14, 512  ;;  %p2874_p10 = scmp.lt.s32.totalorder %s369_s14, %s369_s14 }
  0xcb   : > { %p2867_p6 = scmp.ne.s32.totalorder %s369_s14, %s2866_s13  ;;  %p2875_p11 = scmp.lt.s32.totalorder %s2866_s13, %s2866_s13 }
  0xcd   : > { %p2869_p8 = pnand %p2867_p6, %p3281_p7  ;;  %p2876_p12 = por %p2875_p11, %p2874_p10 }
  0xcf   : > { %p2870_p9 = pneg %p2869_p8 }
  0xd1   : > { %p2877_p13 = pnand %p2876_p12, %p2870_p9 }
  0xd3   : > { %2880 = shalt.err (!%p2877_p13)
}
  0xd4   : > { %2428 = dma.hbm_to_vmem [thread:$0]  (!%p3265_p5), %s3917_s0, 512, %s369_s14, [#allocation3], %s3971_s28, %s3971_s28, %s3970_s27  }
  0xd5   : > { %s2881_s3 = scalar_lea.hbm %s3919_s2, 32 }
  0xd6   : > { %p2882_p2 = scmp.ne.s32.totalorder %s3919_s2, %s2881_s3  ;;  %p2888_p1 = scmp.lt.u32.totalorder %s2881_s3, %s3919_s2 }
  0xd8   : > { %p2884_p3 = pnand %p2882_p2, %p3281_p7 }
  0xda   : > { %p2885_p0 = pneg %p2884_p3 }
  0xdc   : > { %p2890_p4 = pnand %p2888_p1, %p2885_p0 }
  0xde   : > { %2893 = shalt.err (!%p2890_p4)
}
  0xdf   : > { %s2894_s18 = scalar_lea.vmem %s395_s24, 32  ;;  %p2902_p10 = scmp.lt.s32.totalorder %s395_s24, %s395_s24 }
  0xe0   : > { %p2895_p6 = scmp.ne.s32.totalorder %s395_s24, %s2894_s18  ;;  %p2903_p11 = scmp.lt.s32.totalorder %s2894_s18, %s2894_s18 }
  0xe2   : > { %p2897_p8 = pnand %p2895_p6, %p3281_p7  ;;  %p2904_p12 = por %p2903_p11, %p2902_p10 }
  0xe4   : > { %p2898_p9 = pneg %p2897_p8 }
  0xe6   : > { %p2905_p13 = pnand %p2904_p12, %p2898_p9 }
  0xe8   : > { %2908 = shalt.err (!%p2905_p13)
}
  0xe9   : > { %2434 = dma.hbm_to_vmem [thread:$0]  (!%p3265_p5), %s3919_s2, 32, %s395_s24, [#allocation6], %s3968_s25, %s3968_s25, %s3967_s23  }
  0xea   : > { %s3145_s14 = smov [#allocation10]   ;;  %s2909_s5 = scalar_lea.hbm %s3921_s4, 64 }
  0xeb   : > { %s420_s22 = sshll.u32 %s3145_s14, 4  ;;  %p2910_p2 = scmp.ne.s32.totalorder %s3921_s4, %s2909_s5  ;;  %s421_s22 = int_to_ptr.vmem [resolvable:$true] %s420_s22 }
  0xec   : > { %p2916_p1 = scmp.lt.u32.totalorder %s2909_s5, %s3921_s4 }
  0xed   : > { %p2912_p3 = pnand %p2910_p2, %p3281_p7 }
  0xef   : > { %p2913_p0 = pneg %p2912_p3 }
  0xf1   : > { %p2918_p4 = pnand %p2916_p1, %p2913_p0 }
  0xf3   : > { %2921 = shalt.err (!%p2918_p4)
}
  0xf4   : > { %s2922_s24 = scalar_lea.vmem %s421_s22, 64  ;;  %p2930_p10 = scmp.lt.s32.totalorder %s421_s22, %s421_s22 }
  0xf5   : > { %p2923_p6 = scmp.ne.s32.totalorder %s421_s22, %s2922_s24  ;;  %p2931_p11 = scmp.lt.s32.totalorder %s2922_s24, %s2922_s24 }
  0xf7   : > { %p2925_p8 = pnand %p2923_p6, %p3281_p7  ;;  %p2932_p12 = por %p2931_p11, %p2930_p10 }
  0xf9   : > { %p2926_p9 = pneg %p2925_p8 }
  0xfb   : > { %p2933_p13 = pnand %p2932_p12, %p2926_p9 }
  0xfd   : > { %2936 = shalt.err (!%p2933_p13)
}
  0xfe   : > { %s3146_s20 = smov 32   ;;  %s3147_s17 = smov 2  }
  0xff   : > { %2440 = dma.hbm_to_vmem [thread:$0]  (!%p3265_p5), %s3921_s4, 64, %s421_s22, [#allocation9], %s3146_s20, %s3146_s20, %s3147_s17  }
 0x100   : > { %s3148_s27 = smov [#allocation13]   ;;  %s3149_s14 = smov [#allocation16]  }
 0x101   : > { %s446_s28 = sshll.u32 %s3148_s27, 4  ;;  %s472_s13 = sshll.u32 %s3149_s14, 4  ;;  %s447_s28 = int_to_ptr.vmem [resolvable:$true] %s446_s28  ;;  %s3493_s13 = int_to_ptr.vmem [resolvable:$true] %s472_s13 }
 0x102   : > { %s2937_s9 = scalar_lea.hbm %s3923_s6, 32 }
 0x103   : > { %p2938_p2 = scmp.ne.s32.totalorder %s3923_s6, %s2937_s9  ;;  %p2944_p1 = scmp.lt.u32.totalorder %s2937_s9, %s3923_s6 }
 0x105   : > { %p2940_p3 = pnand %p2938_p2, %p3281_p7 }
 0x107   : > { %p2941_p0 = pneg %p2940_p3 }
 0x109   : > { %p2946_p4 = pnand %p2944_p1, %p2941_p0 }
 0x10b   : > { %2949 = shalt.err (!%p2946_p4)
}
 0x10c   : > { %s2950_s24 = scalar_lea.vmem %s447_s28, 32  ;;  %p2958_p10 = scmp.lt.s32.totalorder %s447_s28, %s447_s28 }
 0x10d   : > { %p2951_p6 = scmp.ne.s32.totalorder %s447_s28, %s2950_s24  ;;  %p2959_p11 = scmp.lt.s32.totalorder %s2950_s24, %s2950_s24 }
 0x10f   : > { %p2953_p8 = pnand %p2951_p6, %p3281_p7  ;;  %p2960_p12 = por %p2959_p11, %p2958_p10 }
 0x111   : > { %p2954_p9 = pneg %p2953_p8 }
 0x113   : > { %p2961_p13 = pnand %p2960_p12, %p2954_p9 }
 0x115   : > { %2964 = shalt.err (!%p2961_p13)
}
 0x116   : > { %2446 = dma.hbm_to_vmem [thread:$0]  (!%p3265_p5), %s3923_s6, 32, %s447_s28, [#allocation12], %s3968_s25, %s3968_s25, %s3967_s23  }
 0x117   : > { %s2965_s7 = scalar_lea.hbm %s3925_s8, 32 }
 0x118   : > { %p2966_p2 = scmp.ne.s32.totalorder %s3925_s8, %s2965_s7  ;;  %p2972_p1 = scmp.lt.u32.totalorder %s2965_s7, %s3925_s8 }
 0x11a   : > { %p2968_p3 = pnand %p2966_p2, %p3281_p7 }
 0x11c   : > { %p2969_p0 = pneg %p2968_p3 }
 0x11e   : > { %p2974_p4 = pnand %p2972_p1, %p2969_p0 }
 0x120   : > { %2977 = shalt.err (!%p2974_p4)
}
 0x121   : > { %s2978_s28 = scalar_lea.vmem %s3493_s13, 32  ;;  %p2986_p10 = scmp.lt.s32.totalorder %s3493_s13, %s3493_s13 }
 0x122   : > { %p2979_p6 = scmp.ne.s32.totalorder %s3493_s13, %s2978_s28  ;;  %p2987_p11 = scmp.lt.s32.totalorder %s2978_s28, %s2978_s28 }
 0x124   : > { %p2981_p8 = pnand %p2979_p6, %p3281_p7  ;;  %p2988_p12 = por %p2987_p11, %p2986_p10 }
 0x126   : > { %p2982_p9 = pneg %p2981_p8 }
 0x128   : > { %p2989_p13 = pnand %p2988_p12, %p2982_p9 }
 0x12a   : > { %2992 = shalt.err (!%p2989_p13)
}
 0x12b   : > { %2452 = dma.hbm_to_vmem [thread:$0]  (!%p3265_p5), %s3925_s8, 32, %s3493_s13, [#allocation15], %s3968_s25, %s3968_s25, %s3967_s23  }
 0x12c   : > { %s3150_s24 = smov [#allocation19]   ;;  %s3151_s18 = smov [#allocation22]  }
 0x12d   : > { %s498_s21 = sshll.u32 %s3150_s24, 4  ;;  %s524_s27 = sshll.u32 %s3151_s18, 4  ;;  %s499_s21 = int_to_ptr.vmem [resolvable:$true] %s498_s21  ;;  %s3542_s27 = int_to_ptr.vmem [resolvable:$true] %s524_s27 }
 0x12e   : > { %s2993_s5 = scalar_lea.hbm %s3927_s10, 64 }
 0x12f   : > { %p2994_p2 = scmp.ne.s32.totalorder %s3927_s10, %s2993_s5  ;;  %p3000_p1 = scmp.lt.u32.totalorder %s2993_s5, %s3927_s10 }
 0x131   : > { %p2996_p3 = pnand %p2994_p2, %p3281_p7 }
 0x133   : > { %p2997_p0 = pneg %p2996_p3 }
 0x135   : > { %p3002_p4 = pnand %p3000_p1, %p2997_p0 }
 0x137   : > { %3005 = shalt.err (!%p3002_p4)
}
 0x138   : > { %s3006_s28 = scalar_lea.vmem %s499_s21, 64  ;;  %p3014_p10 = scmp.lt.s32.totalorder %s499_s21, %s499_s21 }
 0x139   : > { %p3007_p6 = scmp.ne.s32.totalorder %s499_s21, %s3006_s28  ;;  %p3015_p11 = scmp.lt.s32.totalorder %s3006_s28, %s3006_s28 }
 0x13b   : > { %p3009_p8 = pnand %p3007_p6, %p3281_p7  ;;  %p3016_p12 = por %p3015_p11, %p3014_p10 }
 0x13d   : > { %p3010_p9 = pneg %p3009_p8 }
 0x13f   : > { %p3017_p13 = pnand %p3016_p12, %p3010_p9 }
 0x141   : > { %3020 = shalt.err (!%p3017_p13)
}
 0x142   : > { %2458 = dma.hbm_to_vmem [thread:$0]  (!%p3265_p5), %s3927_s10, 64, %s499_s21, [#allocation18], %s3146_s20, %s3146_s20, %s3147_s17  }
 0x143   : > { %s3021_s14 = scalar_lea.hbm %s3929_s12, 32 }
 0x144   : > { %p3022_p2 = scmp.ne.s32.totalorder %s3929_s12, %s3021_s14  ;;  %p3028_p1 = scmp.lt.u32.totalorder %s3021_s14, %s3929_s12 }
 0x146   : > { %p3024_p3 = pnand %p3022_p2, %p3281_p7 }
 0x148   : > { %p3025_p0 = pneg %p3024_p3 }
 0x14a   : > { %p3030_p4 = pnand %p3028_p1, %p3025_p0 }
 0x14c   : > { %3033 = shalt.err (!%p3030_p4)
}
 0x14d   : > { %s3034_s20 = scalar_lea.vmem %s3542_s27, 32  ;;  %p3042_p10 = scmp.lt.s32.totalorder %s3542_s27, %s3542_s27 }
 0x14e   : > { %p3035_p6 = scmp.ne.s32.totalorder %s3542_s27, %s3034_s20  ;;  %p3043_p11 = scmp.lt.s32.totalorder %s3034_s20, %s3034_s20 }
 0x150   : > { %p3037_p8 = pnand %p3035_p6, %p3281_p7  ;;  %p3044_p12 = por %p3043_p11, %p3042_p10 }
 0x152   : > { %p3038_p9 = pneg %p3037_p8 }
 0x154   : > { %p3045_p13 = pnand %p3044_p12, %p3038_p9 }
 0x156   : > { %3048 = shalt.err (!%p3045_p13)
}
 0x157   : > { %2464 = dma.hbm_to_vmem [thread:$0]  (!%p3265_p5), %s3929_s12, 32, %s3542_s27, [#allocation21], %s3968_s25, %s3968_s25, %s3967_s23  }
 0x158   : > { %p3974_p2 = scmp.ne.s32.totalorder %s3960_s15, 0 }
 0x159   : > { %s3975_s30 = sld [smem:[#allocation34_spill]] (!%p3974_p2) }
 0x15a   : > { %540 = sbr.rel (%p3974_p2) target bundleno = 2915 (0xb63), region = 72 }
 0x15f   : > { %p3976_p7 = scmp.ne.s32.totalorder (!%p3974_p2), %s3975_s30, 0 }
 0x161   : > { %3088 = dma.done.wait (%p3976_p7), [#allocation3], 512  }
 0x162   : > { %3090 = vsyncadd (%p3976_p7), [#allocation3], 4294966784 }
 0x163   : > { %3092 = dma.done.wait (%p3976_p7), [#allocation6], 64  }
 0x164   : > { %3094 = vsyncadd (%p3976_p7), [#allocation6], 4294967232 }
 0x165   : > { %3096 = dma.done.wait (%p3976_p7), [#allocation9], 2112  }
 0x166   : > { %3098 = vsyncadd (%p3976_p7), [#allocation9], 4294965184 }
 0x167   : > { %3100 = dma.done.wait (%p3976_p7), [#allocation12], 1056  }
 0x168   : > { %3102 = vsyncadd (%p3976_p7), [#allocation12], 4294966240 }
 0x169   : > { %3104 = dma.done.wait (%p3976_p7), [#allocation15], 64  }
 0x16a   : > { %3106 = vsyncadd (%p3976_p7), [#allocation15], 4294967232 }
 0x16b   : > { %3108 = dma.done.wait (%p3976_p7), [#allocation18], 2112  }
 0x16c   : > { %3110 = vsyncadd (%p3976_p7), [#allocation18], 4294965184 }
 0x16d   : > { %3112 = dma.done.wait (%p3976_p7), [#allocation21], 4128  }
 0x16e   : > { %3114 = vsyncadd (%p3976_p7), [#allocation21], 4294963168  ;;  %s3977_s15 = sld [smem:[#allocation32_spill]] }
 0x174   : > { %p2186_p5 = scmp.ne.s32.totalorder %s3977_s15, 0 }
 0x175   : > { %v629_v0 = vld [vmem:[#allocation2] sm:$0xff] (!%p2186_p5)  ;;  %vm633_vm0 = vcmask (!%p2186_p5), 523264   ;;  %v630_v1 = vld [vmem:[#allocation2 + $0x8] sm:$0xff] (!%p2186_p5)  ;;  %v631_v2 = vld [vmem:[#allocation2 + $0x10] sm:$0xff] (!%p2186_p5) }
 0x176   : > { %628 = sbr.rel (%p2186_p5) target bundleno = 381 (0x17d), region = 128  ;;  %634 = vst.msk [vmem:[#allocation23] sm:$0xff] (!%p2186_p5), %vm633_vm0, %v629_v0  ;;  %635 = vst.msk [vmem:[#allocation23 + $0x8] sm:$0xff] (!%p2186_p5), %vm633_vm0, %v630_v1  ;;  %v632_v3 = vld [vmem:[#allocation2 + $0x18] sm:$0xff] (!%p2186_p5) }
 0x177   : > { %636 = vst.msk [vmem:[#allocation23 + $0x10] sm:$0xff] (!%p2186_p5), %vm633_vm0, %v631_v2  ;;  %637 = vst.msk [vmem:[#allocation23 + $0x18] sm:$0xff] (!%p2186_p5), %vm633_vm0, %v632_v3 }
 0x17d PF: > { %v3622_v4 = vld [vmem:[#allocation23] sm:$0xff]  ;;  %vm646_vm1 = vcmask 523264   ;;  %v3626_v6 = vld [vmem:[#allocation23 + $0x8] sm:$0xff]  ;;  %s3978_s16 = sld [smem:[#allocation32_spill]]  ;;  %v3152_v40 = vmov 0   ;;  %s3153_s22 = smov 96  }
 0x17e   : > { %v3624_v5 = vld [vmem:[#allocation23 + $0x10] sm:$0xff]  ;;  %v647_v7 = vsel %vm646_vm1, %v3622_v4, 0.0  ;;  %v3632_v9 = vld [vmem:[#allocation23 + $0x18] sm:$0xff]  ;;  %v650_v10 = vsel %vm646_vm1, %v3626_v6, 0.0  ;;  %825 = vmatprep.mubr.bf16.mxu0 %v3152_v40  ;;  %vm3155_vm2 = vmmov 0   ;;  %s3156_s24 = smov 64  }
 0x17f   : > { %v653_v8 = vsel %vm646_vm1, %v3624_v5, 0.0  ;;  %648 = vadd.xlane.f32.xlu0 %v647_v7  ;;  %v656_v11 = vsel %vm646_vm1, %v3632_v9, 0.0  ;;  %vm885_vm3 = vcmask 261120   ;;  %vm1091_vm4 = vcmask 130048   ;;  %s3157_s7 = smov 32   ;;  %s3979_s15 = sld [smem:[#allocation33_spill]] }
 0x180   : > { %654 = vadd.xlane.f32.xlu1 %v653_v8 }
 0x183   : > { %651 = vadd.xlane.f32.xlu0 %v650_v10  ;;  %s2255_s23 = sshll.u32 %s3978_s16, 6  ;;  %s642_s3 = scalar_lea.vmem [#allocation5], %s3978_s16 }
 0x184   : > { %657 = vadd.xlane.f32.xlu1 %v656_v11  ;;  %s724_s25 = scalar_lea.vmem [#allocation8], %s2255_s23  ;;  %s3652_s27 = scalar_lea.vmem [#allocation17], %s2255_s23  ;;  %v2187_v55 = vld [vmem:[%s642_s3] ss:$0 sm:$0xff] }
 0x185   : > { %v2577_v32 = vld [vmem:[%s724_s25 + $0x4] ss:$8 sps:$4 sm:$0xff]   ;;  %v2579_v33 = vld [vmem:[%s724_s25] ss:$8 sps:$4 sm:$0xff]   ;;  %v2580_v34 = vld [vmem:[%s724_s25 + $0x14] ss:$8 sps:$4 sm:$0xff]  }
 0x186   : > { %793 = vmatprep.subr.bf16.mxu0 %v2577_v32  ;;  %v2582_v35 = vld [vmem:[%s724_s25 + $0x10] ss:$8 sps:$4 sm:$0xff]   ;;  %v2583_v36 = vld [vmem:[%s724_s25 + $0x24] ss:$8 sps:$4 sm:$0xff]   ;;  %v2585_v37 = vld [vmem:[%s724_s25 + $0x20] ss:$8 sps:$4 sm:$0xff]  }
 0x187   : > { %794 = vmatpush1.bf16.msra.mxu0 %v2579_v33  ;;  %v2586_v38 = vld [vmem:[%s724_s25 + $0x34] ss:$8 sps:$4 sm:$0xff]   ;;  %v2588_v39 = vld [vmem:[%s724_s25 + $0x30] ss:$8 sps:$4 sm:$0xff]   ;;  %s644_s13 = scalar_lea.vmem [#allocation7], %s3978_s16  ;;  %s2191_s28 = sshll.u32 %s3978_s16, 1 }
 0x188   : > { %795 = vmatprep.subr.bf16.mxu0 %v2580_v34  ;;  %v2188_v60 = vld [vmem:[%s644_s13] ss:$0 sm:$0xff]  ;;  %s734_s29 = scalar_lea.vmem [#allocation10], %s2191_s28  ;;  %v3154_v32 = vmov 0.0   ;;  %s2256_s18 = sshll.u32 %s3978_s16, 5 }
 0x189   : > { %2315 = vmatprep.subr.bf16.mxu1 %v3154_v32  ;;  %2317 = vmatprep.mubr.msk.bf16.mxu1 %vm3155_vm2, %v3154_v32  ;;  %s3751_s14 = scalar_lea.vmem [#allocation11], %s2256_s18  ;;  %s1397_s5 = scalar_lea.vmem [#allocation13], %s3978_s16 }
 0x18a   : > { %s1488_s9 = scalar_lea.vmem [#allocation14], %s3978_s16  ;;  %s1490_s1 = scalar_lea.vmem [#allocation16], %s3978_s16 }
 0x18b   : > { %796 = vmatpush1.bf16.msra.mxu0 %v2582_v35  ;;  %s2258_s20 = sshll.u32 %s3978_s16, 7  ;;  %s1576_s21 = scalar_lea.vmem [#allocation19], %s2191_s28 }
 0x18c   : > { %797 = vmatprep.subr.bf16.mxu0 %v2583_v36  ;;  %s1766_s17 = scalar_lea.vmem [#allocation20], %s2258_s20  ;;  %s1799_s30 = scalar_lea.vmem [#allocation22], %s3978_s16 }
 0x18d   : > { %s3158_s16 = smov [#allocation23]   ;;  %s3980_s25 = sadd.s32 4294967295, %s3979_s15  }
 0x18e   : > { %s1970_s23 = sshll.u32 %s3158_s16, 4  ;;  %p3879_p3 = scmp.eq.s32.totalorder %s3980_s25, 1  ;;  %s1971_s23 = int_to_ptr.vmem [resolvable:$true] %s1970_s23 }
 0x18f   : > { %798 = vmatpush1.bf16.msra.mxu0 %v2585_v37  ;;  %s3049_s3 = scalar_lea.vmem %s1971_s23, 512  ;;  %p3056_p6 = scmp.lt.s32.totalorder %s1971_s23, %s1971_s23 }
 0x190   : > { %799 = vmatprep.subr.bf16.mxu0 %v2586_v38  ;;  %p3050_p0 = scmp.ne.s32.totalorder %s1971_s23, %s3049_s3  ;;  %p3057_p8 = scmp.lt.s32.totalorder %s3049_s3, %s3049_s3 }
 0x192   : > { %p3051_p1 = pnand %p3050_p0, %p3879_p3  ;;  %p3058_p9 = por %p3057_p8, %p3056_p6 }
 0x193   : > { %800 = vmatpush1.bf16.msra.mxu0 %v2588_v39 }
 0x194   : > { %2309 = vmatprep.subr.bf16.mxu0 %v3154_v32  ;;  %p3052_p4 = pneg %p3051_p1 }
 0x196   : > { %p3059_p10 = pnand %p3058_p9, %p3052_p4 }
 0x20c   : > { %v649_v12 = vpop.xlane.xlu0 %648 }
 0x20d   : > { %v655_v13 = vpop.xlane.xlu1 %654  ;;  %v660_v14 = vmul.f32 0.015625, %v649_v12 }
 0x20e   : > { %v662_v15 = vmul.f32 0.015625, %v655_v13  ;;  %v737_v13 = vlaneseq }
 0x20f   : > { %v664_v16 = vsub.f32 %v3622_v4, %v660_v14 }
 0x210   : > { %v3640_v17 = vsub.f32 %v3624_v5, %v662_v15  ;;  %v652_v18 = vpop.xlane.xlu0 %651  ;;  %v3661_v14 = vshrl.u32 %v737_v13, 7 }
 0x211   : > { %v658_v19 = vpop.xlane.xlu1 %657  ;;  %v661_v20 = vmul.f32 0.015625, %v652_v18  ;;  %v668_v22 = vmul.f32 %v664_v16, %v664_v16 }
 0x212   : > { %v663_v21 = vmul.f32 0.015625, %v658_v19  ;;  %v670_v23 = vmul.f32 %v3640_v17, %v3640_v17  ;;  %v739_v15 = vsub.s32 0, %v3661_v14 }
 0x213   : > { %v665_v24 = vsub.f32 %v3626_v6, %v661_v20  ;;  %v672_v26 = vsel %vm646_vm1, %v668_v22, 0.0 }
 0x214   : > { %v667_v25 = vsub.f32 %v3632_v9, %v663_v21  ;;  %673 = vadd.xlane.f32.xlu0 %v672_v26  ;;  %v678_v27 = vsel %vm646_vm1, %v670_v23, 0.0 }
 0x215   : > { %v669_v28 = vmul.f32 %v665_v24, %v665_v24 }
 0x216   : > { %v671_v29 = vmul.f32 %v667_v25, %v667_v25 }
 0x217   : > { %v675_v30 = vsel %vm646_vm1, %v669_v28, 0.0 }
 0x218   : > { %679 = vadd.xlane.f32.xlu0 %v678_v27  ;;  %676 = vadd.xlane.f32.xlu1 %v675_v30  ;;  %v681_v31 = vsel %vm646_vm1, %v671_v29, 0.0 }
 0x21c   : > { %682 = vadd.xlane.f32.xlu1 %v681_v31 }
 0x2a1   : > { %v674_v41 = vpop.xlane.xlu0 %673 }
 0x2a2   : > { %v684_v42 = vmul.f32 0.015625, %v674_v41 }
 0x2a4   : > { %v688_v43 = vadd.f32 1e-06, %v684_v42 }
 0x2a5   : > { %v677_v44 = vpop.xlane.xlu1 %676  ;;  %v680_v45 = vpop.xlane.xlu0 %679 }
 0x2a6   : > { %2621 = vrsqrt.f32 %v688_v43  ;;  %v685_v46 = vmul.f32 0.015625, %v677_v44  ;;  %v686_v47 = vmul.f32 0.015625, %v680_v45 }
 0x2a8   : > { %v689_v48 = vadd.f32 1e-06, %v685_v46  ;;  %v690_v49 = vadd.f32 1e-06, %v686_v47 }
 0x2a9   : > { %v683_v50 = vpop.xlane.xlu1 %682 }
 0x2aa   : > { %2623 = vrsqrt.f32 %v689_v48  ;;  %v687_v51 = vmul.f32 0.015625, %v683_v50 }
 0x2ab   : > { %2625 = vrsqrt.f32 %v690_v49 }
 0x2ac   : > { %v691_v52 = vadd.f32 1e-06, %v687_v51 }
 0x2ae   : > { %2627 = vrsqrt.f32 %v691_v52 }
 0x2b0   : > { %v2622_v53 = vpop.eup %2621 }
 0x2b1   : > { %v696_v54 = vmul.f32 %v2622_v53, %v664_v16  ;;  %v735_v16 = vld [vmem:[%s734_s29] sm:$0x3] }
 0x2b2   : > { %v740_v18 = vrot.slane %v735_v16, %v739_v15 }
 0x2b3   : > { %v706_v58 = vmul.f32 %v2187_v55, %v696_v54 }
 0x2b4   : > { %v2624_v56 = vpop.eup %2623 }
 0x2b5   : > { %v697_v57 = vmul.f32 %v2624_v56, %v665_v24  ;;  %v2626_v59 = vpop.eup %2625  ;;  %v716_v1 = vadd.f32 %v2188_v60, %v706_v58 }
 0x2b6   : > { %v698_v63 = vmul.f32 %v2626_v59, %v3640_v17  ;;  %v743_v17 = vsub.s32 1, %v3661_v14 }
 0x2b7   : > { %v707_v61 = vmul.f32 %v2187_v55, %v697_v57 }
 0x2b8   : > { %v2628_v62 = vpop.eup %2627  ;;  %v708_v8 = vmul.f32 %v2187_v55, %v698_v63  ;;  %v744_v20 = vrot.slane %v735_v16, %v743_v17 }
 0x2b9   : > { %v699_v0 = vmul.f32 %v2628_v62, %v667_v25  ;;  %v717_v2 = vadd.f32 %v2188_v60, %v707_v61 }
 0x2ba   : > { %v718_v11 = vadd.f32 %v2188_v60, %v708_v8 }
 0x2bb   : > { %v720_v3 = vpack.c.bf16 %v717_v2, %v716_v1  ;;  %v709_v7 = vmul.f32 %v2187_v55, %v699_v0 }
 0x2bd   : > { %2200 = vmatmul.mubr.msk.bf16.vlgmr.msra.gmra.mrb[0].mxu0 %vm646_vm1, %v720_v3  ;;  %v719_v10 = vadd.f32 %v2188_v60, %v709_v7 }
 0x2be   : > { %835 = vmatprep.mubr.bf16.mxu0 %v3152_v40 }
 0x2bf   : > { %v721_v12 = vpack.c.bf16 %v719_v10, %v718_v11 }
 0x2c5   : > { %2201 = vmatmul.mubr.msk.bf16.gmra.mrb[4].mxu0 %vm646_vm1, %v721_v12 }
 0x2c6   : > { %2311 = vmatprep.mubr.msk.bf16.mxu0 %vm3155_vm2, %v3154_v32 }
 0x390   : > { %v827_v19 = vpop.f32.mrb[0].mxu0 }
 0x391   : > { %v829_v21 = vpop.f32.mrb[1].mxu0  ;;  %v828_v23 = vadd.f32 %v827_v19, %v740_v18 }
 0x392   : > { %v831_v22 = vpop.f32.mrb[2].mxu0  ;;  %v3671_v26 = vadd.f32 %v829_v21, %v744_v20 }
 0x393   : > { %v832_v24 = vadd.f32 %v831_v22, %v740_v18  ;;  %v833_v25 = vpop.f32.mrb[3].mxu0 }
 0x394   : > { %v3673_v27 = vadd.f32 %v833_v25, %v744_v20 }
 0x395   : > { %v2547_v28 = vpack.i.bf16 %v832_v24, %v828_v23  ;;  %v878_v29 = vpack.c.bf16 %v832_v24, %v828_v23 }
 0x396   : > { %v2557_v30 = vpack.i.bf16 %v3673_v27, %v3671_v26  ;;  %v1168_v31 = vpack.c.bf16 %v3673_v27, %v3671_v26 }
 0x397   : > { %2548 = vrot.lane.b32.xlu0 %v2547_v28, %s3153_s22 }
 0x398   : > { %v837_v33 = vpop.f32.mrb[4].mxu0 }
 0x399   : > { %v839_v34 = vpop.f32.mrb[5].mxu0  ;;  %v838_v36 = vadd.f32 %v837_v33, %v740_v18 }
 0x39a   : > { %v841_v35 = vpop.f32.mrb[6].mxu0  ;;  %v3682_v39 = vadd.f32 %v839_v34, %v744_v20 }
 0x39b   : > { %v842_v37 = vadd.f32 %v841_v35, %v740_v18  ;;  %v843_v38 = vpop.f32.mrb[7].mxu0 }
 0x39c   : > { %v3684_v41 = vadd.f32 %v843_v38, %v744_v20 }
 0x39d   : > { %v2552_v42 = vpack.i.bf16 %v842_v37, %v838_v36  ;;  %v879_v43 = vpack.c.bf16 %v842_v37, %v838_v36 }
 0x39e   : > { %v2562_v44 = vpack.i.bf16 %v3684_v41, %v3682_v39  ;;  %v1169_v45 = vpack.c.bf16 %v3684_v41, %v3682_v39 }
 0x39f   : > { %2553 = vrot.lane.b32.xlu1 %v2552_v42, %s3153_s22 }
 0x3a3   : > { %883 = vrot.lane.b32.xlu1 %v878_v29, %s3156_s24 }
 0x3a7   : > { %934 = vrot.lane.b32.xlu1 %v879_v43, %s3156_s24 }
 0x409   : > { %v2549_v46 = vpop.permute.xlu0 %2548 }
 0x40a   : > { %v2551_v47 = vunpack.i.h.bf16 %v2549_v46  ;;  %v2550_v48 = vunpack.i.l.bf16 %v2549_v46 }
 0x40c   : > { %v880_v49 = vpack.c.bf16 %v2551_v47, %v2550_v48 }
 0x40e   : > { %984 = vrot.lane.b32.xlu0 %v880_v49, %s3156_s24 }
 0x411   : > { %v2554_v50 = vpop.permute.xlu1 %2553 }
 0x412   : > { %v2556_v51 = vunpack.i.h.bf16 %v2554_v50  ;;  %v2555_v52 = vunpack.i.l.bf16 %v2554_v50 }
 0x414   : > { %v881_v53 = vpack.c.bf16 %v2556_v51, %v2555_v52 }
 0x415   : > { %v884_v54 = vpop.permute.xlu1 %883 }
 0x416   : > { %v890_v55 = vsel %vm885_vm3, %v884_v54, 0  ;;  %1034 = vrot.lane.b32.xlu1 %v881_v53, %s3156_s24 }
 0x417   : > { %2310 = vmatpush3.bf16.xpose.msra.mxu0 %v890_v55 }
 0x418   : > { %2327 = vmatprep.subr.bf16.mxu0 %v3154_v32 }
 0x419   : > { %v935_v56 = vpop.permute.xlu1 %934 }
 0x41a   : > { %v940_v57 = vsel %vm885_vm3, %v935_v56, 0 }
 0x41b   : > { %2316 = vmatpush3.bf16.xpose.msra.mxu1 %v940_v57 }
 0x41c   : > { %2321 = vmatprep.subr.bf16.mxu1 %v3154_v32 }
 0x41e   : > { %2312 = vmatmul.mubr.msk.bf16.vlgmr.msra.gmra.mrb[8].mxu0 %vm885_vm3, %v878_v29 }
 0x41f   : > { %2329 = vmatprep.mubr.msk.bf16.mxu0 %vm3155_vm2, %v3154_v32 }
 0x422   : > { %2318 = vmatmul.mubr.msk.bf16.vlgmr.msra.gmra.mrb[0].mxu1 %vm885_vm3, %v879_v43 }
 0x423   : > { %2323 = vmatprep.mubr.msk.bf16.mxu1 %vm3155_vm2, %v3154_v32 }
 0x480   : > { %v985_v58 = vpop.permute.xlu0 %984 }
 0x481   : > { %v990_v59 = vsel %vm885_vm3, %v985_v58, 0 }
 0x482   : > { %2322 = vmatpush3.bf16.xpose.msra.mxu1 %v990_v59 }
 0x483   : > { %2333 = vmatprep.subr.bf16.mxu1 %v3154_v32 }
 0x488   : > { %v1035_v60 = vpop.permute.xlu1 %1034 }
 0x489   : > { %v1040_v61 = vsel %vm885_vm3, %v1035_v60, 0  ;;  %2324 = vmatmul.mubr.msk.bf16.vlgmr.msra.gmra.mrb[4].mxu1 %vm885_vm3, %v880_v49 }
 0x48a   : > { %2328 = vmatpush3.bf16.xpose.msra.mxu0 %v1040_v61  ;;  %2334 = vmatpush3.bf16.msra.mxu1 %v1168_v31 }
 0x48b   : > { %2339 = vmatprep.subr.bf16.mxu0 %v3154_v32  ;;  %2335 = vmatprep.mubr.msk.bf16.mxu1 %vm3155_vm2, %v3154_v32 }
 0x48c   : > { %2345 = vmatprep.subr.bf16.mxu1 %v3154_v32 }
 0x491   : > { %2330 = vmatmul.mubr.msk.bf16.vlgmr.msra.gmra.mrb[12].mxu0 %vm885_vm3, %v881_v53 }
 0x492   : > { %2340 = vmatpush3.bf16.msra.mxu0 %v1169_v45  ;;  %2341 = vmatprep.mubr.msk.bf16.mxu0 %vm3155_vm2, %v3154_v32 }
 0x493   : > { %2351 = vmatprep.subr.bf16.mxu0 %v3154_v32 }
 0x4f1   : > { %v926_v62 = vpop.f32.mrb[8].mxu0 }
 0x4f2   : > { %v1083_v63 = vmul.f32 0.17677669, %v926_v62  ;;  %v2313_v0 = vpop.f32.mrb[9].mxu0 }
 0x4f3   : > { %v929_v1 = vpop.f32.mrb[10].mxu0 }
 0x4f4   : > { %v1084_v2 = vmul.f32 0.17677669, %v929_v1  ;;  %v2314_v3 = vpop.f32.mrb[11].mxu0  ;;  %v1092_v7 = vsel %vm1091_vm4, %v1083_v63, -inf }
 0x4f5   : > { %v976_v8 = vpop.f32.mrb[0].mxu1  ;;  %1093 = vmax.xlane.f32.xlu0 %v1092_v7 }
 0x4f6   : > { %v1085_v10 = vmul.f32 0.17677669, %v976_v8  ;;  %v2319_v11 = vpop.f32.mrb[1].mxu1  ;;  %v1095_v12 = vsel %vm1091_vm4, %v1084_v2, -inf }
 0x4f7   : > { %1096 = vmax.xlane.f32.xlu1 %v1095_v12  ;;  %v979_v13 = vpop.f32.mrb[2].mxu1 }
 0x4f8   : > { %v1086_v16 = vmul.f32 0.17677669, %v979_v13  ;;  %v2320_v18 = vpop.f32.mrb[3].mxu1  ;;  %v1098_v19 = vsel %vm1091_vm4, %v1085_v10, -inf }
 0x4f9   : > { %1099 = vmax.xlane.f32.xlu0 %v1098_v19 }
 0x4fa   : > { %v1101_v20 = vsel %vm1091_vm4, %v1086_v16, -inf }
 0x4fd   : > { %1102 = vmax.xlane.f32.xlu0 %v1101_v20 }
 0x55c   : > { %v1026_v21 = vpop.f32.mrb[4].mxu1 }
 0x55d   : > { %v1087_v22 = vmul.f32 0.17677669, %v1026_v21  ;;  %v2325_v23 = vpop.f32.mrb[5].mxu1 }
 0x55e   : > { %v1029_v24 = vpop.f32.mrb[6].mxu1 }
 0x55f   : > { %v1088_v25 = vmul.f32 0.17677669, %v1029_v24  ;;  %v2326_v28 = vpop.f32.mrb[7].mxu1  ;;  %v1104_v29 = vsel %vm1091_vm4, %v1087_v22, -inf }
 0x560   : > { %1105 = vmax.xlane.f32.xlu0 %v1104_v29 }
 0x561   : > { %v1107_v31 = vsel %vm1091_vm4, %v1088_v25, -inf }
 0x562   : > { %1108 = vmax.xlane.f32.xlu1 %v1107_v31 }
 0x564   : > { %v1076_v33 = vpop.f32.mrb[12].mxu0 }
 0x565   : > { %v1089_v34 = vmul.f32 0.17677669, %v1076_v33  ;;  %v2331_v35 = vpop.f32.mrb[13].mxu0 }
 0x566   : > { %v1079_v36 = vpop.f32.mrb[14].mxu0 }
 0x567   : > { %v1090_v37 = vmul.f32 0.17677669, %v1079_v36  ;;  %v2332_v38 = vpop.f32.mrb[15].mxu0  ;;  %v1110_v42 = vsel %vm1091_vm4, %v1089_v34, -inf }
 0x568   : > { %1111 = vmax.xlane.f32.xlu0 %v1110_v42 }
 0x569   : > { %v1113_v43 = vsel %vm1091_vm4, %v1090_v37, -inf }
 0x56a   : > { %1114 = vmax.xlane.f32.xlu1 %v1113_v43 }
 0x57b   : > { %2563 = vrot.lane.b32.xlu1 %v2562_v44, %s3153_s22 }
 0x57e   : > { %2558 = vrot.lane.b32.xlu0 %v2557_v30, %s3153_s22 }
 0x582   : > { %v1094_v45 = vpop.xlane.xlu0 %1093 }
 0x583   : > { %v1116_v46 = vsub.f32 %v1083_v63, %v1094_v45 }
 0x584   : > { %v1097_v47 = vpop.xlane.xlu1 %1096 }
 0x585   : > { %v1124_v48 = vmul.f32 1.442695, %v1116_v46  ;;  %v1117_v49 = vsub.f32 %v1084_v2, %v1097_v47 }
 0x586   : > { %v1100_v50 = vpop.xlane.xlu0 %1099 }
 0x587   : > { %v1126_v51 = vmul.f32 1.442695, %v1117_v49  ;;  %v1118_v52 = vsub.f32 %v1085_v10, %v1100_v50  ;;  %2629 = vpow2.f32 %v1124_v48 }
 0x589   : > { %2631 = vpow2.f32 %v1126_v51  ;;  %v1128_v53 = vmul.f32 1.442695, %v1118_v52  ;;  %v2590_v52 = vld [vmem:[%s3751_s14 + $0x8] sm:$0xff]  }
 0x58a   : > { %v1103_v54 = vpop.xlane.xlu0 %1102 }
 0x58b   : > { %v1119_v55 = vsub.f32 %v1086_v16, %v1103_v54  ;;  %2633 = vpow2.f32 %v1128_v53 }
 0x58d   : > { %v1130_v39 = vmul.f32 1.442695, %v1119_v55  ;;  %v2591_v55 = vld [vmem:[%s3751_s14 + $0x10] sm:$0xff]  }
 0x58f   : > { %2635 = vpow2.f32 %v1130_v39 }
 0x591   : > { %v2630_v41 = vpop.eup %2629 }
 0x592   : > { %v1140_v33 = vsel %vm1091_vm4, %v2630_v41, 0.0 }
 0x593   : > { %v2632_v44 = vpop.eup %2631 }
 0x594   : > { %v1164_v26 = vpack.c.bf16 %v2632_v44, %v2630_v41 }
 0x595   : > { %v2634_v27 = vpop.eup %2633 }
 0x596   : > { %2336 = vmatmul.mubr.msk.bf16.vlgmr.msra.gmra.mrb[8].mxu1 %vm1091_vm4, %v1164_v26  ;;  %v1146_v35 = vsel %vm1091_vm4, %v2634_v27, 0.0 }
 0x597   : > { %2347 = vmatprep.mubr.msk.bf16.mxu1 %vm3155_vm2, %v3154_v32 }
 0x599   : > { %v2636_v30 = vpop.eup %2635 }
 0x59a   : > { %v1165_v56 = vpack.c.bf16 %v2636_v30, %v2634_v27  ;;  %v1149_v36 = vsel %vm1091_vm4, %v2636_v30, 0.0  ;;  %v2592_v30 = vld [vmem:[%s3751_s14 + $0x18] sm:$0xff]  }
 0x59c   : > { %2342 = vmatmul.mubr.msk.bf16.vlgmr.msra.gmra.mrb[16].mxu0 %vm1091_vm4, %v1165_v56 }
 0x59d   : > { %2353 = vmatprep.mubr.msk.bf16.mxu0 %vm3155_vm2, %v3154_v32 }
 0x5ed   : > { %v1106_v57 = vpop.xlane.xlu0 %1105 }
 0x5ee   : > { %v1120_v58 = vsub.f32 %v1087_v22, %v1106_v57 }
 0x5ef   : > { %v1109_v59 = vpop.xlane.xlu1 %1108 }
 0x5f0   : > { %v1132_v60 = vmul.f32 1.442695, %v1120_v58  ;;  %v1121_v61 = vsub.f32 %v1088_v25, %v1109_v59 }
 0x5f2   : > { %2637 = vpow2.f32 %v1132_v60  ;;  %v1134_v62 = vmul.f32 1.442695, %v1121_v61 }
 0x5f4   : > { %2639 = vpow2.f32 %v1134_v62 }
 0x5f5   : > { %v1112_v63 = vpop.xlane.xlu0 %1111 }
 0x5f6   : > { %v1122_v0 = vsub.f32 %v1089_v34, %v1112_v63  ;;  %v1143_v34 = vsel %vm1091_vm4, %v2632_v44, 0.0 }
 0x5f7   : > { %v1115_v1 = vpop.xlane.xlu1 %1114 }
 0x5f8   : > { %v1136_v2 = vmul.f32 1.442695, %v1122_v0  ;;  %v1123_v3 = vsub.f32 %v1090_v37, %v1115_v1  ;;  %v2589_v37 = vld [vmem:[%s3751_s14] sm:$0xff]  }
 0x5f9   : > { %v2559_v7 = vpop.permute.xlu0 %2558 }
 0x5fa   : > { %2641 = vpow2.f32 %v1136_v2  ;;  %v1138_v8 = vmul.f32 1.442695, %v1123_v3  ;;  %v2561_v10 = vunpack.i.h.bf16 %v2559_v7  ;;  %v2560_v11 = vunpack.i.l.bf16 %v2559_v7 }
 0x5fb   : > { %v2564_v12 = vpop.permute.xlu1 %2563 }
 0x5fc   : > { %v2638_v32 = vpop.eup %2637  ;;  %2643 = vpow2.f32 %v1138_v8  ;;  %v1170_v13 = vpack.c.bf16 %v2561_v10, %v2560_v11  ;;  %v2566_v16 = vunpack.i.h.bf16 %v2564_v12  ;;  %v2565_v18 = vunpack.i.l.bf16 %v2564_v12 }
 0x5fd   : > { %v1152_v19 = vsel %vm1091_vm4, %v2638_v32, 0.0 }
 0x5fe   : > { %v2640_v20 = vpop.eup %2639  ;;  %v1171_v21 = vpack.c.bf16 %v2566_v16, %v2565_v18  ;;  %1153 = vadd.xlane.f32.xlu1 %v1152_v19  ;;  %2346 = vmatpush3.bf16.msra.mxu1 %v1170_v13 }
 0x5ff   : > { %v1155_v22 = vsel %vm1091_vm4, %v2640_v20, 0.0  ;;  %v1166_v23 = vpack.c.bf16 %v2640_v20, %v2638_v32  ;;  %2357 = vmatprep.subr.bf16.mxu1 %v2589_v37 }
 0x600   : > { %1156 = vadd.xlane.f32.xlu0 %v1155_v22  ;;  %2352 = vmatpush3.bf16.msra.mxu0 %v1171_v21 }
 0x601   : > { %2348 = vmatmul.mubr.msk.bf16.vlgmr.msra.gmra.mrb[12].mxu1 %vm1091_vm4, %v1166_v23 }
 0x602   : > { %2358 = vmatpush3.bf16.msra.mxu1 %v2589_v37 }
 0x603   : > { %2359 = vmatprep.subr.bf16.mxu1 %v2590_v52 }
 0x604   : > { %v2642_v24 = vpop.eup %2641 }
 0x605   : > { %v1158_v25 = vsel %vm1091_vm4, %v2642_v24, 0.0 }
 0x606   : > { %v2644_v28 = vpop.eup %2643  ;;  %1159 = vadd.xlane.f32.xlu0 %v1158_v25  ;;  %2360 = vmatpush3.bf16.msra.mxu1 %v2590_v52 }
 0x607   : > { %v1161_v29 = vsel %vm1091_vm4, %v2644_v28, 0.0  ;;  %v1167_v31 = vpack.c.bf16 %v2644_v28, %v2642_v24  ;;  %2361 = vmatprep.subr.bf16.mxu1 %v2591_v55 }
 0x608   : > { %1162 = vadd.xlane.f32.xlu1 %v1161_v29 }
 0x609   : > { %2354 = vmatmul.mubr.msk.bf16.vlgmr.msra.gmra.mrb[20].mxu0 %vm1091_vm4, %v1167_v31 }
 0x60a   : > { %1141 = vadd.xlane.f32.xlu0 %v1140_v33  ;;  %1667 = vmatprep.mubr.bf16.mxu0 %v3152_v40 }
 0x60b   : > { %2362 = vmatpush3.bf16.msra.mxu1 %v2591_v55 }
 0x60c   : > { %1144 = vadd.xlane.f32.xlu1 %v1143_v34  ;;  %2363 = vmatprep.subr.bf16.mxu1 %v2592_v30 }
 0x60e   : > { %1147 = vadd.xlane.f32.xlu0 %v1146_v35 }
 0x60f   : > { %2364 = vmatpush3.bf16.msra.mxu1 %v2592_v30 }
 0x610   : > { %1150 = vadd.xlane.f32.xlu1 %v1149_v36 }
 0x669   : > { %v1209_v38 = vpop.f32.mrb[8].mxu1 }
 0x66a   : > { %v2337_v42 = vpop.f32.mrb[9].mxu1 }
 0x66b   : > { %v1212_v43 = vpop.f32.mrb[10].mxu1  ;;  %v2212_v42 = vld [vmem:[%s1397_s5] ss:$0 sm:$0xff] }
 0x66c   : > { %v2338_v45 = vpop.f32.mrb[11].mxu1 }
 0x66f   : > { %v3754_v46 = vpop.f32.mrb[16].mxu0 }
 0x670   : > { %v2343_v47 = vpop.f32.mrb[17].mxu0 }
 0x671   : > { %v1256_v48 = vpop.f32.mrb[18].mxu0 }
 0x672   : > { %v2344_v49 = vpop.f32.mrb[19].mxu0 }
 0x68b   : > { %v1154_v50 = vpop.xlane.xlu1 %1153 }
 0x68c   : > { %2645 = vrcp.f32 %v1154_v50 }
 0x68d   : > { %v1157_v51 = vpop.xlane.xlu0 %1156 }
 0x68e   : > { %2647 = vrcp.f32 %v1157_v51 }
 0x693   : > { %v1160_v53 = vpop.xlane.xlu0 %1159 }
 0x694   : > { %2649 = vrcp.f32 %v1160_v53 }
 0x695   : > { %v1163_v54 = vpop.xlane.xlu1 %1162 }
 0x696   : > { %2651 = vrcp.f32 %v1163_v54  ;;  %v2646_v41 = vpop.eup %2645 }
 0x697   : > { %v1142_v8 = vpop.xlane.xlu0 %1141 }
 0x698   : > { %v2648_v26 = vpop.eup %2647  ;;  %2653 = vrcp.f32 %v1142_v8 }
 0x699   : > { %v1145_v10 = vpop.xlane.xlu1 %1144 }
 0x69a   : > { %2655 = vrcp.f32 %v1145_v10  ;;  %v2595_v10 = vld [vmem:[%s3652_s27 + $0x4] ss:$8 sps:$4 sm:$0xff]  }
 0x69b   : > { %v1148_v11 = vpop.xlane.xlu0 %1147  ;;  %1635 = vmatprep.subr.bf16.mxu0 %v2595_v10 }
 0x69c   : > { %2657 = vrcp.f32 %v1148_v11  ;;  %v2593_v11 = vld [vmem:[%s3652_s27] ss:$8 sps:$4 sm:$0xff]  }
 0x69d   : > { %v1151_v12 = vpop.xlane.xlu1 %1150  ;;  %1636 = vmatpush1.bf16.msra.mxu0 %v2593_v11 }
 0x69e   : > { %v2650_v61 = vpop.eup %2649  ;;  %2659 = vrcp.f32 %v1151_v12  ;;  %v2598_v12 = vld [vmem:[%s3652_s27 + $0x14] ss:$8 sps:$4 sm:$0xff]  }
 0x69f   : > { %1637 = vmatprep.subr.bf16.mxu0 %v2598_v12 }
 0x6a0   : > { %v2652_v63 = vpop.eup %2651 }
 0x6a2   : > { %v2654_v32 = vpop.eup %2653 }
 0x6a3   : > { %v1356_v18 = vmul.f32 %v2654_v32, %v1209_v38  ;;  %v2596_v32 = vld [vmem:[%s3652_s27 + $0x10] ss:$8 sps:$4 sm:$0xff]  }
 0x6a4   : > { %v2656_v13 = vpop.eup %2655  ;;  %1638 = vmatpush1.bf16.msra.mxu0 %v2596_v32 }
 0x6a5   : > { %v1357_v19 = vmul.f32 %v2656_v13, %v1212_v43  ;;  %v2601_v13 = vld [vmem:[%s3652_s27 + $0x24] ss:$8 sps:$4 sm:$0xff]  }
 0x6a6   : > { %v2658_v25 = vpop.eup %2657  ;;  %1639 = vmatprep.subr.bf16.mxu0 %v2601_v13 }
 0x6a7   : > { %v1358_v35 = vmul.f32 %v2658_v25, %v3754_v46 }
 0x6a8   : > { %v2660_v28 = vpop.eup %2659 }
 0x6a9   : > { %v1359_v31 = vmul.f32 %v2660_v28, %v1256_v48 }
 0x6d4   : > { %v1297_v39 = vpop.f32.mrb[12].mxu1 }
 0x6d5   : > { %v2349_v44 = vpop.f32.mrb[13].mxu1  ;;  %v1360_v56 = vmul.f32 %v2646_v41, %v1297_v39 }
 0x6d6   : > { %v1300_v27 = vpop.f32.mrb[14].mxu1 }
 0x6d7   : > { %v1361_v57 = vmul.f32 %v2648_v26, %v1300_v27  ;;  %v2350_v58 = vpop.f32.mrb[15].mxu1 }
 0x6d9   : > { %v2567_v59 = vpack.i.bf16 %v1361_v57, %v1360_v56 }
 0x6db   : > { %2568 = vrot.lane.b32.xlu0 %v2567_v59, %s3157_s7 }
 0x6dc   : > { %v1341_v60 = vpop.f32.mrb[20].mxu0 }
 0x6dd   : > { %v2355_v62 = vpop.f32.mrb[21].mxu0  ;;  %v1362_v1 = vmul.f32 %v2650_v61, %v1341_v60 }
 0x6de   : > { %v1344_v0 = vpop.f32.mrb[22].mxu0 }
 0x6df   : > { %v1363_v2 = vmul.f32 %v2652_v63, %v1344_v0  ;;  %v2356_v3 = vpop.f32.mrb[23].mxu0 }
 0x6e1   : > { %v2572_v7 = vpack.i.bf16 %v1363_v2, %v1362_v1 }
 0x6e3   : > { %2573 = vrot.lane.b32.xlu1 %v2572_v7, %s3157_s7 }
 0x74d   : > { %v2569_v16 = vpop.permute.xlu0 %2568 }
 0x74e   : > { %v2571_v20 = vunpack.i.h.bf16 %v2569_v16  ;;  %v2570_v21 = vunpack.i.l.bf16 %v2569_v16  ;;  %v2599_v16 = vld [vmem:[%s3652_s27 + $0x20] ss:$8 sps:$4 sm:$0xff]  }
 0x74f   : > { %1640 = vmatpush1.bf16.msra.mxu0 %v2599_v16 }
 0x750   : > { %v1381_v22 = vsel %vm885_vm3, %v1357_v19, %v2571_v20  ;;  %v1380_v23 = vsel %vm885_vm3, %v1356_v18, %v2570_v21  ;;  %v2604_v18 = vld [vmem:[%s3652_s27 + $0x34] ss:$8 sps:$4 sm:$0xff]   ;;  %v2602_v19 = vld [vmem:[%s3652_s27 + $0x30] ss:$8 sps:$4 sm:$0xff]  }
 0x751   : > { %v1384_v24 = vpack.c.bf16 %v1381_v22, %v1380_v23  ;;  %1641 = vmatprep.subr.bf16.mxu0 %v2604_v18 }
 0x753   : > { %2365 = vmatprep.mubr.msk.bf16.mxu1 %vm646_vm1, %v1384_v24  ;;  %1642 = vmatpush1.bf16.msra.mxu0 %v2602_v19 }
 0x755   : > { %v2574_v29 = vpop.permute.xlu1 %2573 }
 0x756   : > { %v2576_v33 = vunpack.i.h.bf16 %v2574_v29  ;;  %v2575_v34 = vunpack.i.l.bf16 %v2574_v29 }
 0x758   : > { %v1383_v36 = vsel %vm885_vm3, %v1359_v31, %v2576_v33  ;;  %v1382_v37 = vsel %vm885_vm3, %v1358_v35, %v2575_v34 }
 0x759   : > { %v1385_v38 = vpack.c.bf16 %v1383_v36, %v1382_v37  ;;  %v2219_v37 = vld [vmem:[%s1488_s9] ss:$0 sm:$0xff] }
 0x75b   : > { %2366 = vmatmul.mubr.msk.bf16.vlgmr.msra.gmra.mrb[16].mxu1 %vm646_vm1, %v1385_v38 }
 0x82e   : > { %v2367_v43 = vpop.f32.mrb[16].mxu1 }
 0x82f   : > { %v1469_v45 = vpop.f32.mrb[17].mxu1  ;;  %v1478_v48 = vadd.f32 %v2367_v43, %v2212_v42 }
 0x830   : > { %v1470_v47 = vadd.f32 %v2212_v42, %v1469_v45  ;;  %v2368_v49 = vpop.f32.mrb[18].mxu1 }
 0x831   : > { %v1481_v50 = vadd.f32 %v2368_v49, %v2212_v42  ;;  %v1472_v51 = vpop.f32.mrb[19].mxu1  ;;  %v3779_v39 = vadd.f32 %v1478_v48, %v3624_v5 }
 0x832   : > { %v3768_v52 = vadd.f32 %v1470_v47, %v3622_v4  ;;  %v1473_v46 = vadd.f32 %v2212_v42, %v1472_v51  ;;  %v2220_v47 = vld [vmem:[%s1490_s1] ss:$0 sm:$0xff] }
 0x833   : > { %v3771_v53 = vadd.f32 %v1481_v50, %v3632_v9  ;;  %v1498_v9 = vsel %vm646_vm1, %v3779_v39, 0.0 }
 0x834   : > { %v3774_v54 = vadd.f32 %v1473_v46, %v3626_v6  ;;  %v1492_v55 = vsel %vm646_vm1, %v3768_v52, 0.0 }
 0x835   : > { %1493 = vadd.xlane.f32.xlu1 %v1492_v55  ;;  %v1501_v4 = vsel %vm646_vm1, %v3771_v53, 0.0 }
 0x836   : > { %v1495_v41 = vsel %vm646_vm1, %v3774_v54, 0.0 }
 0x837   : > { %1496 = vadd.xlane.f32.xlu0 %v1495_v41 }
 0x839   : > { %1502 = vadd.xlane.f32.xlu1 %v1501_v4 }
 0x83b   : > { %1499 = vadd.xlane.f32.xlu0 %v1498_v9 }
 0x8c2   : > { %v1494_v6 = vpop.xlane.xlu1 %1493 }
 0x8c3   : > { %v1504_v44 = vmul.f32 0.015625, %v1494_v6 }
 0x8c4   : > { %v1497_v26 = vpop.xlane.xlu0 %1496 }
 0x8c5   : > { %v1508_v27 = vsub.f32 %v3768_v52, %v1504_v44  ;;  %v1505_v30 = vmul.f32 0.015625, %v1497_v26 }
 0x8c6   : > { %v1503_v5 = vpop.xlane.xlu1 %1502 }
 0x8c7   : > { %v1509_v56 = vsub.f32 %v3774_v54, %v1505_v30  ;;  %v1507_v57 = vmul.f32 0.015625, %v1503_v5  ;;  %v1512_v58 = vmul.f32 %v1508_v27, %v1508_v27  ;;  %v2605_v30 = vld [vmem:[%s1766_s17 + $0x40] sm:$0xff]  }
 0x8c8   : > { %v1500_v59 = vpop.xlane.xlu0 %1499  ;;  %v2606_v5 = vld [vmem:[%s1766_s17] sm:$0xff]   ;;  %2281 = vmatprep.subr.bf16.mxu1 %v2605_v30 }
 0x8c9   : > { %v1511_v60 = vsub.f32 %v3771_v53, %v1507_v57  ;;  %v1506_v61 = vmul.f32 0.015625, %v1500_v59  ;;  %v1516_v62 = vsel %vm646_vm1, %v1512_v58, 0.0  ;;  %v1513_v63 = vmul.f32 %v1509_v56, %v1509_v56  ;;  %2282 = vmatpush3.bf16.msra.mxu1 %v2606_v5  ;;  %v2608_v57 = vld [vmem:[%s1766_s17 + $0x8] sm:$0xff]   ;;  %v2609_v58 = vld [vmem:[%s1766_s17 + $0x50] sm:$0xff]  }
 0x8ca   : > { %1517 = vadd.xlane.f32.xlu0 %v1516_v62  ;;  %v2610_v59 = vld [vmem:[%s1766_s17 + $0x10] sm:$0xff]   ;;  %v2614_v62 = vld [vmem:[%s1766_s17 + $0x20] sm:$0xff]  }
 0x8cb   : > { %v1510_v0 = vsub.f32 %v3779_v39, %v1506_v61  ;;  %v1519_v1 = vsel %vm646_vm1, %v1513_v63, 0.0  ;;  %v1515_v2 = vmul.f32 %v1511_v60, %v1511_v60  ;;  %v2613_v61 = vld [vmem:[%s1766_s17 + $0x60] sm:$0xff]   ;;  %v2615_v63 = vld [vmem:[%s1766_s17 + $0x68] sm:$0xff]  }
 0x8cc   : > { %1520 = vadd.xlane.f32.xlu1 %v1519_v1  ;;  %v2617_v1 = vld [vmem:[%s1766_s17 + $0x70] sm:$0xff]  }
 0x8cd   : > { %v1514_v3 = vmul.f32 %v1510_v0, %v1510_v0  ;;  %v1525_v8 = vsel %vm646_vm1, %v1515_v2, 0.0  ;;  %v2618_v2 = vld [vmem:[%s1766_s17 + $0x30] sm:$0xff]  }
 0x8cf   : > { %v1522_v7 = vsel %vm646_vm1, %v1514_v3, 0.0  ;;  %v2619_v3 = vld [vmem:[%s1766_s17 + $0x78] sm:$0xff]  }
 0x8d0   : > { %1523 = vadd.xlane.f32.xlu0 %v1522_v7  ;;  %1526 = vadd.xlane.f32.xlu1 %v1525_v8  ;;  %v2620_v7 = vld [vmem:[%s1766_s17 + $0x38] sm:$0xff]   ;;  %v1577_v8 = vld [vmem:[%s1576_s21] sm:$0x3] }
 0x8d1   : > { %v1582_v10 = vrot.slane %v1577_v8, %v739_v15  ;;  %v1586_v11 = vrot.slane %v1577_v8, %v743_v17 }
 0x957   : > { %v1518_v20 = vpop.xlane.xlu0 %1517 }
 0x958   : > { %v1528_v21 = vmul.f32 0.015625, %v1518_v20 }
 0x959   : > { %v1521_v22 = vpop.xlane.xlu1 %1520 }
 0x95a   : > { %v1532_v23 = vadd.f32 1e-06, %v1528_v21  ;;  %v1529_v24 = vmul.f32 0.015625, %v1521_v22 }
 0x95c   : > { %2661 = vrsqrt.f32 %v1532_v23  ;;  %v1533_v25 = vadd.f32 1e-06, %v1529_v24 }
 0x95d   : > { %v1524_v28 = vpop.xlane.xlu0 %1523  ;;  %v1527_v29 = vpop.xlane.xlu1 %1526 }
 0x95e   : > { %2663 = vrsqrt.f32 %v1533_v25  ;;  %v1530_v31 = vmul.f32 0.015625, %v1524_v28  ;;  %v1531_v33 = vmul.f32 0.015625, %v1527_v29 }
 0x960   : > { %v1534_v34 = vadd.f32 1e-06, %v1530_v31  ;;  %v1535_v35 = vadd.f32 1e-06, %v1531_v33 }
 0x962   : > { %2665 = vrsqrt.f32 %v1534_v34 }
 0x963   : > { %2667 = vrsqrt.f32 %v1535_v35 }
 0x966   : > { %v2662_v36 = vpop.eup %2661 }
 0x967   : > { %v1540_v38 = vmul.f32 %v2662_v36, %v1508_v27 }
 0x968   : > { %v2664_v42 = vpop.eup %2663 }
 0x969   : > { %v1550_v43 = vmul.f32 %v2219_v37, %v1540_v38  ;;  %v1541_v45 = vmul.f32 %v2664_v42, %v1509_v56  ;;  %v2607_v56 = vld [vmem:[%s1766_s17 + $0x48] sm:$0xff]  }
 0x96a   : > { %2283 = vmatprep.subr.bf16.mxu1 %v2607_v56 }
 0x96b   : > { %v1551_v49 = vmul.f32 %v2219_v37, %v1541_v45  ;;  %v1560_v46 = vadd.f32 %v2220_v47, %v1550_v43  ;;  %2284 = vmatpush3.bf16.msra.mxu1 %v2608_v57 }
 0x96c   : > { %v2666_v50 = vpop.eup %2665  ;;  %2285 = vmatprep.subr.bf16.mxu1 %v2609_v58 }
 0x96d   : > { %v2668_v51 = vpop.eup %2667  ;;  %v1542_v48 = vmul.f32 %v2666_v50, %v1510_v0  ;;  %v1561_v55 = vadd.f32 %v2220_v47, %v1551_v49  ;;  %v2616_v0 = vld [vmem:[%s1766_s17 + $0x28] sm:$0xff]  }
 0x96e   : > { %v1543_v41 = vmul.f32 %v2668_v51, %v1511_v60  ;;  %v2612_v60 = vld [vmem:[%s1766_s17 + $0x18] sm:$0xff]  }
 0x96f   : > { %v1564_v4 = vpack.c.bf16 %v1561_v55, %v1560_v46  ;;  %v1552_v9 = vmul.f32 %v2219_v37, %v1542_v48  ;;  %2286 = vmatpush3.bf16.msra.mxu1 %v2610_v59 }
 0x970   : > { %v1553_v6 = vmul.f32 %v2219_v37, %v1543_v41 }
 0x971   : > { %2230 = vmatmul.mubr.msk.bf16.vlgmr.msra.gmra.mrb[24].mxu0 %vm646_vm1, %v1564_v4  ;;  %v1562_v44 = vadd.f32 %v2220_v47, %v1552_v9 }
 0x972   : > { %1677 = vmatprep.mubr.bf16.mxu0 %v3152_v40  ;;  %v1563_v26 = vadd.f32 %v2220_v47, %v1553_v6  ;;  %v2611_v40 = vld [vmem:[%s1766_s17 + $0x58] sm:$0xff]  }
 0x973   : > { %2287 = vmatprep.subr.bf16.mxu1 %v2611_v40 }
 0x974   : > { %v1565_v27 = vpack.c.bf16 %v1563_v26, %v1562_v44  ;;  %2288 = vmatpush3.bf16.msra.mxu1 %v2612_v60 }
 0x975   : > { %2289 = vmatprep.subr.bf16.mxu1 %v2613_v61 }
 0x978   : > { %2290 = vmatpush3.bf16.msra.mxu1 %v2614_v62 }
 0x979   : > { %2231 = vmatmul.mubr.msk.bf16.gmra.mrb[28].mxu0 %vm646_vm1, %v1565_v27  ;;  %2291 = vmatprep.subr.bf16.mxu1 %v2615_v63 }
 0x97c   : > { %2292 = vmatpush3.bf16.msra.mxu1 %v2616_v0 }
 0x97d   : > { %2293 = vmatprep.subr.bf16.mxu1 %v2617_v1 }
 0x980   : > { %2294 = vmatpush3.bf16.msra.mxu1 %v2618_v2 }
 0x981   : > { %2295 = vmatprep.subr.bf16.mxu1 %v2619_v3 }
 0x984   : > { %2296 = vmatpush3.bf16.msra.mxu1 %v2620_v7 }
 0xa44   : > { %v1669_v12 = vpop.f32.mrb[24].mxu0 }
 0xa45   : > { %v3815_v32 = vadd.f32 %v1669_v12, %v1582_v10  ;;  %v1671_v13 = vpop.f32.mrb[25].mxu0 }
 0xa46   : > { %v3817_v16 = vadd.f32 %v1671_v13, %v1586_v11  ;;  %v1673_v18 = vpop.f32.mrb[26].mxu0 }
 0xa47   : > { %v1688_v19 = vmul.f32 %v3815_v32, %v3815_v32  ;;  %v3821_v20 = vadd.f32 %v1673_v18, %v1582_v10  ;;  %v1675_v21 = vpop.f32.mrb[27].mxu0 }
 0xa48   : > { %v1689_v22 = vmul.f32 %v3817_v16, %v3817_v16  ;;  %v3825_v15 = vadd.f32 %v1675_v21, %v1586_v11 }
 0xa49   : > { %v1696_v14 = vmul.f32 %v1688_v19, %v3815_v32  ;;  %v1690_v17 = vmul.f32 %v3821_v20, %v3821_v20 }
 0xa4a   : > { %v1697_v23 = vmul.f32 %v1689_v22, %v3817_v16  ;;  %v1691_v24 = vmul.f32 %v3825_v15, %v3825_v15 }
 0xa4b   : > { %v1704_v25 = vmul.f32 0.044715, %v1696_v14  ;;  %v1698_v28 = vmul.f32 %v1690_v17, %v3821_v20 }
 0xa4c   : > { %v1705_v29 = vmul.f32 0.044715, %v1697_v23  ;;  %v1699_v31 = vmul.f32 %v1691_v24, %v3825_v15  ;;  %v1679_v33 = vpop.f32.mrb[28].mxu0 }
 0xa4d   : > { %v1712_v34 = vadd.f32 %v1704_v25, %v3815_v32  ;;  %v1706_v35 = vmul.f32 0.044715, %v1698_v28  ;;  %v3836_v36 = vadd.f32 %v1679_v33, %v1582_v10  ;;  %v1681_v37 = vpop.f32.mrb[29].mxu0 }
 0xa4e   : > { %v1713_v38 = vadd.f32 %v1705_v29, %v3817_v16  ;;  %v1707_v42 = vmul.f32 0.044715, %v1699_v31  ;;  %v3839_v43 = vadd.f32 %v1681_v37, %v1586_v11  ;;  %v1683_v45 = vpop.f32.mrb[30].mxu0 }
 0xa4f   : > { %v1720_v47 = vmul.f32 0.7978846, %v1712_v34  ;;  %v1714_v49 = vadd.f32 %v1706_v35, %v3821_v20  ;;  %v1692_v50 = vmul.f32 %v3836_v36, %v3836_v36  ;;  %v3844_v51 = vadd.f32 %v1683_v45, %v1582_v10  ;;  %v1685_v48 = vpop.f32.mrb[31].mxu0 }
 0xa50   : > { %v1721_v46 = vmul.f32 0.7978846, %v1713_v38  ;;  %v1715_v55 = vadd.f32 %v1707_v42, %v3825_v15  ;;  %v1693_v41 = vmul.f32 %v3839_v43, %v3839_v43  ;;  %v3849_v4 = vadd.f32 %v1685_v48, %v1586_v11 }
 0xa51   : > { %2669 = vtanh.f32 %v1720_v47  ;;  %v1722_v9 = vmul.f32 0.7978846, %v1714_v49  ;;  %v1700_v6 = vmul.f32 %v1692_v50, %v3836_v36  ;;  %v1694_v44 = vmul.f32 %v3844_v51, %v3844_v51 }
 0xa52   : > { %2671 = vtanh.f32 %v1721_v46  ;;  %v1723_v26 = vmul.f32 0.7978846, %v1715_v55  ;;  %v1701_v27 = vmul.f32 %v1693_v41, %v3839_v43  ;;  %v1695_v30 = vmul.f32 %v3849_v4, %v3849_v4 }
 0xa53   : > { %2673 = vtanh.f32 %v1722_v9  ;;  %v1708_v5 = vmul.f32 0.044715, %v1700_v6  ;;  %v1702_v56 = vmul.f32 %v1694_v44, %v3844_v51  ;;  %v2234_v6 = vld [vmem:[%s1799_s30] ss:$0 sm:$0xff] }
 0xa54   : > { %2675 = vtanh.f32 %v1723_v26  ;;  %v1709_v57 = vmul.f32 0.044715, %v1701_v27  ;;  %v1703_v58 = vmul.f32 %v1695_v30, %v3849_v4 }
 0xa55   : > { %v1716_v59 = vadd.f32 %v1708_v5, %v3836_v36  ;;  %v1710_v40 = vmul.f32 0.044715, %v1702_v56 }
 0xa56   : > { %v1717_v60 = vadd.f32 %v1709_v57, %v3839_v43  ;;  %v1711_v61 = vmul.f32 0.044715, %v1703_v58 }
 0xa57   : > { %v1724_v62 = vmul.f32 0.7978846, %v1716_v59  ;;  %v1718_v63 = vadd.f32 %v1710_v40, %v3844_v51 }
 0xa58   : > { %v1725_v0 = vmul.f32 0.7978846, %v1717_v60  ;;  %v1719_v1 = vadd.f32 %v1711_v61, %v3849_v4 }
 0xa59   : > { %2677 = vtanh.f32 %v1724_v62  ;;  %v1726_v2 = vmul.f32 0.7978846, %v1718_v63 }
 0xa5a   : > { %2679 = vtanh.f32 %v1725_v0  ;;  %v1727_v3 = vmul.f32 0.7978846, %v1719_v1 }
 0xa5b   : > { %v2670_v7 = vpop.eup %2669  ;;  %2681 = vtanh.f32 %v1726_v2 }
 0xa5c   : > { %v2672_v8 = vpop.eup %2671  ;;  %v1736_v10 = vadd.f32 1.0, %v2670_v7  ;;  %2683 = vtanh.f32 %v1727_v3 }
 0xa5d   : > { %v2674_v11 = vpop.eup %2673  ;;  %v1737_v12 = vadd.f32 1.0, %v2672_v8 }
 0xa5e   : > { %v2676_v13 = vpop.eup %2675  ;;  %v1744_v18 = vmul.f32 0.5, %v1736_v10  ;;  %v1738_v19 = vadd.f32 1.0, %v2674_v11 }
 0xa5f   : > { %v1739_v21 = vadd.f32 1.0, %v2676_v13  ;;  %v1745_v22 = vmul.f32 0.5, %v1737_v12 }
 0xa60   : > { %v1746_v14 = vmul.f32 0.5, %v1738_v19  ;;  %v1752_v23 = vmul.f32 %v1744_v18, %v3815_v32 }
 0xa61   : > { %v1747_v17 = vmul.f32 0.5, %v1739_v21  ;;  %v1753_v28 = vmul.f32 %v1745_v22, %v3817_v16 }
 0xa62   : > { %v1754_v24 = vmul.f32 %v1746_v14, %v3821_v20 }
 0xa63   : > { %v2678_v25 = vpop.eup %2677  ;;  %v1755_v29 = vmul.f32 %v1747_v17, %v3825_v15 }
 0xa64   : > { %v2680_v31 = vpop.eup %2679  ;;  %v1760_v33 = vpack.c.bf16 %v1754_v24, %v1752_v23  ;;  %v1740_v34 = vadd.f32 1.0, %v2678_v25 }
 0xa65   : > { %v2682_v35 = vpop.eup %2681  ;;  %v1761_v37 = vpack.c.bf16 %v1755_v29, %v1753_v28  ;;  %v1741_v38 = vadd.f32 1.0, %v2680_v31 }
 0xa66   : > { %v2684_v42 = vpop.eup %2683  ;;  %v1742_v45 = vadd.f32 1.0, %v2682_v35  ;;  %v1748_v47 = vmul.f32 0.5, %v1740_v34 }
 0xa67   : > { %1935 = vmatprep.mubr.bf16.mxu1 %v1761_v37  ;;  %v1743_v49 = vadd.f32 1.0, %v2684_v42  ;;  %v1749_v32 = vmul.f32 0.5, %v1741_v38 }
 0xa68   : > { %1936 = vmatmul.mubr.bf16.vlgmr.msra.gmra.mrb[20].mxu1 %v1760_v33  ;;  %v1750_v20 = vmul.f32 0.5, %v1742_v45  ;;  %v1756_v16 = vmul.f32 %v1748_v47, %v3836_v36 }
 0xa69   : > { %v1751_v50 = vmul.f32 0.5, %v1743_v49  ;;  %v1757_v48 = vmul.f32 %v1749_v32, %v3839_v43 }
 0xa6a   : > { %v1758_v15 = vmul.f32 %v1750_v20, %v3844_v51 }
 0xa6b   : > { %v1759_v46 = vmul.f32 %v1751_v50, %v3849_v4 }
 0xa6c   : > { %v1762_v55 = vpack.c.bf16 %v1758_v15, %v1756_v16 }
 0xa6d   : > { %v1763_v41 = vpack.c.bf16 %v1759_v46, %v1757_v48 }
 0xa6f   : > { %1943 = vmatprep.mubr.bf16.mxu1 %v1763_v41 }
 0xa70   : > { %1944 = vmatmul.mubr.bf16.gmra.mrb[24].mxu1 %v1762_v55 }
 0xb3b   : > { %v2297_v9 = vpop.f32.mrb[20].mxu1 }
 0xb3c   : > { %v2298_v44 = vpop.f32.mrb[21].mxu1 }
 0xb3d   : > { %v2299_v26 = vadd.f32 %v2298_v44, %v2297_v9  ;;  %v2300_v27 = vpop.f32.mrb[22].mxu1 }
 0xb3e   : > { %v2301_v30 = vpop.f32.mrb[23].mxu1 }
 0xb3f   : > { %v1938_v5 = vadd.f32 %v2299_v26, %v2234_v6  ;;  %v2302_v56 = vadd.f32 %v2301_v30, %v2300_v27 }
 0xb41   : > { %v1952_v36 = vadd.f32 %v1938_v5, %v3768_v52  ;;  %v1941_v51 = vadd.f32 %v2302_v56, %v2234_v6 }
 0xb43   : > { %1956 = vst.msk [vmem:[#allocation23] sm:$0xff] %vm646_vm1, %v1952_v36  ;;  %v1953_v43 = vadd.f32 %v1941_v51, %v3774_v54  ;;  %v2303_v4 = vpop.f32.mrb[24].mxu1 }
 0xb44   : > { %v2304_v57 = vpop.f32.mrb[25].mxu1 }
 0xb45   : > { %1957 = vst.msk [vmem:[#allocation23 + $0x8] sm:$0xff] %vm646_vm1, %v1953_v43  ;;  %v2305_v58 = vadd.f32 %v2304_v57, %v2303_v4  ;;  %v2306_v59 = vpop.f32.mrb[26].mxu1 }
 0xb46   : > { %v2307_v40 = vpop.f32.mrb[27].mxu1 }
 0xb47   : > { %v1946_v60 = vadd.f32 %v2305_v58, %v2234_v6  ;;  %v2308_v61 = vadd.f32 %v2307_v40, %v2306_v59 }
 0xb49   : > { %v1954_v62 = vadd.f32 %v1946_v60, %v3779_v39  ;;  %v1949_v52 = vadd.f32 %v2308_v61, %v2234_v6 }
 0xb4b   : > { %1958 = vst.msk [vmem:[#allocation23 + $0x10] sm:$0xff] %vm646_vm1, %v1954_v62  ;;  %v1955_v54 = vadd.f32 %v1949_v52, %v3771_v53 }
 0xb4d   : > { %1959 = vst.msk [vmem:[#allocation23 + $0x18] sm:$0xff] %vm646_vm1, %v1955_v54 }
 0xb4e   : > { %3062 = shalt.err (!%p3059_p10)
}
 0xb4f   : > { %s3982_s29 = sld [smem:[#allocation40_spill]] }
 0xb55   : > { %s3063_s22 = scalar_lea.hbm %s3982_s29, 512 }
 0xb56   : > { %p3064_p11 = scmp.ne.s32.totalorder %s3982_s29, %s3063_s22  ;;  %p3069_p2 = scmp.lt.u32.totalorder %s3063_s22, %s3982_s29 }
 0xb58   : > { %p3065_p12 = pnand %p3064_p11, %p3879_p3 }
 0xb5a   : > { %p3066_p13 = pneg %p3065_p12 }
 0xb5c   : > { %p3071_p7 = pnand %p3069_p2, %p3066_p13 }
 0xb5e   : > { %3074 = shalt.err (!%p3071_p7)
}
 0xb5f   : > { %s3159_s5 = smov 128   ;;  %s3160_s9 = smov 8  }
 0xb60   : > { %2422 = dma.vmem_to_hbm [thread:$0]  (%p3879_p3), %s1971_s23, 512, %s3982_s29, [#allocation4], %s3159_s5, %s3159_s5, %s3160_s9  }
 0xb61   : > { %3116 = dma.done.wait (%p3879_p3), [#allocation4], 512  }
 0xb62   : > { %3118 = vsyncadd (%p3879_p3), [#allocation4], 4294966784 }
 0xb63 PF: > { %s3983_s17 = sld [smem:[#allocation33_spill]]  ;;  %s3984_s25 = smov %s3125_s26 }
 0xb64   : > { %s3985_s26 = smov %s3987_s19 }
 0xb69   : > { %s31_s27 = sadd.s32 1, %s3983_s17  }
 0xb6a   : > { %p28_p5 = scmp.ge.s32.totalorder %s31_s27, 4  }
 0xb6c   :  { %30 = sbr.rel (!%p28_p5) target bundleno = 16 (0x10), region = 167 }
 0xb73   :  { %1986 = vsyncpa [#allocation3], 1 }
 0xb74   :  { %1988 = vsyncpa [#allocation3 + $0x1], 1 }
 0xb75   :  { %1989 = vsyncpa [#allocation6], 1 }
 0xb76   :  { %1990 = vsyncpa [#allocation9], 1 }
 0xb77   :  { %1991 = vsyncpa [#allocation12], 1 }
 0xb78   :  { %1992 = vsyncpa [#allocation15], 1 }
 0xb79   :  { %1993 = vsyncpa [#allocation18], 1 }
 0xb7a   :  { %1994 = vsyncpa [#allocation21], 1 }
 0xb7b   :  { %1995 = vsyncpa [#allocation4], 1 }
 0xb7c   :  { %1997 = vsyncpa [#allocation4 + $0x1], 1 }

</bundles_post_ra>
